<compile_context>
chip_gen: v7x
topology: tpu7x:2x2x1
jax: 0.10.0
libtpu: 0.0.40
codegen_flags: <defaults>
</compile_context>

<pallas_src>
import functools

import numpy as np
import jax
import jax.numpy as jnp
from jax.experimental import pallas as pl
from jax.experimental.pallas import tpu as pltpu  # noqa: F401  (TPU backend)

LN_EPS = 1e-5

D_MODEL = 128
D_TEXT = 12
KSIZE = 17
PAD = 8
PATCH = 16
NUM_CLASS = 4
MLP_RATIO = 4.0
SUBLANES = 8
LANES = 128


def _round_up(x, m):
    return ((x + m - 1) // m) * m


# ------------------- in-kernel math helpers (pure jnp) -------------------

def _ln(h, g, b):
    mu = jnp.mean(h, axis=-1, keepdims=True)
    var = jnp.mean((h - mu) ** 2, axis=-1, keepdims=True)
    return (h - mu) * jax.lax.rsqrt(var + LN_EPS) * g + b


def _bf16_dot(a, w):
    # bf16 MXU operands, f32 accumulation.
    return jnp.dot(a.astype(jnp.bfloat16), w.astype(jnp.bfloat16),
                   preferred_element_type=jnp.float32)


def _log_softmax(z):
    z = z - jnp.max(z, axis=-1, keepdims=True)
    return z - jnp.log(jnp.sum(jnp.exp(z), axis=-1, keepdims=True))


def _spectral_residual_ln(x, dft_c, dft_s, idft_c, idft_s, fr, fi, g, b):
    """rDFT -> learnable complex filter -> inverse rDFT (as f32 MXU matmuls),
    residual connection, LayerNorm.  x: (L, D)."""
    xr = jnp.dot(dft_c, x, preferred_element_type=jnp.float32)    # (F8, D)
    xi = -jnp.dot(dft_s, x, preferred_element_type=jnp.float32)   # (F8, D)
    yr = xr * fr - xi * fi
    yi = xr * fi + xi * fr
    y = (jnp.dot(idft_c, yr, preferred_element_type=jnp.float32)
         - jnp.dot(idft_s, yi, preferred_element_type=jnp.float32))  # (L, D)
    return _ln(x + y, g, b)


# ------------------------------ Pallas kernels ------------------------------

def _text_branch_kernel(cols_ref, tew_ref, teb_ref, ln1g_ref, ln1b_ref,
                        dftc_ref, dfts_ref, idftc_ref, idfts_ref,
                        fr_ref, fi_ref, ln2g_ref, ln2b_ref, o_ref):
    # cols: (B, L, Ct*K) im2col of Conv1d(12->128, k=17, pad=8)
    w_bf = tew_ref[...].astype(jnp.bfloat16)
    teb = teb_ref[...]
    ln1g, ln1b = ln1g_ref[...], ln1b_ref[...]
    ln2g, ln2b = ln2g_ref[...], ln2b_ref[...]
    dft_c, dft_s = dftc_ref[...], dfts_ref[...]
    idft_c, idft_s = idftc_ref[...], idfts_ref[...]
    fr, fi = fr_ref[...], fi_ref[...]
    for b in range(cols_ref.shape[0]):                       # static tiny batch
        h = jnp.dot(cols_ref[b].astype(jnp.bfloat16), w_bf,
                    preferred_element_type=jnp.float32) + teb
        x = _ln(h, ln1g, ln1b)                               # ecg_norm
        o_ref[b, :, :] = _spectral_residual_ln(
            x, dft_c, dft_s, idft_c, idft_s, fr, fi, ln2g, ln2b)


def _image_branch_kernel(patch_ref, pew_ref, peb_ref, pos_ref,
                         dftc_ref, dfts_ref, idftc_ref, idfts_ref,
                         fr_ref, fi_ref, lng_ref, lnb_ref, o_ref):
    # patches: (B, Np, Ci*P*P) for Conv2d(3->128, k=stride=16)
    w_bf = pew_ref[...].astype(jnp.bfloat16)
    peb = peb_ref[...]
    pos = pos_ref[...]
    lng, lnb = lng_ref[...], lnb_ref[...]
    dft_c, dft_s = dftc_ref[...], dfts_ref[...]
    idft_c, idft_s = idftc_ref[...], idfts_ref[...]
    fr, fi = fr_ref[...], fi_ref[...]
    for b in range(patch_ref.shape[0]):
        x = jnp.dot(patch_ref[b].astype(jnp.bfloat16), w_bf,
                    preferred_element_type=jnp.float32) + peb + pos
        o_ref[b, :, :] = _spectral_residual_ln(
            x, dft_c, dft_s, idft_c, idft_s, fr, fi, lng, lnb)


def _head_kernel(ttok_ref, itok_ref, tmean_ref, imean_ref,
                 ecgw_ref, ecgb_ref, cxrw_ref, cxrb_ref, fusw_ref,
                 w1_ref, b1_ref, g1_ref, bb1_ref,
                 w2_ref, b2_ref, g2_ref, bb2_ref,
                 w3_ref, b3_ref,
                 tfeat_ref, ifeat_ref, f_ref, logits_ref, *, true_batch):
    Bp = ttok_ref.shape[0]
    D = ttok_ref.shape[2]
    row = jax.lax.broadcasted_iota(jnp.int32, (Bp, D), 0)
    valid = (row < true_batch).astype(jnp.float32)

    # backbone stand-in linears (K is tiny -> keep f32)
    ecg = jnp.dot(tmean_ref[...], ecgw_ref[...],
                  preferred_element_type=jnp.float32) + ecgb_ref[...]
    cxr = jnp.dot(imean_ref[...], cxrw_ref[...],
                  preferred_element_type=jnp.float32) + cxrb_ref[...]

    # relu(max over tokens) + relu(backbone feature); mask padded batch rows
    tfeat = (jnp.maximum(jnp.max(ttok_ref[...], axis=1), 0.0)
             + jnp.maximum(ecg, 0.0)) * valid
    ifeat = (jnp.maximum(jnp.max(itok_ref[...], axis=1), 0.0)
             + jnp.maximum(cxr, 0.0)) * valid
    tfeat_ref[...] = tfeat
    ifeat_ref[...] = ifeat

    # JS-divergence gate (f32 scalar); zero padded rows contribute exactly 0
    m = 0.5 * (tfeat + ifeat)
    log_m = _log_softmax(m)
    lp, lq = _log_softmax(tfeat), _log_softmax(ifeat)
    kl1 = jnp.sum(jnp.exp(lp) * (lp - log_m)) / float(true_batch)
    kl2 = jnp.sum(jnp.exp(lq) * (lq - log_m)) / float(true_batch)
    alpha = 0.5 * kl1 + 0.5 * kl2

    # fused fusion matmul: [t | im] (Bp,256) @ [[Wt],[Wi]] (256,128)
    cat = jnp.concatenate([tfeat, ifeat], axis=-1)
    fusion = _bf16_dot(cat, fusw_ref[...])
    f = (1.0 - alpha) * fusion + alpha * tfeat + alpha * ifeat
    f_ref[...] = f

    # MLP head (logits lane-padded to 128 columns; sliced in wrapper)
    h = _bf16_dot(f, w1_ref[...]) + b1_ref[...]
    h = jnp.maximum(_ln(h, g1_ref[...], bb1_ref[...]), 0.0)
    h = _bf16_dot(h, w2_ref[...]) + b2_ref[...]
    h = jnp.maximum(_ln(h, g2_ref[...], bb2_ref[...]), 0.0)
    logits_ref[...] = _bf16_dot(h, w3_ref[...]) + b3_ref[...]


# ----------------------------- trace-time helpers -----------------------------

def _rdft_matrices(L):
    """Real-DFT / inverse real-DFT matrices (matching np.fft.rfft / irfft),
    with the frequency axis zero-padded up to a multiple of 8 sublanes."""
    F = L // 2 + 1
    F8 = _round_up(F, SUBLANES)
    l = np.arange(L, dtype=np.float64)[:, None]
    k = np.arange(F, dtype=np.float64)[None, :]
    ang = 2.0 * np.pi * l * k / L                          # (L, F)
    cos_fl = np.zeros((F8, L), np.float64)
    sin_fl = np.zeros((F8, L), np.float64)
    cos_fl[:F] = np.cos(ang).T
    sin_fl[:F] = np.sin(ang).T
    w = np.full((F,), 2.0 / L)
    w[0] = 1.0 / L
    if L % 2 == 0:
        w[-1] = 1.0 / L
    icos = np.zeros((L, F8), np.float64)
    isin = np.zeros((L, F8), np.float64)
    icos[:, :F] = np.cos(ang) * w[None, :]
    isin[:, :F] = np.sin(ang) * w[None, :]
    isin[:, 0] = 0.0                        # irfft drops imag at DC
    if L % 2 == 0:
        isin[:, F - 1] = 0.0                # ... and at Nyquist
    return (jnp.asarray(cos_fl, jnp.float32), jnp.asarray(sin_fl, jnp.float32),
            jnp.asarray(icos, jnp.float32), jnp.asarray(isin, jnp.float32))


def _pad_axis0(x, n):
    pad = [(0, n - x.shape[0])] + [(0, 0)] * (x.ndim - 1)
    return jnp.pad(x, pad)


# ------------------------------- FSRU forward -------------------------------

def fsru_forward(params, text, image):
    """text: (B, seq, 12) float32; image: (B, 3, H, W) float32 (NCHW)."""
    B, L, Ct = text.shape
    D = D_MODEL

    # ---- glue: Conv1d(12->128, k=17, pad=8) im2col (cheap XLA slicing) ----
    x_ncl = jnp.transpose(text, (0, 2, 1))                        # (B, 12, L)
    xpad = jnp.pad(x_ncl, ((0, 0), (0, 0), (PAD, PAD)))
    cols = jnp.stack([xpad[:, :, k:k + L] for k in range(KSIZE)], axis=-1)
    cols = jnp.transpose(cols, (0, 2, 1, 3)).reshape(B, L, Ct * KSIZE)

    # ---- glue: patch extraction for Conv2d(k=stride=16) ----
    Bi, Ci, H, W = image.shape
    Hp, Wp = H // PATCH, W // PATCH
    Np = Hp * Wp
    patches = image.reshape(Bi, Ci, Hp, PATCH, Wp, PATCH)
    patches = jnp.transpose(patches, (0, 2, 4, 1, 3, 5))
    patches = patches.reshape(Bi, Np, Ci * PATCH * PATCH)

    # ---- precomputed real-DFT matrices (compile-time constants) ----
    tdc, tds, tic, tis = _rdft_matrices(L)
    idc, ids, iic, iis = _rdft_matrices(Np)
    Ft8 = tdc.shape[0]
    Fi8 = idc.shape[0]

    # ---- kernel 1: text branch (conv + LN + Fourier block) ----
    # TODO(synk): FtBlock definition is not provided in the source; approximated
    # as learnable spectral gating (rDFT -> complex filter -> irDFT) with a
    # residual connection and LayerNorm.
    t_tok = pl.pallas_call(
        _text_branch_kernel,
        out_shape=jax.ShapeDtypeStruct((B, L, D), jnp.float32),
    )(cols, params['te_w'], params['te_b'].reshape(1, D),
      params['ecg_ln_g'].reshape(1, D), params['ecg_ln_b'].reshape(1, D),
      tdc, tds, tic, tis,
      _pad_axis0(params['t_filt_r'], Ft8), _pad_axis0(params['t_filt_i'], Ft8),
      params['ft_ln_t_g'].reshape(1, D), params['ft_ln_t_b'].reshape(1, D))

    # ---- kernel 2: image branch (patch embed + pos + Fourier block) ----
    i_tok = pl.pallas_call(
        _image_branch_kernel,
        out_shape=jax.ShapeDtypeStruct((B, Np, D), jnp.float32),
    )(patches, params['pe_w'], params['pe_b'].reshape(1, D),
      params['img_pos_embed'][0],
      idc, ids, iic, iis,
      _pad_axis0(params['i_filt_r'], Fi8), _pad_axis0(params['i_filt_i'], Fi8),
      params['ft_ln_i_g'].reshape(1, D), params['ft_ln_i_b'].reshape(1, D))

    # ---- kernel 3: head (maxrelu + backbone stand-ins + fusion + MLP) ----
    # TODO(synk): ResNet1d / pretrained ResNet34 / ViT-B_16 backbones are not
    # translatable in-script; replaced by deterministic linear stand-ins on the
    # token/pixel means producing (B, d_model).
    Bp = _round_up(max(B, SUBLANES), SUBLANES)
    text_mean = jnp.mean(text, axis=1)                            # (B, 12)
    image_mean = jnp.mean(image, axis=(2, 3))                     # (B, 3)

    H_mlp = params['mlp_w1'].shape[1]
    fus_w = jnp.concatenate([params['fus_wt'], params['fus_wi']], axis=0)
    w3p = jnp.pad(params['mlp_w3'], ((0, 0), (0, LANES - NUM_CLASS)))
    b3p = jnp.pad(params['mlp_b3'], (0, LANES - NUM_CLASS)).reshape(1, LANES)

    head = functools.partial(_head_kernel, true_batch=B)
    tfeat_p, ifeat_p, f_p, logits_p = pl.pallas_call(
        head,
        out_shape=(jax.ShapeDtypeStruct((Bp, D), jnp.float32),
                   jax.ShapeDtypeStruct((Bp, D), jnp.float32),
                   jax.ShapeDtypeStruct((Bp, D), jnp.float32),
                   jax.ShapeDtypeStruct((Bp, LANES), jnp.float32)),
    )(_pad_axis0(t_tok, Bp), _pad_axis0(i_tok, Bp),
      _pad_axis0(text_mean, Bp), _pad_axis0(image_mean, Bp),
      params['ecg_w'], params['ecg_b'].reshape(1, D),
      params['cxr_w'], params['cxr_b'].reshape(1, D),
      fus_w,
      params['mlp_w1'], params['mlp_b1'].reshape(1, H_mlp),
      params['mlp_g1'].reshape(1, H_mlp), params['mlp_bb1'].reshape(1, H_mlp),
      params['mlp_w2'], params['mlp_b2'].reshape(1, D),
      params['mlp_g2'].reshape(1, D), params['mlp_bb2'].reshape(1, D),
      w3p, b3p)

    text_feat = tfeat_p[:B]
    img_feat = ifeat_p[:B]
    f = f_p[:B]
    outputs = logits_p[:B, :NUM_CLASS]
    return text_feat, img_feat, outputs, f


# ------------------------------ parameter init ------------------------------

def init_params(key, seq_len, num_patches):
    D = D_MODEL
    H = int(MLP_RATIO * D)
    Ft = seq_len // 2 + 1
    Fi = num_patches // 2 + 1
    ks = jax.random.split(key, 16)

    def xavier(k, shape):
        std = (2.0 / (shape[0] + shape[1])) ** 0.5
        return std * jax.random.normal(k, shape, jnp.float32)

    p = {
        # text encoder Conv1d(12, 128, 17) as (12*17, 128)
        'te_w': xavier(ks[0], (D_TEXT * KSIZE, D)),
        'te_b': jnp.zeros((D,), jnp.float32),
        'ecg_ln_g': jnp.ones((D,), jnp.float32),
        'ecg_ln_b': jnp.zeros((D,), jnp.float32),
        # image patch embed Conv2d(3, 128, 16, 16) as (3*16*16, 128)
        'pe_w': xavier(ks[1], (3 * PATCH * PATCH, D)),
        'pe_b': jnp.zeros((D,), jnp.float32),
        'img_pos_embed': 0.02 * jax.random.normal(
            ks[2], (1, num_patches, D), jnp.float32),
        # Fourier-block spectral filters + layernorms
        't_filt_r': 1.0 + 0.02 * jax.random.normal(ks[3], (Ft, D), jnp.float32),
        't_filt_i': 0.02 * jax.random.normal(ks[4], (Ft, D), jnp.float32),
        'i_filt_r': 1.0 + 0.02 * jax.random.normal(ks[5], (Fi, D), jnp.float32),
        'i_filt_i': 0.02 * jax.random.normal(ks[6], (Fi, D), jnp.float32),
        'ft_ln_t_g': jnp.ones((D,), jnp.float32),
        'ft_ln_t_b': jnp.zeros((D,), jnp.float32),
        'ft_ln_i_g': jnp.ones((D,), jnp.float32),
        'ft_ln_i_b': jnp.zeros((D,), jnp.float32),
        # backbone stand-ins
        'ecg_w': xavier(ks[7], (D_TEXT, D)),
        'ecg_b': jnp.zeros((D,), jnp.float32),
        'cxr_w': xavier(ks[8], (3, D)),
        'cxr_b': jnp.zeros((D,), jnp.float32),
        # Fusion (nn.Parameter torch.randn(d, d))
        'fus_wt': jax.random.normal(ks[9], (D, D), jnp.float32),
        'fus_wi': jax.random.normal(ks[10], (D, D), jnp.float32),
        # MLP head
        'mlp_w1': xavier(ks[11], (D, H)),
        'mlp_b1': jnp.zeros((H,), jnp.float32),
        'mlp_g1': jnp.ones((H,), jnp.float32),
        'mlp_bb1': jnp.zeros((H,), jnp.float32),
        'mlp_w2': xavier(ks[12], (H, D)),
        'mlp_b2': jnp.zeros((D,), jnp.float32),
        'mlp_g2': jnp.ones((D,), jnp.float32),
        'mlp_bb2': jnp.zeros((D,), jnp.float32),
        'mlp_w3': xavier(ks[13], (D, NUM_CLASS)),
        'mlp_b3': jnp.zeros((NUM_CLASS,), jnp.float32),
    }
    return p


if __name__ == "__main__":
    key = jax.random.PRNGKey(0)
    kp, kt, ki = jax.random.split(key, 3)

    B, L = 2, 64
    img_size = 32
    num_patches = (img_size // PATCH) * (img_size // PATCH)

    params = init_params(kp, seq_len=L, num_patches=num_patches)
    text = jax.random.normal(kt, (B, L, D_TEXT), jnp.float32)        # (B, seq, 12)
    image = jax.random.normal(ki, (B, 3, img_size, img_size), jnp.float32)  # NCHW

    fwd = jax.jit(functools.partial(fsru_forward, params))
    text_feat, img_feat, outputs, f = fwd(text, image)
    jax.block_until_ready((text_feat, img_feat, outputs, f))

    assert text_feat.shape == (B, D_MODEL)
    assert img_feat.shape == (B, D_MODEL)
    assert f.shape == (B, D_MODEL)
    assert outputs.shape == (B, NUM_CLASS)
    print("KERNEL_OK")
</pallas_src>

<mosaic_0001>
module attributes {stable_mosaic.version = 11 : i64} {
  func.func @_image_branch_kernel(%arg0: memref<2x4x768xf32, #tpu.memory_space<vmem>>, %arg1: memref<768x128xf32, #tpu.memory_space<vmem>>, %arg2: memref<1x128xf32, #tpu.memory_space<vmem>>, %arg3: memref<4x128xf32, #tpu.memory_space<vmem>>, %arg4: memref<8x4xf32, #tpu.memory_space<vmem>>, %arg5: memref<8x4xf32, #tpu.memory_space<vmem>>, %arg6: memref<4x8xf32, #tpu.memory_space<vmem>>, %arg7: memref<4x8xf32, #tpu.memory_space<vmem>>, %arg8: memref<8x128xf32, #tpu.memory_space<vmem>>, %arg9: memref<8x128xf32, #tpu.memory_space<vmem>>, %arg10: memref<1x128xf32, #tpu.memory_space<vmem>>, %arg11: memref<1x128xf32, #tpu.memory_space<vmem>>, %arg12: memref<2x4x128xf32, #tpu.memory_space<vmem>>) attributes {dimension_semantics = [], scalar_prefetch = 0 : i64, scratch_operands = 0 : i64, tpu.core_type = #tpu.core_type<tc>} {
    %c0 = arith.constant 0 : index
    %c0_0 = arith.constant 0 : index
    %0 = vector.load %arg1[%c0, %c0_0] : memref<768x128xf32, #tpu.memory_space<vmem>>, vector<768x128xf32>
    %1 = arith.truncf %0 : vector<768x128xf32> to vector<768x128xbf16>
    %c0_1 = arith.constant 0 : index
    %c0_2 = arith.constant 0 : index
    %2 = vector.load %arg2[%c0_1, %c0_2] : memref<1x128xf32, #tpu.memory_space<vmem>>, vector<1x128xf32>
    %c0_3 = arith.constant 0 : index
    %c0_4 = arith.constant 0 : index
    %3 = vector.load %arg3[%c0_3, %c0_4] : memref<4x128xf32, #tpu.memory_space<vmem>>, vector<4x128xf32>
    %c0_5 = arith.constant 0 : index
    %c0_6 = arith.constant 0 : index
    %4 = vector.load %arg10[%c0_5, %c0_6] : memref<1x128xf32, #tpu.memory_space<vmem>>, vector<1x128xf32>
    %c0_7 = arith.constant 0 : index
    %c0_8 = arith.constant 0 : index
    %5 = vector.load %arg11[%c0_7, %c0_8] : memref<1x128xf32, #tpu.memory_space<vmem>>, vector<1x128xf32>
    %c0_9 = arith.constant 0 : index
    %c0_10 = arith.constant 0 : index
    %6 = vector.load %arg4[%c0_9, %c0_10] : memref<8x4xf32, #tpu.memory_space<vmem>>, vector<8x4xf32>
    %c0_11 = arith.constant 0 : index
    %c0_12 = arith.constant 0 : index
    %7 = vector.load %arg5[%c0_11, %c0_12] : memref<8x4xf32, #tpu.memory_space<vmem>>, vector<8x4xf32>
    %c0_13 = arith.constant 0 : index
    %c0_14 = arith.constant 0 : index
    %8 = vector.load %arg6[%c0_13, %c0_14] : memref<4x8xf32, #tpu.memory_space<vmem>>, vector<4x8xf32>
    %c0_15 = arith.constant 0 : index
    %c0_16 = arith.constant 0 : index
    %9 = vector.load %arg7[%c0_15, %c0_16] : memref<4x8xf32, #tpu.memory_space<vmem>>, vector<4x8xf32>
    %c0_17 = arith.constant 0 : index
    %c0_18 = arith.constant 0 : index
    %10 = vector.load %arg8[%c0_17, %c0_18] : memref<8x128xf32, #tpu.memory_space<vmem>>, vector<8x128xf32>
    %c0_19 = arith.constant 0 : index
    %c0_20 = arith.constant 0 : index
    %11 = vector.load %arg9[%c0_19, %c0_20] : memref<8x128xf32, #tpu.memory_space<vmem>>, vector<8x128xf32>
    %c0_21 = arith.constant 0 : index
    %c0_22 = arith.constant 0 : index
    %c0_23 = arith.constant 0 : index
    %12 = vector.load %arg0[%c0_21, %c0_22, %c0_23] : memref<2x4x768xf32, #tpu.memory_space<vmem>>, vector<1x4x768xf32>
    %13 = vector.shape_cast %12 : vector<1x4x768xf32> to vector<4x768xf32>
    %14 = arith.truncf %13 : vector<4x768xf32> to vector<4x768xbf16>
    %cst = arith.constant dense<0.000000e+00> : vector<4x128xf32>
    %15 = tpu.matmul %14, %1, %cst {dimension_numbers = #tpu.dot_dimension_numbers<[1], [0], [0], [1], [0, 0, 1, 1], [], []>} : vector<4x768xbf16>, vector<768x128xbf16>, vector<4x128xf32> -> vector<4x128xf32>
    %16 = vector.broadcast %2 : vector<1x128xf32> to vector<4x128xf32>
    %17 = arith.addf %15, %16 : vector<4x128xf32>
    %18 = arith.addf %17, %3 : vector<4x128xf32>
    %cst_24 = arith.constant dense<0.000000e+00> : vector<8x128xf32>
    %19 = tpu.matmul %6, %18, %cst_24 {dimension_numbers = #tpu.dot_dimension_numbers<[1], [0], [0], [1], [0, 0, 1, 1], [], []>} : vector<8x4xf32>, vector<4x128xf32>, vector<8x128xf32> -> vector<8x128xf32>
    %cst_25 = arith.constant dense<0.000000e+00> : vector<8x128xf32>
    %20 = tpu.matmul %7, %18, %cst_25 {dimension_numbers = #tpu.dot_dimension_numbers<[1], [0], [0], [1], [0, 0, 1, 1], [], []>} : vector<8x4xf32>, vector<4x128xf32>, vector<8x128xf32> -> vector<8x128xf32>
    %cst_26 = arith.constant 0.000000e+00 : f32
    %21 = vector.broadcast %cst_26 : f32 to vector<8x128xf32>
    %22 = arith.subf %21, %20 : vector<8x128xf32>
    %23 = arith.mulf %19, %10 : vector<8x128xf32>
    %24 = arith.mulf %22, %11 : vector<8x128xf32>
    %25 = arith.subf %23, %24 : vector<8x128xf32>
    %26 = arith.mulf %19, %11 : vector<8x128xf32>
    %27 = arith.mulf %22, %10 : vector<8x128xf32>
    %28 = arith.addf %26, %27 : vector<8x128xf32>
    %cst_27 = arith.constant dense<0.000000e+00> : vector<4x128xf32>
    %29 = tpu.matmul %8, %25, %cst_27 {dimension_numbers = #tpu.dot_dimension_numbers<[1], [0], [0], [1], [0, 0, 1, 1], [], []>} : vector<4x8xf32>, vector<8x128xf32>, vector<4x128xf32> -> vector<4x128xf32>
    %cst_28 = arith.constant dense<0.000000e+00> : vector<4x128xf32>
    %30 = tpu.matmul %9, %28, %cst_28 {dimension_numbers = #tpu.dot_dimension_numbers<[1], [0], [0], [1], [0, 0, 1, 1], [], []>} : vector<4x8xf32>, vector<8x128xf32>, vector<4x128xf32> -> vector<4x128xf32>
    %31 = arith.subf %29, %30 : vector<4x128xf32>
    %32 = arith.addf %18, %31 : vector<4x128xf32>
    %cst_29 = arith.constant dense<0.000000e+00> : vector<4xf32>
    %33 = vector.multi_reduction <add>, %32, %cst_29 [1] : vector<4x128xf32> to vector<4xf32>
    %34 = vector.shape_cast %33 : vector<4xf32> to vector<4x1xf32>
    %cst_30 = arith.constant 1.280000e+02 : f32
    %35 = vector.broadcast %cst_30 : f32 to vector<4x1xf32>
    %36 = arith.divf %34, %35 : vector<4x1xf32>
    %37 = vector.broadcast %36 : vector<4x1xf32> to vector<4x128xf32>
    %38 = arith.subf %32, %37 : vector<4x128xf32>
    %39 = arith.mulf %38, %38 : vector<4x128xf32>
    %cst_31 = arith.constant dense<0.000000e+00> : vector<4xf32>
    %40 = vector.multi_reduction <add>, %39, %cst_31 [1] : vector<4x128xf32> to vector<4xf32>
    %41 = vector.shape_cast %40 : vector<4xf32> to vector<4x1xf32>
    %cst_32 = arith.constant 1.280000e+02 : f32
    %42 = vector.broadcast %cst_32 : f32 to vector<4x1xf32>
    %43 = arith.divf %41, %42 : vector<4x1xf32>
    %44 = vector.broadcast %36 : vector<4x1xf32> to vector<4x128xf32>
    %45 = arith.subf %32, %44 : vector<4x128xf32>
    %cst_33 = arith.constant 9.99999974E-6 : f32
    %46 = vector.broadcast %cst_33 : f32 to vector<4x1xf32>
    %47 = arith.addf %43, %46 : vector<4x1xf32>
    %48 = math.rsqrt %47 : vector<4x1xf32>
    %49 = vector.broadcast %48 : vector<4x1xf32> to vector<4x128xf32>
    %50 = arith.mulf %45, %49 : vector<4x128xf32>
    %51 = vector.broadcast %4 : vector<1x128xf32> to vector<4x128xf32>
    %52 = arith.mulf %50, %51 : vector<4x128xf32>
    %53 = vector.broadcast %5 : vector<1x128xf32> to vector<4x128xf32>
    %54 = arith.addf %52, %53 : vector<4x128xf32>
    %c0_34 = arith.constant 0 : index
    %c0_35 = arith.constant 0 : index
    %c0_36 = arith.constant 0 : index
    %55 = vector.load %arg12[%c0_34, %c0_35, %c0_36] : memref<2x4x128xf32, #tpu.memory_space<vmem>>, vector<1x4x128xf32>
    %56 = vector.shape_cast %55 : vector<1x4x128xf32> to vector<4x128xf32>
    %57 = vector.shape_cast %54 : vector<4x128xf32> to vector<1x4x128xf32>
    tpu.vector_store %arg12[%c0_34, %c0_35, %c0_36], %57 {strides = array<i32>} : memref<2x4x128xf32, #tpu.memory_space<vmem>>, vector<1x4x128xf32>,
    %c1 = arith.constant 1 : index
    %c0_37 = arith.constant 0 : index
    %c0_38 = arith.constant 0 : index
    %58 = vector.load %arg0[%c1, %c0_37, %c0_38] : memref<2x4x768xf32, #tpu.memory_space<vmem>>, vector<1x4x768xf32>
    %59 = vector.shape_cast %58 : vector<1x4x768xf32> to vector<4x768xf32>
    %60 = arith.truncf %59 : vector<4x768xf32> to vector<4x768xbf16>
    %cst_39 = arith.constant dense<0.000000e+00> : vector<4x128xf32>
    %61 = tpu.matmul %60, %1, %cst_39 {dimension_numbers = #tpu.dot_dimension_numbers<[1], [0], [0], [1], [0, 0, 1, 1], [], []>} : vector<4x768xbf16>, vector<768x128xbf16>, vector<4x128xf32> -> vector<4x128xf32>
    %62 = vector.broadcast %2 : vector<1x128xf32> to vector<4x128xf32>
    %63 = arith.addf %61, %62 : vector<4x128xf32>
    %64 = arith.addf %63, %3 : vector<4x128xf32>
    %cst_40 = arith.constant dense<0.000000e+00> : vector<8x128xf32>
    %65 = tpu.matmul %6, %64, %cst_40 {dimension_numbers = #tpu.dot_dimension_numbers<[1], [0], [0], [1], [0, 0, 1, 1], [], []>} : vector<8x4xf32>, vector<4x128xf32>, vector<8x128xf32> -> vector<8x128xf32>
    %cst_41 = arith.constant dense<0.000000e+00> : vector<8x128xf32>
    %66 = tpu.matmul %7, %64, %cst_41 {dimension_numbers = #tpu.dot_dimension_numbers<[1], [0], [0], [1], [0, 0, 1, 1], [], []>} : vector<8x4xf32>, vector<4x128xf32>, vector<8x128xf32> -> vector<8x128xf32>
    %cst_42 = arith.constant 0.000000e+00 : f32
    %67 = vector.broadcast %cst_42 : f32 to vector<8x128xf32>
    %68 = arith.subf %67, %66 : vector<8x128xf32>
    %69 = arith.mulf %65, %10 : vector<8x128xf32>
    %70 = arith.mulf %68, %11 : vector<8x128xf32>
    %71 = arith.subf %69, %70 : vector<8x128xf32>
    %72 = arith.mulf %65, %11 : vector<8x128xf32>
    %73 = arith.mulf %68, %10 : vector<8x128xf32>
    %74 = arith.addf %72, %73 : vector<8x128xf32>
    %cst_43 = arith.constant dense<0.000000e+00> : vector<4x128xf32>
    %75 = tpu.matmul %8, %71, %cst_43 {dimension_numbers = #tpu.dot_dimension_numbers<[1], [0], [0], [1], [0, 0, 1, 1], [], []>} : vector<4x8xf32>, vector<8x128xf32>, vector<4x128xf32> -> vector<4x128xf32>
    %cst_44 = arith.constant dense<0.000000e+00> : vector<4x128xf32>
    %76 = tpu.matmul %9, %74, %cst_44 {dimension_numbers = #tpu.dot_dimension_numbers<[1], [0], [0], [1], [0, 0, 1, 1], [], []>} : vector<4x8xf32>, vector<8x128xf32>, vector<4x128xf32> -> vector<4x128xf32>
    %77 = arith.subf %75, %76 : vector<4x128xf32>
    %78 = arith.addf %64, %77 : vector<4x128xf32>
    %cst_45 = arith.constant dense<0.000000e+00> : vector<4xf32>
    %79 = vector.multi_reduction <add>, %78, %cst_45 [1] : vector<4x128xf32> to vector<4xf32>
    %80 = vector.shape_cast %79 : vector<4xf32> to vector<4x1xf32>
    %cst_46 = arith.constant 1.280000e+02 : f32
    %81 = vector.broadcast %cst_46 : f32 to vector<4x1xf32>
    %82 = arith.divf %80, %81 : vector<4x1xf32>
    %83 = vector.broadcast %82 : vector<4x1xf32> to vector<4x128xf32>
    %84 = arith.subf %78, %83 : vector<4x128xf32>
    %85 = arith.mulf %84, %84 : vector<4x128xf32>
    %cst_47 = arith.constant dense<0.000000e+00> : vector<4xf32>
    %86 = vector.multi_reduction <add>, %85, %cst_47 [1] : vector<4x128xf32> to vector<4xf32>
    %87 = vector.shape_cast %86 : vector<4xf32> to vector<4x1xf32>
    %cst_48 = arith.constant 1.280000e+02 : f32
    %88 = vector.broadcast %cst_48 : f32 to vector<4x1xf32>
    %89 = arith.divf %87, %88 : vector<4x1xf32>
    %90 = vector.broadcast %82 : vector<4x1xf32> to vector<4x128xf32>
    %91 = arith.subf %78, %90 : vector<4x128xf32>
    %cst_49 = arith.constant 9.99999974E-6 : f32
    %92 = vector.broadcast %cst_49 : f32 to vector<4x1xf32>
    %93 = arith.addf %89, %92 : vector<4x1xf32>
    %94 = math.rsqrt %93 : vector<4x1xf32>
    %95 = vector.broadcast %94 : vector<4x1xf32> to vector<4x128xf32>
    %96 = arith.mulf %91, %95 : vector<4x128xf32>
    %97 = vector.broadcast %4 : vector<1x128xf32> to vector<4x128xf32>
    %98 = arith.mulf %96, %97 : vector<4x128xf32>
    %99 = vector.broadcast %5 : vector<1x128xf32> to vector<4x128xf32>
    %100 = arith.addf %98, %99 : vector<4x128xf32>
    %c1_50 = arith.constant 1 : index
    %c0_51 = arith.constant 0 : index
    %c0_52 = arith.constant 0 : index
    %101 = vector.load %arg12[%c1_50, %c0_51, %c0_52] : memref<2x4x128xf32, #tpu.memory_space<vmem>>, vector<1x4x128xf32>
    %102 = vector.shape_cast %101 : vector<1x4x128xf32> to vector<4x128xf32>
    %103 = vector.shape_cast %100 : vector<4x128xf32> to vector<1x4x128xf32>
    tpu.vector_store %arg12[%c1_50, %c0_51, %c0_52], %103 {strides = array<i32>} : memref<2x4x128xf32, #tpu.memory_space<vmem>>, vector<1x4x128xf32>,
    return
  }
}

module attributes {stable_mosaic.version = 11 : i64} {
  func.func @_text_branch_kernel(%arg0: memref<2x64x204xf32, #tpu.memory_space<vmem>>, %arg1: memref<204x128xf32, #tpu.memory_space<vmem>>, %arg2: memref<1x128xf32, #tpu.memory_space<vmem>>, %arg3: memref<1x128xf32, #tpu.memory_space<vmem>>, %arg4: memref<1x128xf32, #tpu.memory_space<vmem>>, %arg5: memref<40x64xf32, #tpu.memory_space<vmem>>, %arg6: memref<40x64xf32, #tpu.memory_space<vmem>>, %arg7: memref<64x40xf32, #tpu.memory_space<vmem>>, %arg8: memref<64x40xf32, #tpu.memory_space<vmem>>, %arg9: memref<40x128xf32, #tpu.memory_space<vmem>>, %arg10: memref<40x128xf32, #tpu.memory_space<vmem>>, %arg11: memref<1x128xf32, #tpu.memory_space<vmem>>, %arg12: memref<1x128xf32, #tpu.memory_space<vmem>>, %arg13: memref<2x64x128xf32, #tpu.memory_space<vmem>>) attributes {dimension_semantics = [], scalar_prefetch = 0 : i64, scratch_operands = 0 : i64, tpu.core_type = #tpu.core_type<tc>} {
    %c0 = arith.constant 0 : index
    %c0_0 = arith.constant 0 : index
    %0 = vector.load %arg1[%c0, %c0_0] : memref<204x128xf32, #tpu.memory_space<vmem>>, vector<204x128xf32>
    %1 = arith.truncf %0 : vector<204x128xf32> to vector<204x128xbf16>
    %c0_1 = arith.constant 0 : index
    %c0_2 = arith.constant 0 : index
    %2 = vector.load %arg2[%c0_1, %c0_2] : memref<1x128xf32, #tpu.memory_space<vmem>>, vector<1x128xf32>
    %c0_3 = arith.constant 0 : index
    %c0_4 = arith.constant 0 : index
    %3 = vector.load %arg3[%c0_3, %c0_4] : memref<1x128xf32, #tpu.memory_space<vmem>>, vector<1x128xf32>
    %c0_5 = arith.constant 0 : index
    %c0_6 = arith.constant 0 : index
    %4 = vector.load %arg4[%c0_5, %c0_6] : memref<1x128xf32, #tpu.memory_space<vmem>>, vector<1x128xf32>
    %c0_7 = arith.constant 0 : index
    %c0_8 = arith.constant 0 : index
    %5 = vector.load %arg11[%c0_7, %c0_8] : memref<1x128xf32, #tpu.memory_space<vmem>>, vector<1x128xf32>
    %c0_9 = arith.constant 0 : index
    %c0_10 = arith.constant 0 : index
    %6 = vector.load %arg12[%c0_9, %c0_10] : memref<1x128xf32, #tpu.memory_space<vmem>>, vector<1x128xf32>
    %c0_11 = arith.constant 0 : index
    %c0_12 = arith.constant 0 : index
    %7 = vector.load %arg5[%c0_11, %c0_12] : memref<40x64xf32, #tpu.memory_space<vmem>>, vector<40x64xf32>
    %c0_13 = arith.constant 0 : index
    %c0_14 = arith.constant 0 : index
    %8 = vector.load %arg6[%c0_13, %c0_14] : memref<40x64xf32, #tpu.memory_space<vmem>>, vector<40x64xf32>
    %c0_15 = arith.constant 0 : index
    %c0_16 = arith.constant 0 : index
    %9 = vector.load %arg7[%c0_15, %c0_16] : memref<64x40xf32, #tpu.memory_space<vmem>>, vector<64x40xf32>
    %c0_17 = arith.constant 0 : index
    %c0_18 = arith.constant 0 : index
    %10 = vector.load %arg8[%c0_17, %c0_18] : memref<64x40xf32, #tpu.memory_space<vmem>>, vector<64x40xf32>
    %c0_19 = arith.constant 0 : index
    %c0_20 = arith.constant 0 : index
    %11 = vector.load %arg9[%c0_19, %c0_20] : memref<40x128xf32, #tpu.memory_space<vmem>>, vector<40x128xf32>
    %c0_21 = arith.constant 0 : index
    %c0_22 = arith.constant 0 : index
    %12 = vector.load %arg10[%c0_21, %c0_22] : memref<40x128xf32, #tpu.memory_space<vmem>>, vector<40x128xf32>
    %c0_23 = arith.constant 0 : index
    %c0_24 = arith.constant 0 : index
    %c0_25 = arith.constant 0 : index
    %13 = vector.load %arg0[%c0_23, %c0_24, %c0_25] : memref<2x64x204xf32, #tpu.memory_space<vmem>>, vector<1x64x204xf32>
    %14 = vector.shape_cast %13 : vector<1x64x204xf32> to vector<64x204xf32>
    %15 = arith.truncf %14 : vector<64x204xf32> to vector<64x204xbf16>
    %cst = arith.constant dense<0.000000e+00> : vector<64x128xf32>
    %16 = tpu.matmul %15, %1, %cst {dimension_numbers = #tpu.dot_dimension_numbers<[1], [0], [0], [1], [0, 0, 1, 1], [], []>} : vector<64x204xbf16>, vector<204x128xbf16>, vector<64x128xf32> -> vector<64x128xf32>
    %17 = vector.broadcast %2 : vector<1x128xf32> to vector<64x128xf32>
    %18 = arith.addf %16, %17 : vector<64x128xf32>
    %cst_26 = arith.constant dense<0.000000e+00> : vector<64xf32>
    %19 = vector.multi_reduction <add>, %18, %cst_26 [1] : vector<64x128xf32> to vector<64xf32>
    %20 = vector.shape_cast %19 : vector<64xf32> to vector<64x1xf32>
    %cst_27 = arith.constant 1.280000e+02 : f32
    %21 = vector.broadcast %cst_27 : f32 to vector<64x1xf32>
    %22 = arith.divf %20, %21 : vector<64x1xf32>
    %23 = vector.broadcast %22 : vector<64x1xf32> to vector<64x128xf32>
    %24 = arith.subf %18, %23 : vector<64x128xf32>
    %25 = arith.mulf %24, %24 : vector<64x128xf32>
    %cst_28 = arith.constant dense<0.000000e+00> : vector<64xf32>
    %26 = vector.multi_reduction <add>, %25, %cst_28 [1] : vector<64x128xf32> to vector<64xf32>
    %27 = vector.shape_cast %26 : vector<64xf32> to vector<64x1xf32>
    %cst_29 = arith.constant 1.280000e+02 : f32
    %28 = vector.broadcast %cst_29 : f32 to vector<64x1xf32>
    %29 = arith.divf %27, %28 : vector<64x1xf32>
    %30 = vector.broadcast %22 : vector<64x1xf32> to vector<64x128xf32>
    %31 = arith.subf %18, %30 : vector<64x128xf32>
    %cst_30 = arith.constant 9.99999974E-6 : f32
    %32 = vector.broadcast %cst_30 : f32 to vector<64x1xf32>
    %33 = arith.addf %29, %32 : vector<64x1xf32>
    %34 = math.rsqrt %33 : vector<64x1xf32>
    %35 = vector.broadcast %34 : vector<64x1xf32> to vector<64x128xf32>
    %36 = arith.mulf %31, %35 : vector<64x128xf32>
    %37 = vector.broadcast %3 : vector<1x128xf32> to vector<64x128xf32>
    %38 = arith.mulf %36, %37 : vector<64x128xf32>
    %39 = vector.broadcast %4 : vector<1x128xf32> to vector<64x128xf32>
    %40 = arith.addf %38, %39 : vector<64x128xf32>
    %cst_31 = arith.constant dense<0.000000e+00> : vector<40x128xf32>
    %41 = tpu.matmul %7, %40, %cst_31 {dimension_numbers = #tpu.dot_dimension_numbers<[1], [0], [0], [1], [0, 0, 1, 1], [], []>} : vector<40x64xf32>, vector<64x128xf32>, vector<40x128xf32> -> vector<40x128xf32>
    %cst_32 = arith.constant dense<0.000000e+00> : vector<40x128xf32>
    %42 = tpu.matmul %8, %40, %cst_32 {dimension_numbers = #tpu.dot_dimension_numbers<[1], [0], [0], [1], [0, 0, 1, 1], [], []>} : vector<40x64xf32>, vector<64x128xf32>, vector<40x128xf32> -> vector<40x128xf32>
    %cst_33 = arith.constant 0.000000e+00 : f32
    %43 = vector.broadcast %cst_33 : f32 to vector<40x128xf32>
    %44 = arith.subf %43, %42 : vector<40x128xf32>
    %45 = arith.mulf %41, %11 : vector<40x128xf32>
    %46 = arith.mulf %44, %12 : vector<40x128xf32>
    %47 = arith.subf %45, %46 : vector<40x128xf32>
    %48 = arith.mulf %41, %12 : vector<40x128xf32>
    %49 = arith.mulf %44, %11 : vector<40x128xf32>
    %50 = arith.addf %48, %49 : vector<40x128xf32>
    %cst_34 = arith.constant dense<0.000000e+00> : vector<64x128xf32>
    %51 = tpu.matmul %9, %47, %cst_34 {dimension_numbers = #tpu.dot_dimension_numbers<[1], [0], [0], [1], [0, 0, 1, 1], [], []>} : vector<64x40xf32>, vector<40x128xf32>, vector<64x128xf32> -> vector<64x128xf32>
    %cst_35 = arith.constant dense<0.000000e+00> : vector<64x128xf32>
    %52 = tpu.matmul %10, %50, %cst_35 {dimension_numbers = #tpu.dot_dimension_numbers<[1], [0], [0], [1], [0, 0, 1, 1], [], []>} : vector<64x40xf32>, vector<40x128xf32>, vector<64x128xf32> -> vector<64x128xf32>
    %53 = arith.subf %51, %52 : vector<64x128xf32>
    %54 = arith.addf %40, %53 : vector<64x128xf32>
    %cst_36 = arith.constant dense<0.000000e+00> : vector<64xf32>
    %55 = vector.multi_reduction <add>, %54, %cst_36 [1] : vector<64x128xf32> to vector<64xf32>
    %56 = vector.shape_cast %55 : vector<64xf32> to vector<64x1xf32>
    %cst_37 = arith.constant 1.280000e+02 : f32
    %57 = vector.broadcast %cst_37 : f32 to vector<64x1xf32>
    %58 = arith.divf %56, %57 : vector<64x1xf32>
    %59 = vector.broadcast %58 : vector<64x1xf32> to vector<64x128xf32>
    %60 = arith.subf %54, %59 : vector<64x128xf32>
    %61 = arith.mulf %60, %60 : vector<64x128xf32>
    %cst_38 = arith.constant dense<0.000000e+00> : vector<64xf32>
    %62 = vector.multi_reduction <add>, %61, %cst_38 [1] : vector<64x128xf32> to vector<64xf32>
    %63 = vector.shape_cast %62 : vector<64xf32> to vector<64x1xf32>
    %cst_39 = arith.constant 1.280000e+02 : f32
    %64 = vector.broadcast %cst_39 : f32 to vector<64x1xf32>
    %65 = arith.divf %63, %64 : vector<64x1xf32>
    %66 = vector.broadcast %58 : vector<64x1xf32> to vector<64x128xf32>
    %67 = arith.subf %54, %66 : vector<64x128xf32>
    %cst_40 = arith.constant 9.99999974E-6 : f32
    %68 = vector.broadcast %cst_40 : f32 to vector<64x1xf32>
    %69 = arith.addf %65, %68 : vector<64x1xf32>
    %70 = math.rsqrt %69 : vector<64x1xf32>
    %71 = vector.broadcast %70 : vector<64x1xf32> to vector<64x128xf32>
    %72 = arith.mulf %67, %71 : vector<64x128xf32>
    %73 = vector.broadcast %5 : vector<1x128xf32> to vector<64x128xf32>
    %74 = arith.mulf %72, %73 : vector<64x128xf32>
    %75 = vector.broadcast %6 : vector<1x128xf32> to vector<64x128xf32>
    %76 = arith.addf %74, %75 : vector<64x128xf32>
    %c0_41 = arith.constant 0 : index
    %c0_42 = arith.constant 0 : index
    %c0_43 = arith.constant 0 : index
    %77 = vector.load %arg13[%c0_41, %c0_42, %c0_43] : memref<2x64x128xf32, #tpu.memory_space<vmem>>, vector<1x64x128xf32>
    %78 = vector.shape_cast %77 : vector<1x64x128xf32> to vector<64x128xf32>
    %79 = vector.shape_cast %76 : vector<64x128xf32> to vector<1x64x128xf32>
    tpu.vector_store %arg13[%c0_41, %c0_42, %c0_43], %79 {strides = array<i32>} : memref<2x64x128xf32, #tpu.memory_space<vmem>>, vector<1x64x128xf32>,
    %c1 = arith.constant 1 : index
    %c0_44 = arith.constant 0 : index
    %c0_45 = arith.constant 0 : index
    %80 = vector.load %arg0[%c1, %c0_44, %c0_45] : memref<2x64x204xf32, #tpu.memory_space<vmem>>, vector<1x64x204xf32>
    %81 = vector.shape_cast %80 : vector<1x64x204xf32> to vector<64x204xf32>
    %82 = arith.truncf %81 : vector<64x204xf32> to vector<64x204xbf16>
    %cst_46 = arith.constant dense<0.000000e+00> : vector<64x128xf32>
    %83 = tpu.matmul %82, %1, %cst_46 {dimension_numbers = #tpu.dot_dimension_numbers<[1], [0], [0], [1], [0, 0, 1, 1], [], []>} : vector<64x204xbf16>, vector<204x128xbf16>, vector<64x128xf32> -> vector<64x128xf32>
    %84 = vector.broadcast %2 : vector<1x128xf32> to vector<64x128xf32>
    %85 = arith.addf %83, %84 : vector<64x128xf32>
    %cst_47 = arith.constant dense<0.000000e+00> : vector<64xf32>
    %86 = vector.multi_reduction <add>, %85, %cst_47 [1] : vector<64x128xf32> to vector<64xf32>
    %87 = vector.shape_cast %86 : vector<64xf32> to vector<64x1xf32>
    %cst_48 = arith.constant 1.280000e+02 : f32
    %88 = vector.broadcast %cst_48 : f32 to vector<64x1xf32>
    %89 = arith.divf %87, %88 : vector<64x1xf32>
    %90 = vector.broadcast %89 : vector<64x1xf32> to vector<64x128xf32>
    %91 = arith.subf %85, %90 : vector<64x128xf32>
    %92 = arith.mulf %91, %91 : vector<64x128xf32>
    %cst_49 = arith.constant dense<0.000000e+00> : vector<64xf32>
    %93 = vector.multi_reduction <add>, %92, %cst_49 [1] : vector<64x128xf32> to vector<64xf32>
    %94 = vector.shape_cast %93 : vector<64xf32> to vector<64x1xf32>
    %cst_50 = arith.constant 1.280000e+02 : f32
    %95 = vector.broadcast %cst_50 : f32 to vector<64x1xf32>
    %96 = arith.divf %94, %95 : vector<64x1xf32>
    %97 = vector.broadcast %89 : vector<64x1xf32> to vector<64x128xf32>
    %98 = arith.subf %85, %97 : vector<64x128xf32>
    %cst_51 = arith.constant 9.99999974E-6 : f32
    %99 = vector.broadcast %cst_51 : f32 to vector<64x1xf32>
    %100 = arith.addf %96, %99 : vector<64x1xf32>
    %101 = math.rsqrt %100 : vector<64x1xf32>
    %102 = vector.broadcast %101 : vector<64x1xf32> to vector<64x128xf32>
    %103 = arith.mulf %98, %102 : vector<64x128xf32>
    %104 = vector.broadcast %3 : vector<1x128xf32> to vector<64x128xf32>
    %105 = arith.mulf %103, %104 : vector<64x128xf32>
    %106 = vector.broadcast %4 : vector<1x128xf32> to vector<64x128xf32>
    %107 = arith.addf %105, %106 : vector<64x128xf32>
    %cst_52 = arith.constant dense<0.000000e+00> : vector<40x128xf32>
    %108 = tpu.matmul %7, %107, %cst_52 {dimension_numbers = #tpu.dot_dimension_numbers<[1], [0], [0], [1], [0, 0, 1, 1], [], []>} : vector<40x64xf32>, vector<64x128xf32>, vector<40x128xf32> -> vector<40x128xf32>
    %cst_53 = arith.constant dense<0.000000e+00> : vector<40x128xf32>
    %109 = tpu.matmul %8, %107, %cst_53 {dimension_numbers = #tpu.dot_dimension_numbers<[1], [0], [0], [1], [0, 0, 1, 1], [], []>} : vector<40x64xf32>, vector<64x128xf32>, vector<40x128xf32> -> vector<40x128xf32>
    %cst_54 = arith.constant 0.000000e+00 : f32
    %110 = vector.broadcast %cst_54 : f32 to vector<40x128xf32>
    %111 = arith.subf %110, %109 : vector<40x128xf32>
    %112 = arith.mulf %108, %11 : vector<40x128xf32>
    %113 = arith.mulf %111, %12 : vector<40x128xf32>
    %114 = arith.subf %112, %113 : vector<40x128xf32>
    %115 = arith.mulf %108, %12 : vector<40x128xf32>
    %116 = arith.mulf %111, %11 : vector<40x128xf32>
    %117 = arith.addf %115, %116 : vector<40x128xf32>
    %cst_55 = arith.constant dense<0.000000e+00> : vector<64x128xf32>
    %118 = tpu.matmul %9, %114, %cst_55 {dimension_numbers = #tpu.dot_dimension_numbers<[1], [0], [0], [1], [0, 0, 1, 1], [], []>} : vector<64x40xf32>, vector<40x128xf32>, vector<64x128xf32> -> vector<64x128xf32>
    %cst_56 = arith.constant dense<0.000000e+00> : vector<64x128xf32>
    %119 = tpu.matmul %10, %117, %cst_56 {dimension_numbers = #tpu.dot_dimension_numbers<[1], [0], [0], [1], [0, 0, 1, 1], [], []>} : vector<64x40xf32>, vector<40x128xf32>, vector<64x128xf32> -> vector<64x128xf32>
    %120 = arith.subf %118, %119 : vector<64x128xf32>
    %121 = arith.addf %107, %120 : vector<64x128xf32>
    %cst_57 = arith.constant dense<0.000000e+00> : vector<64xf32>
    %122 = vector.multi_reduction <add>, %121, %cst_57 [1] : vector<64x128xf32> to vector<64xf32>
    %123 = vector.shape_cast %122 : vector<64xf32> to vector<64x1xf32>
    %cst_58 = arith.constant 1.280000e+02 : f32
    %124 = vector.broadcast %cst_58 : f32 to vector<64x1xf32>
    %125 = arith.divf %123, %124 : vector<64x1xf32>
    %126 = vector.broadcast %125 : vector<64x1xf32> to vector<64x128xf32>
    %127 = arith.subf %121, %126 : vector<64x128xf32>
    %128 = arith.mulf %127, %127 : vector<64x128xf32>
    %cst_59 = arith.constant dense<0.000000e+00> : vector<64xf32>
    %129 = vector.multi_reduction <add>, %128, %cst_59 [1] : vector<64x128xf32> to vector<64xf32>
    %130 = vector.shape_cast %129 : vector<64xf32> to vector<64x1xf32>
    %cst_60 = arith.constant 1.280000e+02 : f32
    %131 = vector.broadcast %cst_60 : f32 to vector<64x1xf32>
    %132 = arith.divf %130, %131 : vector<64x1xf32>
    %133 = vector.broadcast %125 : vector<64x1xf32> to vector<64x128xf32>
    %134 = arith.subf %121, %133 : vector<64x128xf32>
    %cst_61 = arith.constant 9.99999974E-6 : f32
    %135 = vector.broadcast %cst_61 : f32 to vector<64x1xf32>
    %136 = arith.addf %132, %135 : vector<64x1xf32>
    %137 = math.rsqrt %136 : vector<64x1xf32>
    %138 = vector.broadcast %137 : vector<64x1xf32> to vector<64x128xf32>
    %139 = arith.mulf %134, %138 : vector<64x128xf32>
    %140 = vector.broadcast %5 : vector<1x128xf32> to vector<64x128xf32>
    %141 = arith.mulf %139, %140 : vector<64x128xf32>
    %142 = vector.broadcast %6 : vector<1x128xf32> to vector<64x128xf32>
    %143 = arith.addf %141, %142 : vector<64x128xf32>
    %c1_62 = arith.constant 1 : index
    %c0_63 = arith.constant 0 : index
    %c0_64 = arith.constant 0 : index
    %144 = vector.load %arg13[%c1_62, %c0_63, %c0_64] : memref<2x64x128xf32, #tpu.memory_space<vmem>>, vector<1x64x128xf32>
    %145 = vector.shape_cast %144 : vector<1x64x128xf32> to vector<64x128xf32>
    %146 = vector.shape_cast %143 : vector<64x128xf32> to vector<1x64x128xf32>
    tpu.vector_store %arg13[%c1_62, %c0_63, %c0_64], %146 {strides = array<i32>} : memref<2x64x128xf32, #tpu.memory_space<vmem>>, vector<1x64x128xf32>,
    return
  }
}

module attributes {stable_mosaic.version = 11 : i64} {
  func.func @_head_kernel(%arg0: memref<8x64x128xf32, #tpu.memory_space<vmem>>, %arg1: memref<8x4x128xf32, #tpu.memory_space<vmem>>, %arg2: memref<8x12xf32, #tpu.memory_space<vmem>>, %arg3: memref<8x3xf32, #tpu.memory_space<vmem>>, %arg4: memref<12x128xf32, #tpu.memory_space<vmem>>, %arg5: memref<1x128xf32, #tpu.memory_space<vmem>>, %arg6: memref<3x128xf32, #tpu.memory_space<vmem>>, %arg7: memref<1x128xf32, #tpu.memory_space<vmem>>, %arg8: memref<256x128xf32, #tpu.memory_space<vmem>>, %arg9: memref<128x512xf32, #tpu.memory_space<vmem>>, %arg10: memref<1x512xf32, #tpu.memory_space<vmem>>, %arg11: memref<1x512xf32, #tpu.memory_space<vmem>>, %arg12: memref<1x512xf32, #tpu.memory_space<vmem>>, %arg13: memref<512x128xf32, #tpu.memory_space<vmem>>, %arg14: memref<1x128xf32, #tpu.memory_space<vmem>>, %arg15: memref<1x128xf32, #tpu.memory_space<vmem>>, %arg16: memref<1x128xf32, #tpu.memory_space<vmem>>, %arg17: memref<128x128xf32, #tpu.memory_space<vmem>>, %arg18: memref<1x128xf32, #tpu.memory_space<vmem>>, %arg19: memref<8x128xf32, #tpu.memory_space<vmem>>, %arg20: memref<8x128xf32, #tpu.memory_space<vmem>>, %arg21: memref<8x128xf32, #tpu.memory_space<vmem>>, %arg22: memref<8x128xf32, #tpu.memory_space<vmem>>) attributes {dimension_semantics = [], scalar_prefetch = 0 : i64, scratch_operands = 0 : i64, tpu.core_type = #tpu.core_type<tc>} {
    %0 = tpu.iota {dimensions = array<i32: 0>} : vector<8x128xi32>
    %c2_i32 = arith.constant 2 : i32
    %1 = vector.broadcast %c2_i32 : i32 to vector<8x128xi32>
    %2 = arith.cmpi slt, %0, %1 : vector<8x128xi32>
    %3 = arith.extui %2 : vector<8x128xi1> to vector<8x128xi32>
    %4 = arith.sitofp %3 : vector<8x128xi32> to vector<8x128xf32>
    %c0 = arith.constant 0 : index
    %c0_0 = arith.constant 0 : index
    %5 = vector.load %arg2[%c0, %c0_0] : memref<8x12xf32, #tpu.memory_space<vmem>>, vector<8x12xf32>
    %c0_1 = arith.constant 0 : index
    %c0_2 = arith.constant 0 : index
    %6 = vector.load %arg4[%c0_1, %c0_2] : memref<12x128xf32, #tpu.memory_space<vmem>>, vector<12x128xf32>
    %cst = arith.constant dense<0.000000e+00> : vector<8x128xf32>
    %7 = tpu.matmul %5, %6, %cst {dimension_numbers = #tpu.dot_dimension_numbers<[1], [0], [0], [1], [0, 0, 1, 1], [], []>} : vector<8x12xf32>, vector<12x128xf32>, vector<8x128xf32> -> vector<8x128xf32>
    %c0_3 = arith.constant 0 : index
    %c0_4 = arith.constant 0 : index
    %8 = vector.load %arg5[%c0_3, %c0_4] : memref<1x128xf32, #tpu.memory_space<vmem>>, vector<1x128xf32>
    %9 = vector.broadcast %8 : vector<1x128xf32> to vector<8x128xf32>
    %10 = arith.addf %7, %9 : vector<8x128xf32>
    %c0_5 = arith.constant 0 : index
    %c0_6 = arith.constant 0 : index
    %11 = vector.load %arg3[%c0_5, %c0_6] : memref<8x3xf32, #tpu.memory_space<vmem>>, vector<8x3xf32>
    %c0_7 = arith.constant 0 : index
    %c0_8 = arith.constant 0 : index
    %12 = vector.load %arg6[%c0_7, %c0_8] : memref<3x128xf32, #tpu.memory_space<vmem>>, vector<3x128xf32>
    %cst_9 = arith.constant dense<0.000000e+00> : vector<8x128xf32>
    %13 = tpu.matmul %11, %12, %cst_9 {dimension_numbers = #tpu.dot_dimension_numbers<[1], [0], [0], [1], [0, 0, 1, 1], [], []>} : vector<8x3xf32>, vector<3x128xf32>, vector<8x128xf32> -> vector<8x128xf32>
    %c0_10 = arith.constant 0 : index
    %c0_11 = arith.constant 0 : index
    %14 = vector.load %arg7[%c0_10, %c0_11] : memref<1x128xf32, #tpu.memory_space<vmem>>, vector<1x128xf32>
    %15 = vector.broadcast %14 : vector<1x128xf32> to vector<8x128xf32>
    %16 = arith.addf %13, %15 : vector<8x128xf32>
    %c0_12 = arith.constant 0 : index
    %c0_13 = arith.constant 0 : index
    %c0_14 = arith.constant 0 : index
    %17 = vector.load %arg0[%c0_12, %c0_13, %c0_14] : memref<8x64x128xf32, #tpu.memory_space<vmem>>, vector<8x64x128xf32>
    %cst_15 = arith.constant dense<0xFF800000> : vector<8x128xf32>
    %18 = vector.multi_reduction <maximumf>, %17, %cst_15 [1] : vector<8x64x128xf32> to vector<8x128xf32>
    %cst_16 = arith.constant 0.000000e+00 : f32
    %19 = vector.broadcast %cst_16 : f32 to vector<8x128xf32>
    %20 = arith.maximumf %18, %19 : vector<8x128xf32>
    %cst_17 = arith.constant 0.000000e+00 : f32
    %21 = vector.broadcast %cst_17 : f32 to vector<8x128xf32>
    %22 = arith.maximumf %10, %21 : vector<8x128xf32>
    %23 = arith.addf %20, %22 : vector<8x128xf32>
    %24 = arith.mulf %23, %4 : vector<8x128xf32>
    %c0_18 = arith.constant 0 : index
    %c0_19 = arith.constant 0 : index
    %c0_20 = arith.constant 0 : index
    %25 = vector.load %arg1[%c0_18, %c0_19, %c0_20] : memref<8x4x128xf32, #tpu.memory_space<vmem>>, vector<8x4x128xf32>
    %cst_21 = arith.constant dense<0xFF800000> : vector<8x128xf32>
    %26 = vector.multi_reduction <maximumf>, %25, %cst_21 [1] : vector<8x4x128xf32> to vector<8x128xf32>
    %cst_22 = arith.constant 0.000000e+00 : f32
    %27 = vector.broadcast %cst_22 : f32 to vector<8x128xf32>
    %28 = arith.maximumf %26, %27 : vector<8x128xf32>
    %cst_23 = arith.constant 0.000000e+00 : f32
    %29 = vector.broadcast %cst_23 : f32 to vector<8x128xf32>
    %30 = arith.maximumf %16, %29 : vector<8x128xf32>
    %31 = arith.addf %28, %30 : vector<8x128xf32>
    %32 = arith.mulf %31, %4 : vector<8x128xf32>
    %c0_24 = arith.constant 0 : index
    %c0_25 = arith.constant 0 : index
    %33 = vector.load %arg19[%c0_24, %c0_25] : memref<8x128xf32, #tpu.memory_space<vmem>>, vector<8x128xf32>
    tpu.vector_store %arg19[%c0_24, %c0_25], %24 {strides = array<i32>} : memref<8x128xf32, #tpu.memory_space<vmem>>, vector<8x128xf32>,
    %c0_26 = arith.constant 0 : index
    %c0_27 = arith.constant 0 : index
    %34 = vector.load %arg20[%c0_26, %c0_27] : memref<8x128xf32, #tpu.memory_space<vmem>>, vector<8x128xf32>
    tpu.vector_store %arg20[%c0_26, %c0_27], %32 {strides = array<i32>} : memref<8x128xf32, #tpu.memory_space<vmem>>, vector<8x128xf32>,
    %35 = arith.addf %24, %32 : vector<8x128xf32>
    %cst_28 = arith.constant 5.000000e-01 : f32
    %36 = vector.broadcast %cst_28 : f32 to vector<8x128xf32>
    %37 = arith.mulf %36, %35 : vector<8x128xf32>
    %cst_29 = arith.constant dense<0xFF800000> : vector<8xf32>
    %38 = vector.multi_reduction <maximumf>, %37, %cst_29 [1] : vector<8x128xf32> to vector<8xf32>
    %39 = vector.shape_cast %38 : vector<8xf32> to vector<8x1xf32>
    %40 = vector.broadcast %39 : vector<8x1xf32> to vector<8x128xf32>
    %41 = arith.subf %37, %40 : vector<8x128xf32>
    %42 = math.exp %41 : vector<8x128xf32>
    %cst_30 = arith.constant dense<0.000000e+00> : vector<8xf32>
    %43 = vector.multi_reduction <add>, %42, %cst_30 [1] : vector<8x128xf32> to vector<8xf32>
    %44 = vector.shape_cast %43 : vector<8xf32> to vector<8x1xf32>
    %45 = math.log %44 : vector<8x1xf32>
    %46 = vector.broadcast %45 : vector<8x1xf32> to vector<8x128xf32>
    %47 = arith.subf %41, %46 : vector<8x128xf32>
    %cst_31 = arith.constant dense<0xFF800000> : vector<8xf32>
    %48 = vector.multi_reduction <maximumf>, %24, %cst_31 [1] : vector<8x128xf32> to vector<8xf32>
    %49 = vector.shape_cast %48 : vector<8xf32> to vector<8x1xf32>
    %50 = vector.broadcast %49 : vector<8x1xf32> to vector<8x128xf32>
    %51 = arith.subf %24, %50 : vector<8x128xf32>
    %52 = math.exp %51 : vector<8x128xf32>
    %cst_32 = arith.constant dense<0.000000e+00> : vector<8xf32>
    %53 = vector.multi_reduction <add>, %52, %cst_32 [1] : vector<8x128xf32> to vector<8xf32>
    %54 = vector.shape_cast %53 : vector<8xf32> to vector<8x1xf32>
    %55 = math.log %54 : vector<8x1xf32>
    %56 = vector.broadcast %55 : vector<8x1xf32> to vector<8x128xf32>
    %57 = arith.subf %51, %56 : vector<8x128xf32>
    %cst_33 = arith.constant dense<0xFF800000> : vector<8xf32>
    %58 = vector.multi_reduction <maximumf>, %32, %cst_33 [1] : vector<8x128xf32> to vector<8xf32>
    %59 = vector.shape_cast %58 : vector<8xf32> to vector<8x1xf32>
    %60 = vector.broadcast %59 : vector<8x1xf32> to vector<8x128xf32>
    %61 = arith.subf %32, %60 : vector<8x128xf32>
    %62 = math.exp %61 : vector<8x128xf32>
    %cst_34 = arith.constant dense<0.000000e+00> : vector<8xf32>
    %63 = vector.multi_reduction <add>, %62, %cst_34 [1] : vector<8x128xf32> to vector<8xf32>
    %64 = vector.shape_cast %63 : vector<8xf32> to vector<8x1xf32>
    %65 = math.log %64 : vector<8x1xf32>
    %66 = vector.broadcast %65 : vector<8x1xf32> to vector<8x128xf32>
    %67 = arith.subf %61, %66 : vector<8x128xf32>
    %68 = math.exp %57 : vector<8x128xf32>
    %69 = arith.subf %57, %47 : vector<8x128xf32>
    %70 = arith.mulf %68, %69 : vector<8x128xf32>
    %71 = vector.shape_cast %70 : vector<8x128xf32> to vector<1x8x128xf32>
    %cst_35 = arith.constant dense<0.000000e+00> : vector<1xf32>
    %72 = vector.multi_reduction <add>, %71, %cst_35 [1, 2] : vector<1x8x128xf32> to vector<1xf32>
    %73 = vector.shape_cast %72 : vector<1xf32> to vector<1x1x1xf32>
    %74 = vector.extract %73[0, 0, 0] : f32 from vector<1x1x1xf32>
    %cst_36 = arith.constant 2.000000e+00 : f32
    %75 = arith.divf %74, %cst_36 : f32
    %76 = math.exp %67 : vector<8x128xf32>
    %77 = arith.subf %67, %47 : vector<8x128xf32>
    %78 = arith.mulf %76, %77 : vector<8x128xf32>
    %79 = vector.shape_cast %78 : vector<8x128xf32> to vector<1x8x128xf32>
    %cst_37 = arith.constant dense<0.000000e+00> : vector<1xf32>
    %80 = vector.multi_reduction <add>, %79, %cst_37 [1, 2] : vector<1x8x128xf32> to vector<1xf32>
    %81 = vector.shape_cast %80 : vector<1xf32> to vector<1x1x1xf32>
    %82 = vector.extract %81[0, 0, 0] : f32 from vector<1x1x1xf32>
    %cst_38 = arith.constant 2.000000e+00 : f32
    %83 = arith.divf %82, %cst_38 : f32
    %cst_39 = arith.constant 5.000000e-01 : f32
    %84 = arith.mulf %cst_39, %75 : f32
    %cst_40 = arith.constant 5.000000e-01 : f32
    %85 = arith.mulf %cst_40, %83 : f32
    %86 = arith.addf %84, %85 : f32
    %87 = tpu.concatenate %24, %32 in 1 : vector<8x128xf32>, vector<8x128xf32> -> vector<8x256xf32>
    %c0_41 = arith.constant 0 : index
    %c0_42 = arith.constant 0 : index
    %88 = vector.load %arg8[%c0_41, %c0_42] : memref<256x128xf32, #tpu.memory_space<vmem>>, vector<256x128xf32>
    %89 = arith.truncf %87 : vector<8x256xf32> to vector<8x256xbf16>
    %90 = arith.truncf %88 : vector<256x128xf32> to vector<256x128xbf16>
    %cst_43 = arith.constant dense<0.000000e+00> : vector<8x128xf32>
    %91 = tpu.matmul %89, %90, %cst_43 {dimension_numbers = #tpu.dot_dimension_numbers<[1], [0], [0], [1], [0, 0, 1, 1], [], []>} : vector<8x256xbf16>, vector<256x128xbf16>, vector<8x128xf32> -> vector<8x128xf32>
    %cst_44 = arith.constant 1.000000e+00 : f32
    %92 = arith.subf %cst_44, %86 : f32
    %93 = vector.broadcast %92 : f32 to vector<8x128xf32>
    %94 = arith.mulf %93, %91 : vector<8x128xf32>
    %95 = vector.broadcast %86 : f32 to vector<8x128xf32>
    %96 = arith.mulf %95, %24 : vector<8x128xf32>
    %97 = arith.addf %94, %96 : vector<8x128xf32>
    %98 = vector.broadcast %86 : f32 to vector<8x128xf32>
    %99 = arith.mulf %98, %32 : vector<8x128xf32>
    %100 = arith.addf %97, %99 : vector<8x128xf32>
    %c0_45 = arith.constant 0 : index
    %c0_46 = arith.constant 0 : index
    %101 = vector.load %arg21[%c0_45, %c0_46] : memref<8x128xf32, #tpu.memory_space<vmem>>, vector<8x128xf32>
    tpu.vector_store %arg21[%c0_45, %c0_46], %100 {strides = array<i32>} : memref<8x128xf32, #tpu.memory_space<vmem>>, vector<8x128xf32>,
    %c0_47 = arith.constant 0 : index
    %c0_48 = arith.constant 0 : index
    %102 = vector.load %arg9[%c0_47, %c0_48] : memref<128x512xf32, #tpu.memory_space<vmem>>, vector<128x512xf32>
    %103 = arith.truncf %100 : vector<8x128xf32> to vector<8x128xbf16>
    %104 = arith.truncf %102 : vector<128x512xf32> to vector<128x512xbf16>
    %cst_49 = arith.constant dense<0.000000e+00> : vector<8x512xf32>
    %105 = tpu.matmul %103, %104, %cst_49 {dimension_numbers = #tpu.dot_dimension_numbers<[1], [0], [0], [1], [0, 0, 1, 1], [], []>} : vector<8x128xbf16>, vector<128x512xbf16>, vector<8x512xf32> -> vector<8x512xf32>
    %c0_50 = arith.constant 0 : index
    %c0_51 = arith.constant 0 : index
    %106 = vector.load %arg10[%c0_50, %c0_51] : memref<1x512xf32, #tpu.memory_space<vmem>>, vector<1x512xf32>
    %107 = vector.broadcast %106 : vector<1x512xf32> to vector<8x512xf32>
    %108 = arith.addf %105, %107 : vector<8x512xf32>
    %c0_52 = arith.constant 0 : index
    %c0_53 = arith.constant 0 : index
    %109 = vector.load %arg11[%c0_52, %c0_53] : memref<1x512xf32, #tpu.memory_space<vmem>>, vector<1x512xf32>
    %c0_54 = arith.constant 0 : index
    %c0_55 = arith.constant 0 : index
    %110 = vector.load %arg12[%c0_54, %c0_55] : memref<1x512xf32, #tpu.memory_space<vmem>>, vector<1x512xf32>
    %cst_56 = arith.constant dense<0.000000e+00> : vector<8xf32>
    %111 = vector.multi_reduction <add>, %108, %cst_56 [1] : vector<8x512xf32> to vector<8xf32>
    %112 = vector.shape_cast %111 : vector<8xf32> to vector<8x1xf32>
    %cst_57 = arith.constant 5.120000e+02 : f32
    %113 = vector.broadcast %cst_57 : f32 to vector<8x1xf32>
    %114 = arith.divf %112, %113 : vector<8x1xf32>
    %115 = vector.broadcast %114 : vector<8x1xf32> to vector<8x512xf32>
    %116 = arith.subf %108, %115 : vector<8x512xf32>
    %117 = arith.mulf %116, %116 : vector<8x512xf32>
    %cst_58 = arith.constant dense<0.000000e+00> : vector<8xf32>
    %118 = vector.multi_reduction <add>, %117, %cst_58 [1] : vector<8x512xf32> to vector<8xf32>
    %119 = vector.shape_cast %118 : vector<8xf32> to vector<8x1xf32>
    %cst_59 = arith.constant 5.120000e+02 : f32
    %120 = vector.broadcast %cst_59 : f32 to vector<8x1xf32>
    %121 = arith.divf %119, %120 : vector<8x1xf32>
    %122 = vector.broadcast %114 : vector<8x1xf32> to vector<8x512xf32>
    %123 = arith.subf %108, %122 : vector<8x512xf32>
    %cst_60 = arith.constant 9.99999974E-6 : f32
    %124 = vector.broadcast %cst_60 : f32 to vector<8x1xf32>
    %125 = arith.addf %121, %124 : vector<8x1xf32>
    %126 = math.rsqrt %125 : vector<8x1xf32>
    %127 = vector.broadcast %126 : vector<8x1xf32> to vector<8x512xf32>
    %128 = arith.mulf %123, %127 : vector<8x512xf32>
    %129 = vector.broadcast %109 : vector<1x512xf32> to vector<8x512xf32>
    %130 = arith.mulf %128, %129 : vector<8x512xf32>
    %131 = vector.broadcast %110 : vector<1x512xf32> to vector<8x512xf32>
    %132 = arith.addf %130, %131 : vector<8x512xf32>
    %cst_61 = arith.constant 0.000000e+00 : f32
    %133 = vector.broadcast %cst_61 : f32 to vector<8x512xf32>
    %134 = arith.maximumf %132, %133 : vector<8x512xf32>
    %c0_62 = arith.constant 0 : index
    %c0_63 = arith.constant 0 : index
    %135 = vector.load %arg13[%c0_62, %c0_63] : memref<512x128xf32, #tpu.memory_space<vmem>>, vector<512x128xf32>
    %136 = arith.truncf %134 : vector<8x512xf32> to vector<8x512xbf16>
    %137 = arith.truncf %135 : vector<512x128xf32> to vector<512x128xbf16>
    %cst_64 = arith.constant dense<0.000000e+00> : vector<8x128xf32>
    %138 = tpu.matmul %136, %137, %cst_64 {dimension_numbers = #tpu.dot_dimension_numbers<[1], [0], [0], [1], [0, 0, 1, 1], [], []>} : vector<8x512xbf16>, vector<512x128xbf16>, vector<8x128xf32> -> vector<8x128xf32>
    %c0_65 = arith.constant 0 : index
    %c0_66 = arith.constant 0 : index
    %139 = vector.load %arg14[%c0_65, %c0_66] : memref<1x128xf32, #tpu.memory_space<vmem>>, vector<1x128xf32>
    %140 = vector.broadcast %139 : vector<1x128xf32> to vector<8x128xf32>
    %141 = arith.addf %138, %140 : vector<8x128xf32>
    %c0_67 = arith.constant 0 : index
    %c0_68 = arith.constant 0 : index
    %142 = vector.load %arg15[%c0_67, %c0_68] : memref<1x128xf32, #tpu.memory_space<vmem>>, vector<1x128xf32>
    %c0_69 = arith.constant 0 : index
    %c0_70 = arith.constant 0 : index
    %143 = vector.load %arg16[%c0_69, %c0_70] : memref<1x128xf32, #tpu.memory_space<vmem>>, vector<1x128xf32>
    %cst_71 = arith.constant dense<0.000000e+00> : vector<8xf32>
    %144 = vector.multi_reduction <add>, %141, %cst_71 [1] : vector<8x128xf32> to vector<8xf32>
    %145 = vector.shape_cast %144 : vector<8xf32> to vector<8x1xf32>
    %cst_72 = arith.constant 1.280000e+02 : f32
    %146 = vector.broadcast %cst_72 : f32 to vector<8x1xf32>
    %147 = arith.divf %145, %146 : vector<8x1xf32>
    %148 = vector.broadcast %147 : vector<8x1xf32> to vector<8x128xf32>
    %149 = arith.subf %141, %148 : vector<8x128xf32>
    %150 = arith.mulf %149, %149 : vector<8x128xf32>
    %cst_73 = arith.constant dense<0.000000e+00> : vector<8xf32>
    %151 = vector.multi_reduction <add>, %150, %cst_73 [1] : vector<8x128xf32> to vector<8xf32>
    %152 = vector.shape_cast %151 : vector<8xf32> to vector<8x1xf32>
    %cst_74 = arith.constant 1.280000e+02 : f32
    %153 = vector.broadcast %cst_74 : f32 to vector<8x1xf32>
    %154 = arith.divf %152, %153 : vector<8x1xf32>
    %155 = vector.broadcast %147 : vector<8x1xf32> to vector<8x128xf32>
    %156 = arith.subf %141, %155 : vector<8x128xf32>
    %cst_75 = arith.constant 9.99999974E-6 : f32
    %157 = vector.broadcast %cst_75 : f32 to vector<8x1xf32>
    %158 = arith.addf %154, %157 : vector<8x1xf32>
    %159 = math.rsqrt %158 : vector<8x1xf32>
    %160 = vector.broadcast %159 : vector<8x1xf32> to vector<8x128xf32>
    %161 = arith.mulf %156, %160 : vector<8x128xf32>
    %162 = vector.broadcast %142 : vector<1x128xf32> to vector<8x128xf32>
    %163 = arith.mulf %161, %162 : vector<8x128xf32>
    %164 = vector.broadcast %143 : vector<1x128xf32> to vector<8x128xf32>
    %165 = arith.addf %163, %164 : vector<8x128xf32>
    %cst_76 = arith.constant 0.000000e+00 : f32
    %166 = vector.broadcast %cst_76 : f32 to vector<8x128xf32>
    %167 = arith.maximumf %165, %166 : vector<8x128xf32>
    %c0_77 = arith.constant 0 : index
    %c0_78 = arith.constant 0 : index
    %168 = vector.load %arg17[%c0_77, %c0_78] : memref<128x128xf32, #tpu.memory_space<vmem>>, vector<128x128xf32>
    %169 = arith.truncf %167 : vector<8x128xf32> to vector<8x128xbf16>
    %170 = arith.truncf %168 : vector<128x128xf32> to vector<128x128xbf16>
    %cst_79 = arith.constant dense<0.000000e+00> : vector<8x128xf32>
    %171 = tpu.matmul %169, %170, %cst_79 {dimension_numbers = #tpu.dot_dimension_numbers<[1], [0], [0], [1], [0, 0, 1, 1], [], []>} : vector<8x128xbf16>, vector<128x128xbf16>, vector<8x128xf32> -> vector<8x128xf32>
    %c0_80 = arith.constant 0 : index
    %c0_81 = arith.constant 0 : index
    %172 = vector.load %arg18[%c0_80, %c0_81] : memref<1x128xf32, #tpu.memory_space<vmem>>, vector<1x128xf32>
    %173 = vector.broadcast %172 : vector<1x128xf32> to vector<8x128xf32>
    %174 = arith.addf %171, %173 : vector<8x128xf32>
    %c0_82 = arith.constant 0 : index
    %c0_83 = arith.constant 0 : index
    %175 = vector.load %arg22[%c0_82, %c0_83] : memref<8x128xf32, #tpu.memory_space<vmem>>, vector<8x128xf32>
    tpu.vector_store %arg22[%c0_82, %c0_83], %174 {strides = array<i32>} : memref<8x128xf32, #tpu.memory_space<vmem>>, vector<8x128xf32>,
    return
  }
}

</mosaic_0001>

<bundles_post_ra>
// kernel: fsru_forward.3
= control target key start
LH: loop header
LB: loop body
LE: loop exit
PB: predicated region body
PF: predicated region fallthrough
CT: control target
= control target key end

     0   :  { %v2322_v0 = vmov 0   ;;  %vm155_vm0 = vcmask 621568   ;;  %vm168_vm1 = vcmask 1045504   ;;  %vm2324_vm2 = vmmov 0   ;;  %s3509_s1 = inlined_call_operand.vmem [shape: f32[204,128], index: 1, kind: input, shape index: {}]   ;;  %s3510_s0 = inlined_call_operand.vmem [shape: f32[2,64,204], index: 0, kind: input, shape index: {}]   ;;  %s3511_s2 = inlined_call_operand.vmem [shape: f32[1,128], index: 2, kind: input, shape index: {}, may-alias: {2,4,12}]   ;;  %s3512_s3 = inlined_call_operand.vmem [shape: f32[1,128], index: 3, kind: input, shape index: {}, may-alias: {3,11}]   ;;  %s3513_s4 = inlined_call_operand.vmem [shape: f32[1,128], index: 4, kind: input, shape index: {}, may-alias: {2,4,12}]   ;;  %s3514_s5 = inlined_call_operand.vmem [shape: f32[40,64], index: 5, kind: input, shape index: {}]   ;;  %s3515_s6 = inlined_call_operand.vmem [shape: f32[40,64], index: 6, kind: input, shape index: {}]   ;;  %s3516_s7 = inlined_call_operand.vmem [shape: f32[64,40], index: 7, kind: input, shape index: {}]   ;;  %s3517_s8 = inlined_call_operand.vmem [shape: f32[64,40], index: 8, kind: input, shape index: {}]   ;;  %s3518_s9 = inlined_call_operand.vmem [shape: f32[40,128], index: 9, kind: input, shape index: {}]   ;;  %s3519_s10 = inlined_call_operand.vmem [shape: f32[40,128], index: 10, kind: input, shape index: {}]   ;;  %s3520_s11 = inlined_call_operand.vmem [shape: f32[1,128], index: 11, kind: input, shape index: {}, may-alias: {3,11}]   ;;  %s3521_s12 = inlined_call_operand.vmem [shape: f32[1,128], index: 12, kind: input, shape index: {}, may-alias: {2,4,12}]   ;;  %s3522_s13 = inlined_call_operand.vmem [shape: f32[2,64,128], index: 13, kind: output, shape index: {}]  }
   0x1   :  { %172 = vmatprep.subr.bf16.mxu0 %v2322_v0  ;;  %v45_v1 = vld [vmem:[%s3509_s1] sm:$0xff]  ;;  %v46_v2 = vld [vmem:[%s3509_s1 + $0x8] sm:$0xff]  ;;  %v47_v3 = vld [vmem:[%s3509_s1 + $0x10] sm:$0xff]  ;;  %vm354_vm3 = vcmask 523264   ;;  %vm600_vm4 = vcmask 326656  }
   0x2   :  { %v2406_v4 = vpack.c.bf16 %v46_v2, %v45_v1  ;;  %v48_v5 = vld [vmem:[%s3509_s1 + $0x18] sm:$0xff]  ;;  %v49_v7 = vld [vmem:[%s3509_s1 + $0x20] sm:$0xff]  ;;  %v50_v8 = vld [vmem:[%s3509_s1 + $0x28] sm:$0xff] }
   0x3   :  { %v2412_v6 = vpack.c.bf16 %v48_v5, %v47_v3  ;;  %v2422_v9 = vpack.c.bf16 %v50_v8, %v49_v7  ;;  %v51_v10 = vld [vmem:[%s3509_s1 + $0x30] sm:$0xff]  ;;  %v52_v11 = vld [vmem:[%s3509_s1 + $0x38] sm:$0xff]  ;;  %v126_v12 = vld [vmem:[%s3510_s0 + $0x8] sm:$0xff] }
   0x4   :  { %173 = vmatpush1.bf16.msra.mxu0 %v2406_v4  ;;  %v128_v13 = vld [vmem:[%s3510_s0 + $0x18] sm:$0xff]  ;;  %v2438_v15 = vpack.c.bf16 %v52_v11, %v51_v10  ;;  %v53_v16 = vld [vmem:[%s3509_s1 + $0x40] sm:$0xff]  ;;  %v54_v17 = vld [vmem:[%s3509_s1 + $0x48] sm:$0xff] }
   0x5   :  { %174 = vmatprep.subr.bf16.mxu0 %v2322_v0  ;;  %v142_v14 = vpack.c.bf16 %v128_v13, %v126_v12  ;;  %v2449_v18 = vpack.c.bf16 %v54_v17, %v53_v16  ;;  %v55_v19 = vld [vmem:[%s3509_s1 + $0x50] sm:$0xff]  ;;  %v56_v20 = vld [vmem:[%s3509_s1 + $0x58] sm:$0xff]  ;;  %v57_v22 = vld [vmem:[%s3509_s1 + $0x60] sm:$0xff] }
   0x6   :  { %v2459_v21 = vpack.c.bf16 %v56_v20, %v55_v19  ;;  %v58_v23 = vld [vmem:[%s3509_s1 + $0x68] sm:$0xff]  ;;  %v59_v25 = vld [vmem:[%s3509_s1 + $0x70] sm:$0xff]  ;;  %v60_v26 = vld [vmem:[%s3509_s1 + $0x78] sm:$0xff] }
   0x7   :  { %1764 = vmatprep.mubr.msk.bf16.mxu0 %vm155_vm0, %v142_v14  ;;  %v2469_v24 = vpack.c.bf16 %v58_v23, %v57_v22  ;;  %v2479_v27 = vpack.c.bf16 %v60_v26, %v59_v25  ;;  %v61_v28 = vld [vmem:[%s3509_s1 + $0x80] sm:$0xff]  ;;  %v62_v29 = vld [vmem:[%s3509_s1 + $0x88] sm:$0xff]  ;;  %v63_v31 = vld [vmem:[%s3509_s1 + $0x90] sm:$0xff] }
   0x8   :  { %175 = vmatpush1.bf16.msra.mxu0 %v2412_v6  ;;  %v2489_v30 = vpack.c.bf16 %v62_v29, %v61_v28  ;;  %v64_v32 = vld [vmem:[%s3509_s1 + $0x98] sm:$0xff]  ;;  %v65_v34 = vld [vmem:[%s3509_s1 + $0xa0] sm:$0xff]  ;;  %v66_v35 = vld [vmem:[%s3509_s1 + $0xa8] sm:$0xff] }
   0x9   :  { %176 = vmatprep.subr.bf16.mxu0 %v2322_v0  ;;  %v2499_v33 = vpack.c.bf16 %v64_v32, %v63_v31  ;;  %v2509_v36 = vpack.c.bf16 %v66_v35, %v65_v34  ;;  %v67_v37 = vld [vmem:[%s3509_s1 + $0xb0] sm:$0xff]  ;;  %v68_v38 = vld [vmem:[%s3509_s1 + $0xb8] sm:$0xff]  ;;  %v69_v39 = vld [vmem:[%s3509_s1 + $0xc0] sm:$0xff] }
   0xa   :  { %v70_v40 = vld [vmem:[%s3509_s1 + $0xc8] sm:$0xf]  ;;  %v82_v41 = vpack.c.bf16 %v68_v38, %v67_v37  ;;  %v125_v43 = vld [vmem:[%s3510_s0] sm:$0xff]  ;;  %v127_v44 = vld [vmem:[%s3510_s0 + $0x10] sm:$0xff] }
   0xb   :  { %v83_v42 = vpack.c.bf16 %v70_v40, %v69_v39  ;;  %v130_v46 = vld [vmem:[%s3510_s0 + $0x28] sm:$0xff]  ;;  %v132_v47 = vld [vmem:[%s3510_s0 + $0x38] sm:$0xff]  ;;  %v141_v48 = vpack.c.bf16 %v127_v44, %v125_v43  ;;  %v129_v50 = vld [vmem:[%s3510_s0 + $0x20] sm:$0xff] }
   0xc   :  { %177 = vmatpush1.bf16.msra.mxu0 %v2422_v9  ;;  %v144_v49 = vpack.c.bf16 %v132_v47, %v130_v46  ;;  %v131_v51 = vld [vmem:[%s3510_s0 + $0x30] sm:$0xff]  ;;  %v134_v52 = vld [vmem:[%s3510_s0 + $0x48] sm:$0xff]  ;;  %v136_v53 = vld [vmem:[%s3510_s0 + $0x58] sm:$0xff] }
   0xd   :  { %178 = vmatprep.subr.bf16.mxu0 %v2322_v0  ;;  %v170_v45 = vsel %vm168_vm1, %v83_v42, 0  ;;  %v143_v54 = vpack.c.bf16 %v131_v51, %v129_v50  ;;  %v146_v55 = vpack.c.bf16 %v136_v53, %v134_v52  ;;  %v133_v56 = vld [vmem:[%s3510_s0 + $0x40] sm:$0xff]  ;;  %v135_v57 = vld [vmem:[%s3510_s0 + $0x50] sm:$0xff]  ;;  %v138_v58 = vld [vmem:[%s3510_s0 + $0x68] sm:$0xff] }
   0xe   :  { %v140_v59 = vld [vmem:[%s3510_s0 + $0x78] sm:$0xff]  ;;  %v145_v60 = vpack.c.bf16 %v135_v57, %v133_v56  ;;  %v137_v62 = vld [vmem:[%s3510_s0 + $0x60] sm:$0xff]  ;;  %v139_v63 = vld [vmem:[%s3510_s0 + $0x70] sm:$0xff] }
   0xf   :  { %v148_v61 = vpack.c.bf16 %v140_v59, %v138_v58  ;;  %v1799_v1 = vld [vmem:[%s3510_s0 + $0x88] sm:$0xff]  ;;  %v1801_v2 = vld [vmem:[%s3510_s0 + $0x98] sm:$0xff]  ;;  %v147_v3 = vpack.c.bf16 %v139_v63, %v137_v62  ;;  %v1798_v5 = vld [vmem:[%s3510_s0 + $0x80] sm:$0xff] }
  0x10   :  { %179 = vmatpush1.bf16.msra.mxu0 %v2438_v15  ;;  %v1803_v7 = vld [vmem:[%s3510_s0 + $0xa8] sm:$0xff]  ;;  %v1805_v8 = vld [vmem:[%s3510_s0 + $0xb8] sm:$0xff]  ;;  %v1802_v11 = vld [vmem:[%s3510_s0 + $0xa0] sm:$0xff] }
  0x11   :  { %180 = vmatprep.subr.bf16.mxu0 %v2322_v0  ;;  %v1019_v10 = vpack.c.bf16 %v1805_v8, %v1803_v7  ;;  %v1807_v12 = vld [vmem:[%s3510_s0 + $0xc8] sm:$0xff]  ;;  %v1809_v13 = vld [vmem:[%s3510_s0 + $0xd8] sm:$0xff]  ;;  %v1806_v16 = vld [vmem:[%s3510_s0 + $0xc0] sm:$0xff] }
  0x12   :  { %v1808_v17 = vld [vmem:[%s3510_s0 + $0xd0] sm:$0xff]  ;;  %v1813_v19 = vld [vmem:[%s3510_s0 + $0xf8] sm:$0xff]  ;;  %v1810_v22 = vld [vmem:[%s3510_s0 + $0xe0] sm:$0xff] }
  0x13   :  { %v1020_v20 = vpack.c.bf16 %v1808_v17, %v1806_v16  ;;  %v1812_v23 = vld [vmem:[%s3510_s0 + $0xf0] sm:$0xff]  ;;  %v2651_v25 = vld [vmem:[%s3511_s2] ss:$0 sm:$0xff] }
  0x14   :  { %181 = vmatpush1.bf16.msra.mxu0 %v2449_v18 }
  0x15   :  { %182 = vmatprep.subr.bf16.mxu0 %v2322_v0 }
  0x18   :  { %183 = vmatpush1.bf16.msra.mxu0 %v2459_v21 }
  0x19   :  { %184 = vmatprep.subr.bf16.mxu0 %v2322_v0 }
  0x1c   :  { %185 = vmatpush1.bf16.msra.mxu0 %v2469_v24 }
  0x1d   :  { %186 = vmatprep.subr.bf16.mxu0 %v2322_v0 }
  0x20   :  { %187 = vmatpush1.bf16.msra.mxu0 %v2479_v27 }
  0x21   :  { %188 = vmatprep.subr.bf16.mxu0 %v2322_v0 }
  0x24   :  { %189 = vmatpush1.bf16.msra.mxu0 %v2489_v30 }
  0x25   :  { %190 = vmatprep.subr.bf16.mxu0 %v2322_v0 }
  0x28   :  { %191 = vmatpush1.bf16.msra.mxu0 %v2499_v33 }
  0x29   :  { %192 = vmatprep.subr.bf16.mxu0 %v2322_v0 }
  0x2c   :  { %193 = vmatpush1.bf16.msra.mxu0 %v2509_v36 }
  0x2d   :  { %194 = vmatprep.subr.bf16.mxu0 %v2322_v0 }
  0x30   :  { %195 = vmatpush1.bf16.msra.mxu0 %v82_v41 }
  0x31   :  { %196 = vmatprep.subr.bf16.mxu0 %v2322_v0 }
  0x34   :  { %197 = vmatpush1.bf16.msra.mxu0 %v170_v45 }
  0x35   :  { %1036 = vmatprep.subr.bf16.mxu0 %v2322_v0 }
  0x37   :  { %205 = vmatmul.mubr.bf16.vlgmr.msra.gmra.mrb[0].mxu0 %v141_v48 }
  0x38   :  { %1765 = vmatprep.mubr.msk.bf16.mxu0 %vm155_vm0, %v144_v49  ;;  %1037 = vmatpush1.bf16.msra.mxu0 %v2406_v4  ;;  %v1017_v4 = vpack.c.bf16 %v1801_v2, %v1799_v1 }
  0x39   :  { %1038 = vmatprep.subr.bf16.mxu0 %v2322_v0 }
  0x3c   :  { %1039 = vmatpush1.bf16.msra.mxu0 %v2412_v6  ;;  %v1800_v6 = vld [vmem:[%s3510_s0 + $0x90] sm:$0xff] }
  0x3d   :  { %1040 = vmatprep.subr.bf16.mxu0 %v2322_v0 }
  0x3f   :  { %213 = vmatmul.mubr.bf16.gmra.mrb[4].mxu0 %v143_v54 }
  0x40   :  { %1766 = vmatprep.mubr.msk.bf16.mxu0 %vm155_vm0, %v146_v55  ;;  %1041 = vmatpush1.bf16.msra.mxu0 %v2422_v9  ;;  %v1016_v9 = vpack.c.bf16 %v1800_v6, %v1798_v5 }
  0x41   :  { %1042 = vmatprep.subr.bf16.mxu0 %v2322_v0 }
  0x44   :  { %1043 = vmatpush1.bf16.msra.mxu0 %v2438_v15  ;;  %v1021_v15 = vpack.c.bf16 %v1809_v13, %v1807_v12 }
  0x45   :  { %1044 = vmatprep.subr.bf16.mxu0 %v2322_v0 }
  0x47   :  { %221 = vmatmul.mubr.bf16.gmra.mrb[8].mxu0 %v145_v60 }
  0x48   :  { %1767 = vmatprep.mubr.msk.bf16.mxu0 %vm155_vm0, %v148_v61  ;;  %1045 = vmatpush1.bf16.msra.mxu0 %v2449_v18  ;;  %v1811_v18 = vld [vmem:[%s3510_s0 + $0xe8] sm:$0xff] }
  0x49   :  { %1046 = vmatprep.subr.bf16.mxu0 %v2322_v0 }
  0x4c   :  { %1047 = vmatpush1.bf16.msra.mxu0 %v2459_v21  ;;  %v1023_v21 = vpack.c.bf16 %v1813_v19, %v1811_v18 }
  0x4d   :  { %1048 = vmatprep.subr.bf16.mxu0 %v2322_v0 }
  0x4f   :  { %229 = vmatmul.mubr.bf16.gmra.mrb[12].mxu0 %v147_v3 }
  0x50   :  { %1049 = vmatpush1.bf16.msra.mxu0 %v2469_v24  ;;  %1814 = vmatprep.mubr.msk.bf16.mxu0 %vm155_vm0, %v1017_v4  ;;  %v1022_v24 = vpack.c.bf16 %v1812_v23, %v1810_v22 }
  0x51   :  { %1050 = vmatprep.subr.bf16.mxu0 %v2322_v0 }
  0x54   :  { %1051 = vmatpush1.bf16.msra.mxu0 %v2479_v27 }
  0x55   :  { %1052 = vmatprep.subr.bf16.mxu0 %v2322_v0 }
  0x58   :  { %1053 = vmatpush1.bf16.msra.mxu0 %v2489_v30 }
  0x59   :  { %1054 = vmatprep.subr.bf16.mxu0 %v2322_v0 }
  0x5c   :  { %1055 = vmatpush1.bf16.msra.mxu0 %v2499_v33 }
  0x5d   :  { %1056 = vmatprep.subr.bf16.mxu0 %v2322_v0 }
  0x60   :  { %1057 = vmatpush1.bf16.msra.mxu0 %v2509_v36 }
  0x61   :  { %1058 = vmatprep.subr.bf16.mxu0 %v2322_v0 }
  0x64   :  { %1059 = vmatpush1.bf16.msra.mxu0 %v82_v41 }
  0x65   :  { %1060 = vmatprep.subr.bf16.mxu0 %v2322_v0  ;;  %v1804_v0 = vld [vmem:[%s3510_s0 + $0xb0] sm:$0xff] }
  0x66   :  { %v1018_v14 = vpack.c.bf16 %v1804_v0, %v1802_v11 }
  0x68   :  { %1061 = vmatpush1.bf16.msra.mxu0 %v170_v45 }
  0x6b   :  { %1069 = vmatmul.mubr.bf16.vlgmr.msra.gmra.mrb[16].mxu0 %v1016_v9 }
  0x6c   :  { %1815 = vmatprep.mubr.msk.bf16.mxu0 %vm155_vm0, %v1019_v10 }
  0x73   :  { %1077 = vmatmul.mubr.bf16.gmra.mrb[20].mxu0 %v1018_v14 }
  0x74   :  { %1816 = vmatprep.mubr.msk.bf16.mxu0 %vm155_vm0, %v1021_v15 }
  0x7b   :  { %1085 = vmatmul.mubr.bf16.gmra.mrb[24].mxu0 %v1020_v20 }
  0x7c   :  { %1817 = vmatprep.mubr.msk.bf16.mxu0 %vm155_vm0, %v1023_v21 }
  0x83   :  { %1093 = vmatmul.mubr.bf16.gmra.mrb[28].mxu0 %v1022_v24 }
 0x10a   :  { %v206_v26 = vpop.f32.mrb[0].mxu0 }
 0x10b   :  { %v207_v27 = vadd.f32 %v2651_v25, %v206_v26  ;;  %v208_v28 = vpop.f32.mrb[1].mxu0 }
 0x10c   :  { %v209_v29 = vpop.f32.mrb[2].mxu0 }
 0x10d   :  { %v211_v30 = vpop.f32.mrb[3].mxu0  ;;  %237 = vadd.xlane.f32.xlu0 %v207_v27  ;;  %v210_v31 = vadd.f32 %v2651_v25, %v209_v29 }
 0x111   :  { %239 = vadd.xlane.f32.xlu0 %v210_v31 }
 0x112   :  { %v214_v32 = vpop.f32.mrb[4].mxu0 }
 0x113   :  { %v215_v33 = vadd.f32 %v2651_v25, %v214_v32  ;;  %v216_v34 = vpop.f32.mrb[5].mxu0 }
 0x114   :  { %v217_v35 = vpop.f32.mrb[6].mxu0 }
 0x115   :  { %v219_v36 = vpop.f32.mrb[7].mxu0  ;;  %241 = vadd.xlane.f32.xlu1 %v215_v33  ;;  %v218_v37 = vadd.f32 %v2651_v25, %v217_v35 }
 0x119   :  { %243 = vadd.xlane.f32.xlu1 %v218_v37 }
 0x11a   :  { %v222_v38 = vpop.f32.mrb[8].mxu0 }
 0x11b   :  { %v223_v39 = vadd.f32 %v2651_v25, %v222_v38  ;;  %v224_v40 = vpop.f32.mrb[9].mxu0 }
 0x11c   :  { %v225_v41 = vpop.f32.mrb[10].mxu0 }
 0x11d   :  { %v226_v42 = vadd.f32 %v2651_v25, %v225_v41  ;;  %v227_v43 = vpop.f32.mrb[11].mxu0  ;;  %245 = vadd.xlane.f32.xlu0 %v223_v39 }
 0x11e   :  { %v3525_v43 = vmov 0.0|0.0  }
 0x11f   :  { %247 = vadd.xlane.f32.xlu1 %v226_v42  ;;  %2168 = vmatprep.subr.bf16.mxu1 %v3525_v43 }
 0x122   :  { %v230_v44 = vpop.f32.mrb[12].mxu0 }
 0x123   :  { %v231_v45 = vadd.f32 %v2651_v25, %v230_v44  ;;  %v232_v46 = vpop.f32.mrb[13].mxu0  ;;  %v3523_v44 = vmov 0.0  }
 0x124   :  { %v233_v47 = vpop.f32.mrb[14].mxu0  ;;  %1972 = vmatprep.mubr.msk.f32.mxu1 %vm2324_vm2, %v3523_v44 }
 0x125   :  { %v234_v48 = vadd.f32 %v2651_v25, %v233_v47  ;;  %v235_v49 = vpop.f32.mrb[15].mxu0  ;;  %249 = vadd.xlane.f32.xlu0 %v231_v45 }
 0x127   :  { %251 = vadd.xlane.f32.xlu1 %v234_v48 }
 0x13e   :  { %v1070_v50 = vpop.f32.mrb[16].mxu0 }
 0x13f   :  { %v1072_v51 = vpop.f32.mrb[17].mxu0  ;;  %v2692_v34 = vadd.f32 %v2651_v25, %v1070_v50 }
 0x140   :  { %v1073_v52 = vpop.f32.mrb[18].mxu0 }
 0x141   :  { %v1075_v53 = vpop.f32.mrb[19].mxu0  ;;  %v2697_v36 = vadd.f32 %v2651_v25, %v1073_v52 }
 0x146   :  { %v1078_v54 = vpop.f32.mrb[20].mxu0 }
 0x147   :  { %v1080_v55 = vpop.f32.mrb[21].mxu0 }
 0x148   :  { %v1081_v56 = vpop.f32.mrb[22].mxu0 }
 0x149   :  { %v1083_v57 = vpop.f32.mrb[23].mxu0  ;;  %v2705_v38 = vadd.f32 %v2651_v25, %v1081_v56 }
 0x14e   :  { %v1086_v58 = vpop.f32.mrb[24].mxu0 }
 0x14f   :  { %v1088_v59 = vpop.f32.mrb[25].mxu0 }
 0x150   :  { %v1089_v60 = vpop.f32.mrb[26].mxu0 }
 0x151   :  { %v1091_v61 = vpop.f32.mrb[27].mxu0  ;;  %v2713_v40 = vadd.f32 %v2651_v25, %v1089_v60  ;;  %v2732_v60 = vld [vmem:[%s3512_s3] ss:$0 sm:$0xff] }
 0x156   :  { %v1094_v62 = vpop.f32.mrb[28].mxu0 }
 0x157   :  { %v1096_v63 = vpop.f32.mrb[29].mxu0  ;;  %v2717_v41 = vadd.f32 %v2651_v25, %v1094_v62 }
 0x158   :  { %v1097_v1 = vpop.f32.mrb[30].mxu0 }
 0x159   :  { %v1099_v2 = vpop.f32.mrb[31].mxu0 }
 0x19a   :  { %v238_v3 = vpop.xlane.xlu0 %237 }
 0x19b   :  { %v254_v4 = vmul.f32 0.0078125, %v238_v3 }
 0x19d   :  { %v2661_v5 = vsub.f32 %v207_v27, %v254_v4 }
 0x19e   :  { %v240_v6 = vpop.xlane.xlu0 %239 }
 0x19f   :  { %v255_v7 = vmul.f32 0.0078125, %v240_v6  ;;  %v270_v8 = vmul.f32 %v2661_v5, %v2661_v5 }
 0x1a1   :  { %v2665_v9 = vsub.f32 %v210_v31, %v255_v7  ;;  %278 = vadd.xlane.f32.xlu0 %v270_v8 }
 0x1a2   :  { %v242_v10 = vpop.xlane.xlu1 %241 }
 0x1a3   :  { %v256_v11 = vmul.f32 0.0078125, %v242_v10  ;;  %v271_v0 = vmul.f32 %v2665_v9, %v2665_v9 }
 0x1a5   :  { %v2669_v12 = vsub.f32 %v215_v33, %v256_v11  ;;  %280 = vadd.xlane.f32.xlu1 %v271_v0 }
 0x1a6   :  { %v244_v13 = vpop.xlane.xlu1 %243 }
 0x1a7   :  { %v257_v14 = vmul.f32 0.0078125, %v244_v13  ;;  %v272_v15 = vmul.f32 %v2669_v12, %v2669_v12 }
 0x1a9   :  { %v2673_v16 = vsub.f32 %v218_v37, %v257_v14  ;;  %282 = vadd.xlane.f32.xlu0 %v272_v15  ;;  %v2701_v37 = vadd.f32 %v2651_v25, %v1078_v54 }
 0x1aa   :  { %v246_v17 = vpop.xlane.xlu0 %245 }
 0x1ab   :  { %v258_v18 = vmul.f32 0.0078125, %v246_v17  ;;  %v273_v19 = vmul.f32 %v2673_v16, %v2673_v16 }
 0x1ac   :  { %v248_v20 = vpop.xlane.xlu1 %247 }
 0x1ad   :  { %v2677_v21 = vsub.f32 %v223_v39, %v258_v18  ;;  %v259_v22 = vmul.f32 0.0078125, %v248_v20  ;;  %284 = vadd.xlane.f32.xlu1 %v273_v19  ;;  %v2709_v39 = vadd.f32 %v2651_v25, %v1086_v58 }
 0x1af   :  { %v2679_v23 = vsub.f32 %v226_v42, %v259_v22  ;;  %v274_v24 = vmul.f32 %v2677_v21, %v2677_v21  ;;  %v2721_v42 = vadd.f32 %v2651_v25, %v1097_v1 }
 0x1b1   :  { %286 = vadd.xlane.f32.xlu0 %v274_v24  ;;  %v275_v26 = vmul.f32 %v2679_v23, %v2679_v23 }
 0x1b2   :  { %v250_v27 = vpop.xlane.xlu0 %249 }
 0x1b3   :  { %v260_v28 = vmul.f32 0.0078125, %v250_v27  ;;  %288 = vadd.xlane.f32.xlu1 %v275_v26 }
 0x1b4   :  { %v252_v29 = vpop.xlane.xlu1 %251 }
 0x1b5   :  { %v2685_v30 = vsub.f32 %v231_v45, %v260_v28  ;;  %v261_v31 = vmul.f32 0.0078125, %v252_v29 }
 0x1b7   :  { %v2687_v32 = vsub.f32 %v234_v48, %v261_v31  ;;  %v276_v33 = vmul.f32 %v2685_v30, %v2685_v30 }
 0x1b9   :  { %290 = vadd.xlane.f32.xlu0 %v276_v33  ;;  %v277_v35 = vmul.f32 %v2687_v32, %v2687_v32 }
 0x1bb   :  { %292 = vadd.xlane.f32.xlu1 %v277_v35 }
 0x1bd   :  { %1101 = vadd.xlane.f32.xlu0 %v2692_v34 }
 0x1bf   :  { %1103 = vadd.xlane.f32.xlu1 %v2697_v36 }
 0x1c1   :  { %1105 = vadd.xlane.f32.xlu0 %v2701_v37 }
 0x1c3   :  { %1107 = vadd.xlane.f32.xlu1 %v2705_v38 }
 0x1c5   :  { %1109 = vadd.xlane.f32.xlu0 %v2709_v39 }
 0x1c7   :  { %1111 = vadd.xlane.f32.xlu1 %v2713_v40 }
 0x1c9   :  { %1113 = vadd.xlane.f32.xlu0 %v2717_v41 }
 0x1cb   :  { %1115 = vadd.xlane.f32.xlu1 %v2721_v42 }
 0x22e   :  { %v279_v45 = vpop.xlane.xlu0 %278 }
 0x22f   :  { %v294_v46 = vmul.f32 0.0078125, %v279_v45 }
 0x231   :  { %v302_v47 = vadd.f32 1e-05, %v294_v46 }
 0x232   :  { %v281_v48 = vpop.xlane.xlu1 %280 }
 0x233   :  { %2258 = vrsqrt.f32 %v302_v47  ;;  %v295_v49 = vmul.f32 0.0078125, %v281_v48 }
 0x235   :  { %v303_v25 = vadd.f32 1e-05, %v295_v49 }
 0x236   :  { %v283_v50 = vpop.xlane.xlu0 %282 }
 0x237   :  { %2260 = vrsqrt.f32 %v303_v25  ;;  %v296_v51 = vmul.f32 0.0078125, %v283_v50 }
 0x239   :  { %v304_v52 = vadd.f32 1e-05, %v296_v51 }
 0x23a   :  { %v285_v53 = vpop.xlane.xlu1 %284 }
 0x23b   :  { %2262 = vrsqrt.f32 %v304_v52  ;;  %v297_v54 = vmul.f32 0.0078125, %v285_v53 }
 0x23d   :  { %v2259_v55 = vpop.eup %2258  ;;  %v305_v56 = vadd.f32 1e-05, %v297_v54 }
 0x23e   :  { %v287_v57 = vpop.xlane.xlu0 %286  ;;  %v318_v58 = vmul.f32 %v2259_v55, %v2661_v5  ;;  %v2739_v5 = vld [vmem:[%s3513_s4] ss:$0 sm:$0xff] }
 0x23f   :  { %2264 = vrsqrt.f32 %v305_v56  ;;  %v298_v59 = vmul.f32 0.0078125, %v287_v57 }
 0x240   :  { %v289_v61 = vpop.xlane.xlu1 %288  ;;  %v332_v3 = vmul.f32 %v2732_v60, %v318_v58 }
 0x241   :  { %v2261_v62 = vpop.eup %2260  ;;  %v306_v63 = vadd.f32 1e-05, %v298_v59  ;;  %v299_v1 = vmul.f32 0.0078125, %v289_v61 }
 0x242   :  { %v319_v2 = vmul.f32 %v2261_v62, %v2665_v9  ;;  %v2743_v10 = vadd.f32 %v2739_v5, %v332_v3 }
 0x243   :  { %2266 = vrsqrt.f32 %v306_v63  ;;  %v307_v4 = vadd.f32 1e-05, %v299_v1 }
 0x244   :  { %v333_v6 = vmul.f32 %v2732_v60, %v319_v2 }
 0x245   :  { %v2263_v7 = vpop.eup %2262  ;;  %2268 = vrsqrt.f32 %v307_v4 }
 0x246   :  { %v291_v8 = vpop.xlane.xlu0 %290  ;;  %v2746_v11 = vadd.f32 %v2739_v5, %v333_v6  ;;  %v320_v9 = vmul.f32 %v2263_v7, %v2669_v12 }
 0x247   :  { %v300_v0 = vmul.f32 0.0078125, %v291_v8 }
 0x248   :  { %v293_v13 = vpop.xlane.xlu1 %292  ;;  %v2751_v14 = vpack.c.bf16 %v2746_v11, %v2743_v10  ;;  %v334_v22 = vmul.f32 %v2732_v60, %v320_v9 }
 0x249   :  { %v2265_v15 = vpop.eup %2264  ;;  %v308_v17 = vadd.f32 1e-05, %v300_v0  ;;  %v301_v18 = vmul.f32 0.0078125, %v293_v13 }
 0x24a   :  { %2170 = vmatpush3.bf16.msra.mxu1 %v2751_v14  ;;  %v1102_v19 = vpop.xlane.xlu0 %1101  ;;  %v321_v20 = vmul.f32 %v2265_v15, %v2673_v16  ;;  %v2762_v35 = vadd.f32 %v2739_v5, %v334_v22  ;;  %v2866_v22 = vld [vmem:[%s3514_s5 + $0x18] sm:$0xff] }
 0x24b   :  { %2270 = vrsqrt.f32 %v308_v17  ;;  %v309_v24 = vadd.f32 1e-05, %v301_v18  ;;  %v1117_v26 = vmul.f32 0.0078125, %v1102_v19  ;;  %2171 = vmatprep.subr.bf16.mxu1 %v3525_v43 }
 0x24c   :  { %v1104_v12 = vpop.xlane.xlu1 %1103  ;;  %v335_v27 = vmul.f32 %v2732_v60, %v321_v20  ;;  %v2846_v20 = vld [vmem:[%s3514_s5 + $0x8] sm:$0xff] }
 0x24d   :  { %v2267_v28 = vpop.eup %2266  ;;  %2272 = vrsqrt.f32 %v309_v24  ;;  %v2759_v29 = vsub.f32 %v2692_v34, %v1117_v26  ;;  %v1118_v31 = vmul.f32 0.0078125, %v1104_v12  ;;  %v2876_v24 = vld [vmem:[%s3514_s5 + $0x20] sm:$0xff]  ;;  %v2894_v12 = vld [vmem:[%s3515_s6 + $0x8] sm:$0xff] }
 0x24e   :  { %v1106_v33 = vpop.xlane.xlu0 %1105  ;;  %v2765_v16 = vadd.f32 %v2739_v5, %v335_v27  ;;  %v322_v45 = vmul.f32 %v2267_v28, %v2677_v21  ;;  %v2885_v26 = vld [vmem:[%s3515_s6] sm:$0xff]  ;;  %v2903_v27 = vld [vmem:[%s3515_s6 + $0x10] sm:$0xff]  ;;  %v2912_v28 = vld [vmem:[%s3515_s6 + $0x18] sm:$0xff] }
 0x24f   :  { %v2269_v46 = vpop.eup %2268  ;;  %v2769_v47 = vsub.f32 %v2697_v36, %v1118_v31  ;;  %v1119_v48 = vmul.f32 0.0078125, %v1106_v33  ;;  %v1133_v49 = vmul.f32 %v2759_v29, %v2759_v29  ;;  %v2921_v31 = vld [vmem:[%s3515_s6 + $0x20] sm:$0xff] }
 0x250   :  { %v1108_v34 = vpop.xlane.xlu1 %1107  ;;  %v2172_v25 = vpack.c.bf16 %v2765_v16, %v2762_v35  ;;  %v323_v50 = vmul.f32 %v2269_v46, %v2679_v23  ;;  %v336_v51 = vmul.f32 %v2732_v60, %v322_v45  ;;  %v2928_v33 = vld [vmem:[%s3516_s7] sm:$0xff] }
 0x251   :  { %v2778_v52 = vsub.f32 %v2701_v37, %v1119_v48  ;;  %v1120_v21 = vmul.f32 0.0078125, %v1108_v34  ;;  %1141 = vadd.xlane.f32.xlu0 %v1133_v49  ;;  %v1134_v36 = vmul.f32 %v2769_v47, %v2769_v47  ;;  %v2935_v45 = vld [vmem:[%s3517_s8] sm:$0xff] }
 0x252   :  { %2173 = vmatpush3.bf16.msra.mxu1 %v2172_v25  ;;  %v1110_v53 = vpop.xlane.xlu0 %1109  ;;  %v337_v54 = vmul.f32 %v2732_v60, %v323_v50  ;;  %v2790_v57 = vadd.f32 %v2739_v5, %v336_v51  ;;  %2156 = vmatprep.mubr.msk.f32.mxu0 %vm600_vm4, %v2935_v45 }
 0x253   :  { %v2784_v55 = vsub.f32 %v2705_v38, %v1120_v21  ;;  %v1121_v56 = vmul.f32 0.0078125, %v1110_v53  ;;  %1143 = vadd.xlane.f32.xlu1 %v1134_v36  ;;  %v1135_v23 = vmul.f32 %v2778_v52, %v2778_v52  ;;  %2174 = vmatprep.subr.bf16.mxu1 %v3525_v43 }
 0x254   :  { %v1112_v37 = vpop.xlane.xlu1 %1111  ;;  %v2793_v58 = vadd.f32 %v2739_v5, %v337_v54 }
 0x255   :  { %v2271_v59 = vpop.eup %2270  ;;  %v2796_v61 = vsub.f32 %v2709_v39, %v1121_v56  ;;  %v1122_v38 = vmul.f32 0.0078125, %v1112_v37  ;;  %1145 = vadd.xlane.f32.xlu0 %v1135_v23  ;;  %v1136_v62 = vmul.f32 %v2784_v55, %v2784_v55  ;;  %v2944_v56 = vld [vmem:[%s3518_s9] sm:$0xff] }
 0x256   :  { %v1114_v63 = vpop.xlane.xlu0 %1113  ;;  %v2175_v1 = vpack.c.bf16 %v2793_v58, %v2790_v57  ;;  %v324_v2 = vmul.f32 %v2271_v59, %v2685_v30  ;;  %v2949_v23 = vld [vmem:[%s3519_s10] sm:$0xff] }
 0x257   :  { %v2273_v3 = vpop.eup %2272  ;;  %v2804_v4 = vsub.f32 %v2713_v40, %v1122_v38  ;;  %v1123_v6 = vmul.f32 0.0078125, %v1114_v63  ;;  %1147 = vadd.xlane.f32.xlu1 %v1136_v62  ;;  %v1137_v39 = vmul.f32 %v2796_v61, %v2796_v61 }
 0x258   :  { %v1116_v7 = vpop.xlane.xlu1 %1115  ;;  %2176 = vmatpush3.bf16.msra.mxu1 %v2175_v1  ;;  %v325_v8 = vmul.f32 %v2273_v3, %v2687_v32  ;;  %v338_v9 = vmul.f32 %v2732_v60, %v324_v2 }
 0x259   :  { %v2811_v0 = vsub.f32 %v2717_v41, %v1123_v6  ;;  %v1124_v13 = vmul.f32 0.0078125, %v1116_v7  ;;  %1149 = vadd.xlane.f32.xlu0 %v1137_v39  ;;  %v1138_v30 = vmul.f32 %v2804_v4, %v2804_v4  ;;  %2177 = vmatprep.subr.bf16.mxu1 %v3525_v43  ;;  %v2958_v6 = vld [vmem:[%s3518_s9 + $0x8] sm:$0xff] }
 0x25a   :  { %v339_v40 = vmul.f32 %v2732_v60, %v325_v8  ;;  %v2823_v17 = vadd.f32 %v2739_v5, %v338_v9  ;;  %v2963_v39 = vld [vmem:[%s3519_s10 + $0x8] sm:$0xff] }
 0x25b   :  { %v2818_v15 = vsub.f32 %v2721_v42, %v1124_v13  ;;  %1151 = vadd.xlane.f32.xlu1 %v1138_v30  ;;  %v1139_v32 = vmul.f32 %v2811_v0, %v2811_v0  ;;  %v2835_v42 = vld [vmem:[%s3514_s5] sm:$0xff] }
 0x25c   :  { %v2826_v41 = vadd.f32 %v2739_v5, %v339_v40 }
 0x25d   :  { %1153 = vadd.xlane.f32.xlu0 %v1139_v32  ;;  %v1140_v18 = vmul.f32 %v2818_v15, %v2818_v15 }
 0x25e   :  { %v2178_v19 = vpack.c.bf16 %v2826_v41, %v2823_v17 }
 0x25f   :  { %1155 = vadd.xlane.f32.xlu1 %v1140_v18 }
 0x260   :  { %2179 = vmatpush3.bf16.msra.mxu1 %v2178_v19 }
 0x261   :  { %2180 = vmatprep.subr.bf16.mxu1 %v3525_v43 }
 0x263   :  { %1973 = vmatmul.mubr.msk.f32.vlgmr.msra.gmra.mrb[0].mxu1 %vm354_vm3, %v2835_v42 }
 0x264   :  { %2182 = vmatpush3.bf16.msra.mxu1 %v2751_v14  ;;  %1975 = vmatprep.mubr.msk.f32.mxu1 %vm2324_vm2, %v3523_v44  ;;  %v2856_v14 = vld [vmem:[%s3514_s5 + $0x10] sm:$0xff] }
 0x265   :  { %2183 = vmatprep.subr.bf16.mxu1 %v3525_v43 }
 0x267   :  { %1976 = vmatmul.mubr.msk.f32.gmra.mrb[2].mxu1 %vm354_vm3, %v2846_v20 }
 0x268   :  { %2185 = vmatpush3.bf16.msra.mxu1 %v2172_v25  ;;  %1978 = vmatprep.mubr.msk.f32.mxu1 %vm2324_vm2, %v3523_v44 }
 0x269   :  { %2186 = vmatprep.subr.bf16.mxu1 %v3525_v43 }
 0x26b   :  { %1979 = vmatmul.mubr.msk.f32.gmra.mrb[4].mxu1 %vm354_vm3, %v2856_v14 }
 0x26c   :  { %2188 = vmatpush3.bf16.msra.mxu1 %v2175_v1  ;;  %1981 = vmatprep.mubr.msk.f32.mxu1 %vm2324_vm2, %v3523_v44 }
 0x26d   :  { %2189 = vmatprep.subr.bf16.mxu1 %v3525_v43 }
 0x26f   :  { %1982 = vmatmul.mubr.msk.f32.gmra.mrb[6].mxu1 %vm354_vm3, %v2866_v22 }
 0x270   :  { %2191 = vmatpush3.bf16.msra.mxu1 %v2178_v19  ;;  %1984 = vmatprep.mubr.msk.f32.mxu1 %vm2324_vm2, %v3523_v44 }
 0x273   :  { %1985 = vmatmul.mubr.msk.f32.gmra.mrb[8].mxu1 %vm354_vm3, %v2876_v24 }
 0x274   :  { %2003 = vmatprep.mubr.msk.f32.mxu1 %vm2324_vm2, %v3523_v44 }
 0x277   :  { %2004 = vmatmul.mubr.msk.f32.vlgmr.msra.gmra.mrb[10].mxu1 %vm354_vm3, %v2885_v26 }
 0x278   :  { %2006 = vmatprep.mubr.msk.f32.mxu1 %vm2324_vm2, %v3523_v44 }
 0x27b   :  { %2007 = vmatmul.mubr.msk.f32.gmra.mrb[12].mxu1 %vm354_vm3, %v2894_v12 }
 0x27c   :  { %2009 = vmatprep.mubr.msk.f32.mxu1 %vm2324_vm2, %v3523_v44 }
 0x27f   :  { %2010 = vmatmul.mubr.msk.f32.gmra.mrb[14].mxu1 %vm354_vm3, %v2903_v27 }
 0x280   :  { %2012 = vmatprep.mubr.msk.f32.mxu1 %vm2324_vm2, %v3523_v44 }
 0x283   :  { %2013 = vmatmul.mubr.msk.f32.gmra.mrb[16].mxu1 %vm354_vm3, %v2912_v28 }
 0x284   :  { %2015 = vmatprep.mubr.msk.f32.mxu1 %vm2324_vm2, %v3523_v44 }
 0x287   :  { %2016 = vmatmul.mubr.msk.f32.gmra.mrb[18].mxu1 %vm354_vm3, %v2921_v31 }
 0x288   :  { %2028 = vmatprep.mubr.msk.f32.mxu1 %vm600_vm4, %v2928_v33 }
 0x2de   :  { %v1142_v62 = vpop.xlane.xlu0 %1141 }
 0x2df   :  { %v1157_v40 = vmul.f32 0.0078125, %v1142_v62 }
 0x2e0   :  { %v1144_v54 = vpop.xlane.xlu1 %1143 }
 0x2e4   :  { %v1148_v32 = vpop.xlane.xlu1 %1147 }
 0x336   :  { %v436_v46 = vpop.f32.mrb[0].mxu1 }
 0x337   :  { %v1974_v48 = vpop.f32.mrb[1].mxu1  ;;  %v570_v63 = vmul.f32 %v436_v46, %v2944_v56  ;;  %v585_v1 = vmul.f32 %v436_v46, %v2949_v23  ;;  %v2970_v46 = vld [vmem:[%s3518_s9 + $0x10] sm:$0xff] }
 0x338   :  { %3533 = vst [vmem:[#allocation2_spill] sm:$0xff] %v2970_v46  ;;  %v2975_v48 = vld [vmem:[%s3519_s10 + $0x10] sm:$0xff] }
 0x339   :  { %3534 = vst [vmem:[#allocation3_spill] sm:$0xff] %v2975_v48 }
 0x33a   :  { %v441_v49 = vpop.f32.mrb[2].mxu1 }
 0x33b   :  { %v1977_v34 = vpop.f32.mrb[3].mxu1  ;;  %v571_v18 = vmul.f32 %v441_v49, %v2958_v6  ;;  %v586_v19 = vmul.f32 %v441_v49, %v2963_v39 }
 0x33e   :  { %v446_v25 = vpop.f32.mrb[4].mxu1 }
 0x33f   :  { %v1980_v50 = vpop.f32.mrb[5].mxu1 }
 0x342   :  { %v451_v51 = vpop.f32.mrb[6].mxu1 }
 0x343   :  { %v1983_v21 = vpop.f32.mrb[7].mxu1 }
 0x344   :  { %v1158_v21 = vmul.f32 0.0078125, %v1144_v54  ;;  %v1152_v54 = vpop.xlane.xlu1 %1151 }
 0x346   :  { %v2939_v36 = vpop.f32.mrb[8].mxu1  ;;  %v1166_v43 = vadd.f32 1e-05, %v1158_v21 }
 0x347   :  { %v1986_v53 = vpop.f32.mrb[9].mxu1 }
 0x348   :  { %v1146_v53 = vpop.xlane.xlu0 %1145 }
 0x34a   :  { %v541_v37 = vpop.f32.mrb[10].mxu1 }
 0x34b   :  { %v565_v59 = vsub.f32 0.0, %v541_v37  ;;  %v2005_v38 = vpop.f32.mrb[11].mxu1 }
 0x34d   :  { %v575_v2 = vmul.f32 %v565_v59, %v2949_v23  ;;  %v590_v3 = vmul.f32 %v565_v59, %v2944_v56 }
 0x34e   :  { %v546_v7 = vpop.f32.mrb[12].mxu1 }
 0x34f   :  { %v580_v8 = vsub.f32 %v570_v63, %v575_v2  ;;  %v595_v9 = vadd.f32 %v590_v3, %v585_v1  ;;  %v566_v13 = vsub.f32 0.0, %v546_v7  ;;  %v2008_v30 = vpop.f32.mrb[13].mxu1  ;;  %v1165_v63 = vadd.f32 1e-05, %v1157_v40  ;;  %v2991_v40 = vld [vmem:[%s3519_s10 + $0x18] sm:$0xff] }
 0x350   :  { %v572_v1 = vmul.f32 %v446_v25, %v2970_v46  ;;  %v587_v2 = vmul.f32 %v446_v25, %v2975_v48  ;;  %3535 = vst [vmem:[#allocation4_spill] sm:$0xff] %v2991_v40  ;;  %v588_v21 = vmul.f32 %v451_v51, %v2991_v40 }
 0x351   :  { %v576_v34 = vmul.f32 %v566_v13, %v2963_v39  ;;  %v591_v50 = vmul.f32 %v566_v13, %v2958_v6  ;;  %v1160_v13 = vmul.f32 0.0078125, %v1148_v32  ;;  %2274 = vrsqrt.f32 %v1165_v63 }
 0x352   :  { %v551_v37 = vpop.f32.mrb[14].mxu1  ;;  %2276 = vrsqrt.f32 %v1166_v43 }
 0x353   :  { %v581_v59 = vsub.f32 %v571_v18, %v576_v34  ;;  %v596_v38 = vadd.f32 %v591_v50, %v586_v19  ;;  %v567_v49 = vsub.f32 0.0, %v551_v37  ;;  %v2011_v62 = vpop.f32.mrb[15].mxu1  ;;  %v2986_v18 = vld [vmem:[%s3518_s9 + $0x18] sm:$0xff] }
 0x354   :  { %v573_v32 = vmul.f32 %v451_v51, %v2986_v18  ;;  %v1168_v62 = vadd.f32 1e-05, %v1160_v13 }
 0x355   :  { %v577_v3 = vmul.f32 %v567_v49, %v2975_v48  ;;  %v592_v7 = vmul.f32 %v567_v49, %v2970_v46  ;;  %v2192_v30 = vpack.c.bf16 %v581_v59, %v580_v8  ;;  %v2200_v44 = vpack.c.bf16 %v596_v38, %v595_v9  ;;  %v1150_v9 = vpop.xlane.xlu0 %1149  ;;  %v2998_v59 = vld [vmem:[%s3518_s9 + $0x20] sm:$0xff] }
 0x356   :  { %v556_v25 = vpop.f32.mrb[16].mxu1  ;;  %v1159_v8 = vmul.f32 0.0078125, %v1146_v53  ;;  %v3003_v38 = vld [vmem:[%s3519_s10 + $0x20] sm:$0xff]  ;;  %v574_v48 = vmul.f32 %v2939_v36, %v2998_v59  ;;  %2278 = vrsqrt.f32 %v1168_v62 }
 0x357   :  { %v582_v19 = vsub.f32 %v572_v1, %v577_v3  ;;  %v597_v34 = vadd.f32 %v592_v7, %v587_v2  ;;  %v568_v50 = vsub.f32 0.0, %v556_v25  ;;  %v2014_v37 = vpop.f32.mrb[17].mxu1  ;;  %2193 = vmatprep.subr.bf16.mxu1 %v2192_v30  ;;  %v1162_v1 = vmul.f32 0.0078125, %v1152_v54  ;;  %v3035_v62 = vld [vmem:[%s3516_s7 + $0x20] sm:$0xff] }
 0x358   :  { %2195 = vmatpush3.bf16.msra.mxu1 %v2192_v30  ;;  %v1167_v30 = vadd.f32 1e-05, %v1159_v8  ;;  %v1161_v25 = vmul.f32 0.0078125, %v1150_v9  ;;  %v1156_v37 = vpop.xlane.xlu1 %1155  ;;  %v589_v46 = vmul.f32 %v2939_v36, %v3003_v38  ;;  %v3016_v36 = vld [vmem:[%s3516_s7 + $0x8] sm:$0xff] }
 0x359   :  { %v578_v49 = vmul.f32 %v568_v50, %v2991_v40  ;;  %v593_v53 = vmul.f32 %v568_v50, %v2986_v18  ;;  %v1154_v54 = vpop.xlane.xlu0 %1153 }
 0x35a   :  { %v561_v63 = vpop.f32.mrb[18].mxu1  ;;  %2280 = vrsqrt.f32 %v1167_v30 }
 0x35b   :  { %v583_v2 = vsub.f32 %v573_v32, %v578_v49  ;;  %v598_v51 = vadd.f32 %v593_v53, %v588_v21  ;;  %v569_v3 = vsub.f32 0.0, %v561_v63  ;;  %v2017_v7 = vpop.f32.mrb[19].mxu1  ;;  %v1170_v32 = vadd.f32 1e-05, %v1162_v1  ;;  %v2275_v63 = vpop.eup %2274 }
 0x35c   :  { %v1164_v21 = vmul.f32 0.0078125, %v1156_v37  ;;  %v1169_v49 = vadd.f32 1e-05, %v1161_v25  ;;  %v1163_v53 = vmul.f32 0.0078125, %v1154_v54  ;;  %v3063_v37 = vld [vmem:[%s3516_s7 + $0x38] sm:$0xff] }
 0x35d   :  { %v579_v40 = vmul.f32 %v569_v3, %v3003_v38  ;;  %v594_v43 = vmul.f32 %v569_v3, %v2998_v59  ;;  %v2196_v13 = vpack.c.bf16 %v583_v2, %v582_v19  ;;  %v2204_v50 = vpack.c.bf16 %v598_v51, %v597_v34  ;;  %v3021_v34 = vld [vmem:[%s3516_s7 + $0x10] sm:$0xff]  ;;  %v3046_v51 = vld [vmem:[%s3516_s7 + $0x28] sm:$0xff] }
 0x35e   :  { %2282 = vrsqrt.f32 %v1170_v32  ;;  %v1172_v19 = vadd.f32 1e-05, %v1164_v21 }
 0x35f   :  { %2197 = vmatprep.subr.bf16.mxu1 %v2196_v13  ;;  %v584_v8 = vsub.f32 %v574_v48, %v579_v40  ;;  %v599_v9 = vadd.f32 %v594_v43, %v589_v46  ;;  %v2277_v48 = vpop.eup %2276  ;;  %2284 = vrsqrt.f32 %v1169_v49  ;;  %v1171_v46 = vadd.f32 1e-05, %v1163_v53  ;;  %v3030_v40 = vld [vmem:[%s3516_s7 + $0x18] sm:$0xff]  ;;  %v3089_v53 = vld [vmem:[%s3517_s8 + $0x10] sm:$0xff] }
 0x360   :  { %2199 = vmatpush3.bf16.msra.mxu1 %v2196_v13  ;;  %2286 = vrsqrt.f32 %v1172_v19  ;;  %v2279_v1 = vpop.eup %2278  ;;  %v1182_v2 = vmul.f32 %v2277_v48, %v2769_v47  ;;  %v3051_v47 = vld [vmem:[%s3516_s7 + $0x30] sm:$0xff]  ;;  %v3536_v13 = vmov 0.0|0.0  }
 0x361   :  { %2026 = vmatprep.subr.mxu1 %v584_v8  ;;  %2288 = vrsqrt.f32 %v1171_v46  ;;  %v1184_v7 = vmul.f32 %v2279_v1, %v2784_v55 }
 0x364   :  { %2027 = vmatpush3.msra.mxu1 %v584_v8  ;;  %v2281_v3 = vpop.eup %2280  ;;  %v3080_v8 = vld [vmem:[%s3517_s8 + $0x8] sm:$0xff] }
 0x365   :  { %2029 = vmatmul.mubr.msk.f32.vlgmr.msra.gmra.mrb[20].mxu1 %vm600_vm4, %v3016_v36  ;;  %2201 = vmatprep.subr.bf16.mxu1 %v2200_v44  ;;  %v1183_v25 = vmul.f32 %v2281_v3, %v2778_v52  ;;  %v1192_v52 = vmul.f32 %v2732_v60, %v1184_v7  ;;  %v3131_v7 = vld [vmem:[%s3517_s8 + $0x28] sm:$0xff] }
 0x366   :  { %2203 = vmatpush3.bf16.msra.mxu1 %v2200_v44  ;;  %2031 = vmatprep.mubr.msk.f32.mxu1 %vm600_vm4, %v3021_v34  ;;  %v1181_v44 = vmul.f32 %v2275_v63, %v2759_v29  ;;  %v1190_v29 = vmul.f32 %v2732_v60, %v1182_v2 }
 0x367   :  { %2205 = vmatprep.subr.bf16.mxu1 %v2204_v50  ;;  %v3095_v63 = vadd.f32 %v2739_v5, %v1192_v52 }
 0x368   :  { %v2283_v30 = vpop.eup %2282  ;;  %v1189_v43 = vmul.f32 %v2732_v60, %v1181_v44  ;;  %v3069_v54 = vadd.f32 %v2739_v5, %v1190_v29 }
 0x369   :  { %2032 = vmatmul.mubr.msk.f32.gmra.mrb[22].mxu1 %vm600_vm4, %v3030_v40  ;;  %v2285_v55 = vpop.eup %2284 }
 0x36a   :  { %2207 = vmatpush3.bf16.msra.mxu1 %v2204_v50  ;;  %2034 = vmatprep.mubr.msk.f32.mxu1 %vm600_vm4, %v3035_v62  ;;  %v1186_v50 = vmul.f32 %v2283_v30, %v2804_v4  ;;  %v2287_v32 = vpop.eup %2286  ;;  %v1185_v21 = vmul.f32 %v2285_v55, %v2796_v61  ;;  %v3083_v4 = vadd.f32 %v2739_v5, %v1189_v43 }
 0x36b   :  { %2048 = vmatprep.subr.mxu1 %v599_v9  ;;  %v2289_v49 = vpop.eup %2288  ;;  %v1188_v61 = vmul.f32 %v2287_v32, %v2818_v15  ;;  %v3106_v15 = vld [vmem:[%s3517_s8 + $0x18] sm:$0xff]  ;;  %v3537_v32 = vmov 0.0  }
 0x36c   :  { %v1194_v19 = vmul.f32 %v2732_v60, %v1186_v50  ;;  %v1187_v48 = vmul.f32 %v2289_v49, %v2811_v0  ;;  %v1193_v1 = vmul.f32 %v2732_v60, %v1185_v21  ;;  %v3116_v0 = vld [vmem:[%s3517_s8 + $0x20] sm:$0xff] }
 0x36d   :  { %2035 = vmatmul.mubr.msk.f32.gmra.mrb[24].mxu1 %vm600_vm4, %v3046_v51  ;;  %v1196_v3 = vmul.f32 %v2732_v60, %v1188_v61 }
 0x36e   :  { %2049 = vmatpush3.msra.mxu1 %v599_v9  ;;  %2037 = vmatprep.mubr.msk.f32.mxu1 %vm600_vm4, %v3051_v47  ;;  %v1191_v9 = vmul.f32 %v2732_v60, %v1183_v25  ;;  %v3121_v44 = vadd.f32 %v2739_v5, %v1194_v19  ;;  %v3134_v29 = vadd.f32 %v2739_v5, %v1193_v1  ;;  %v3141_v25 = vld [vmem:[%s3517_s8 + $0x30] sm:$0xff] }
 0x36f   :  { %2208 = vmatprep.subr.bf16.mxu1 %v3536_v13  ;;  %v1195_v30 = vmul.f32 %v2732_v60, %v1187_v48  ;;  %v3146_v55 = vadd.f32 %v2739_v5, %v1196_v3  ;;  %v3155_v60 = vld [vmem:[%s3517_s8 + $0x38] sm:$0xff] }
 0x370   :  { %v3109_v46 = vadd.f32 %v2739_v5, %v1191_v9  ;;  %v2215_v43 = vpack.c.bf16 %v3121_v44, %v3134_v29 }
 0x371   :  { %2038 = vmatmul.mubr.msk.f32.gmra.mrb[26].mxu1 %vm600_vm4, %v3063_v37  ;;  %v3158_v50 = vadd.f32 %v2739_v5, %v1195_v30 }
 0x372   :  { %2050 = vmatprep.mubr.msk.f32.mxu1 %vm600_vm4, %v2935_v45  ;;  %v2209_v45 = vpack.c.bf16 %v3069_v54, %v3083_v4  ;;  %v2212_v2 = vpack.c.bf16 %v3095_v63, %v3109_v46 }
 0x373   :  { %v2218_v52 = vpack.c.bf16 %v3146_v55, %v3158_v50 }
 0x375   :  { %2051 = vmatmul.mubr.msk.f32.vlgmr.msra.gmra.mrb[28].mxu1 %vm600_vm4, %v3080_v8 }
 0x376   :  { %2210 = vmatpush3.bf16.msra.mxu1 %v2209_v45  ;;  %2053 = vmatprep.mubr.msk.f32.mxu1 %vm600_vm4, %v3089_v53 }
 0x377   :  { %2211 = vmatprep.subr.bf16.mxu1 %v3536_v13 }
 0x379   :  { %2054 = vmatmul.mubr.msk.f32.gmra.mrb[30].mxu1 %vm600_vm4, %v3106_v15 }
 0x37a   :  { %2213 = vmatpush3.bf16.msra.mxu1 %v2212_v2  ;;  %2056 = vmatprep.mubr.msk.f32.mxu1 %vm600_vm4, %v3116_v0 }
 0x37b   :  { %2214 = vmatprep.subr.bf16.mxu1 %v3536_v13 }
 0x37d   :  { %2057 = vmatmul.mubr.msk.f32.gmra.mrb[32].mxu1 %vm600_vm4, %v3131_v7 }
 0x37e   :  { %2216 = vmatpush3.bf16.msra.mxu1 %v2215_v43  ;;  %2059 = vmatprep.mubr.msk.f32.mxu1 %vm600_vm4, %v3141_v25 }
 0x37f   :  { %2217 = vmatprep.subr.bf16.mxu1 %v3536_v13 }
 0x381   :  { %2060 = vmatmul.mubr.msk.f32.gmra.mrb[34].mxu1 %vm600_vm4, %v3155_v60 }
 0x382   :  { %2219 = vmatpush3.bf16.msra.mxu1 %v2218_v52  ;;  %2078 = vmatprep.mubr.msk.f32.mxu1 %vm2324_vm2, %v3537_v32 }
 0x383   :  { %2220 = vmatprep.subr.bf16.mxu1 %v3536_v13 }
 0x385   :  { %2079 = vmatmul.mubr.msk.f32.vlgmr.msra.gmra.mrb[36].mxu1 %vm354_vm3, %v2835_v42 }
 0x386   :  { %2222 = vmatpush3.bf16.msra.mxu1 %v2209_v45  ;;  %2081 = vmatprep.mubr.msk.f32.mxu1 %vm2324_vm2, %v3537_v32 }
 0x387   :  { %2223 = vmatprep.subr.bf16.mxu1 %v3536_v13 }
 0x389   :  { %2082 = vmatmul.mubr.msk.f32.gmra.mrb[38].mxu1 %vm354_vm3, %v2846_v20 }
 0x38a   :  { %2225 = vmatpush3.bf16.msra.mxu1 %v2212_v2  ;;  %2084 = vmatprep.mubr.msk.f32.mxu1 %vm2324_vm2, %v3537_v32 }
 0x38b   :  { %2226 = vmatprep.subr.bf16.mxu1 %v3536_v13 }
 0x38d   :  { %2085 = vmatmul.mubr.msk.f32.gmra.mrb[40].mxu1 %vm354_vm3, %v2856_v14 }
 0x38e   :  { %2228 = vmatpush3.bf16.msra.mxu1 %v2215_v43  ;;  %2087 = vmatprep.mubr.msk.f32.mxu1 %vm2324_vm2, %v3537_v32 }
 0x38f   :  { %2229 = vmatprep.subr.bf16.mxu1 %v3536_v13 }
 0x391   :  { %2088 = vmatmul.mubr.msk.f32.gmra.mrb[42].mxu1 %vm354_vm3, %v2866_v22 }
 0x392   :  { %2231 = vmatpush3.bf16.msra.mxu1 %v2218_v52  ;;  %2090 = vmatprep.mubr.msk.f32.mxu1 %vm2324_vm2, %v3537_v32 }
 0x395   :  { %2091 = vmatmul.mubr.msk.f32.gmra.mrb[44].mxu1 %vm354_vm3, %v2876_v24 }
 0x396   :  { %2109 = vmatprep.mubr.msk.f32.mxu1 %vm2324_vm2, %v3537_v32 }
 0x399   :  { %2110 = vmatmul.mubr.msk.f32.vlgmr.msra.gmra.mrb[46].mxu1 %vm354_vm3, %v2885_v26 }
 0x39a   :  { %2112 = vmatprep.mubr.msk.f32.mxu1 %vm2324_vm2, %v3537_v32 }
 0x39d   :  { %2113 = vmatmul.mubr.msk.f32.gmra.mrb[48].mxu1 %vm354_vm3, %v2894_v12 }
 0x39e   :  { %2115 = vmatprep.mubr.msk.f32.mxu1 %vm2324_vm2, %v3537_v32 }
 0x3a1   :  { %2116 = vmatmul.mubr.msk.f32.gmra.mrb[50].mxu1 %vm354_vm3, %v2903_v27 }
 0x3a2   :  { %2118 = vmatprep.mubr.msk.f32.mxu1 %vm2324_vm2, %v3537_v32 }
 0x3a5   :  { %2119 = vmatmul.mubr.msk.f32.gmra.mrb[52].mxu1 %vm354_vm3, %v2912_v28 }
 0x3a6   :  { %2121 = vmatprep.mubr.msk.f32.mxu1 %vm2324_vm2, %v3537_v32 }
 0x3a9   :  { %2122 = vmatmul.mubr.msk.f32.gmra.mrb[54].mxu1 %vm354_vm3, %v2921_v31 }
 0x3aa   :  { %2134 = vmatprep.mubr.msk.f32.mxu1 %vm600_vm4, %v2928_v33 }
 0x438   :  { %v2030_v5 = vpop.f32.mrb[20].mxu1 }
 0x439   :  { %v691_v42 = vpop.f32.mrb[21].mxu1 }
 0x43c   :  { %v2033_v20 = vpop.f32.mrb[22].mxu1 }
 0x43d   :  { %v701_v14 = vpop.f32.mrb[23].mxu1 }
 0x440   :  { %v2036_v22 = vpop.f32.mrb[24].mxu1 }
 0x441   :  { %v711_v24 = vpop.f32.mrb[25].mxu1 }
 0x444   :  { %v2039_v26 = vpop.f32.mrb[26].mxu1 }
 0x445   :  { %v721_v12 = vpop.f32.mrb[27].mxu1 }
 0x448   :  { %v2052_v27 = vpop.f32.mrb[28].mxu1 }
 0x449   :  { %v860_v13 = vsub.f32 %v2030_v5, %v2052_v27  ;;  %v820_v28 = vpop.f32.mrb[29].mxu1 }
 0x44a   :  { %v859_v21 = vsub.f32 %v691_v42, %v820_v28 }
 0x44b   :  { %v3212_v9 = vadd.f32 %v860_v13, %v2746_v11 }
 0x44c   :  { %v2055_v49 = vpop.f32.mrb[30].mxu1  ;;  %v3215_v31 = vadd.f32 %v859_v21, %v2743_v10 }
 0x44d   :  { %v862_v33 = vsub.f32 %v2033_v20, %v2055_v49  ;;  %877 = vadd.xlane.f32.xlu1 %v3212_v9  ;;  %v830_v61 = vpop.f32.mrb[31].mxu1 }
 0x44e   :  { %v861_v45 = vsub.f32 %v701_v14, %v830_v61  ;;  %875 = vadd.xlane.f32.xlu0 %v3215_v31 }
 0x44f   :  { %v3220_v19 = vadd.f32 %v862_v33, %v2765_v16 }
 0x450   :  { %v2058_v48 = vpop.f32.mrb[32].mxu1  ;;  %v3223_v1 = vadd.f32 %v861_v45, %v2762_v35 }
 0x451   :  { %v864_v11 = vsub.f32 %v2036_v22, %v2058_v48  ;;  %881 = vadd.xlane.f32.xlu1 %v3220_v19  ;;  %v840_v2 = vpop.f32.mrb[33].mxu1 }
 0x452   :  { %v863_v10 = vsub.f32 %v711_v24, %v840_v2  ;;  %879 = vadd.xlane.f32.xlu0 %v3223_v1 }
 0x453   :  { %v3228_v3 = vadd.f32 %v864_v11, %v2793_v58 }
 0x454   :  { %v2061_v30 = vpop.f32.mrb[34].mxu1  ;;  %v3231_v43 = vadd.f32 %v863_v10, %v2790_v57 }
 0x455   :  { %v866_v16 = vsub.f32 %v2039_v26, %v2061_v30  ;;  %885 = vadd.xlane.f32.xlu1 %v3228_v3  ;;  %v850_v52 = vpop.f32.mrb[35].mxu1 }
 0x456   :  { %v865_v35 = vsub.f32 %v721_v12, %v850_v52  ;;  %883 = vadd.xlane.f32.xlu0 %v3231_v43 }
 0x457   :  { %v3236_v32 = vadd.f32 %v866_v16, %v2826_v41 }
 0x458   :  { %v1271_v5 = vpop.f32.mrb[36].mxu1  ;;  %v3239_v42 = vadd.f32 %v865_v35, %v2823_v17 }
 0x459   :  { %889 = vadd.xlane.f32.xlu1 %v3236_v32  ;;  %v2080_v58 = vpop.f32.mrb[37].mxu1  ;;  %v1390_v21 = vmul.f32 %v1271_v5, %v2944_v56  ;;  %v1405_v17 = vmul.f32 %v1271_v5, %v2949_v23 }
 0x45a   :  { %887 = vadd.xlane.f32.xlu0 %v3239_v42 }
 0x45c   :  { %v1276_v57 = vpop.f32.mrb[38].mxu1 }
 0x45d   :  { %v2083_v20 = vpop.f32.mrb[39].mxu1  ;;  %v1391_v10 = vmul.f32 %v1276_v57, %v2958_v6  ;;  %v1406_v30 = vmul.f32 %v1276_v57, %v2963_v39 }
 0x460   :  { %v1281_v14 = vpop.f32.mrb[40].mxu1 }
 0x461   :  { %v2086_v22 = vpop.f32.mrb[41].mxu1 }
 0x462   :  { %v3538_v22 = vld [vmem:[#allocation2_spill] sm:$0xff] }
 0x464   :  { %v1286_v24 = vpop.f32.mrb[42].mxu1 }
 0x465   :  { %v2089_v26 = vpop.f32.mrb[43].mxu1 }
 0x466   :  { %v3539_v26 = vld [vmem:[#allocation3_spill] sm:$0xff] }
 0x468   :  { %v1291_v12 = vpop.f32.mrb[44].mxu1 }
 0x469   :  { %v2092_v27 = vpop.f32.mrb[45].mxu1 }
 0x46a   :  { %v1407_v27 = vmul.f32 %v1281_v14, %v3539_v26 }
 0x46c   :  { %v1361_v13 = vpop.f32.mrb[46].mxu1 }
 0x46d   :  { %v1385_v41 = vsub.f32 0.0, %v1361_v13  ;;  %v2111_v28 = vpop.f32.mrb[47].mxu1 }
 0x46f   :  { %v1395_v49 = vmul.f32 %v1385_v41, %v2949_v23  ;;  %v1410_v33 = vmul.f32 %v1385_v41, %v2944_v56  ;;  %v1392_v56 = vmul.f32 %v1281_v14, %v3538_v22 }
 0x470   :  { %v1366_v61 = vpop.f32.mrb[48].mxu1 }
 0x471   :  { %v1400_v45 = vsub.f32 %v1390_v21, %v1395_v49  ;;  %v1415_v48 = vadd.f32 %v1410_v33, %v1405_v17  ;;  %v1386_v11 = vsub.f32 0.0, %v1366_v61  ;;  %v2114_v2 = vpop.f32.mrb[49].mxu1  ;;  %v1393_v33 = vmul.f32 %v1286_v24, %v2986_v18  ;;  %v3540_v61 = vld [vmem:[#allocation4_spill] sm:$0xff] }
 0x473   :  { %v1396_v16 = vmul.f32 %v1386_v11, %v2963_v39  ;;  %v1411_v52 = vmul.f32 %v1386_v11, %v2958_v6  ;;  %v1408_v11 = vmul.f32 %v1286_v24, %v3540_v61 }
 0x474   :  { %v1371_v35 = vpop.f32.mrb[50].mxu1 }
 0x475   :  { %v1401_v58 = vsub.f32 %v1391_v10, %v1396_v16  ;;  %v1416_v5 = vadd.f32 %v1411_v52, %v1406_v30  ;;  %v1387_v20 = vsub.f32 0.0, %v1371_v35  ;;  %v2117_v23 = vpop.f32.mrb[51].mxu1  ;;  %v1394_v52 = vmul.f32 %v1291_v12, %v2998_v59 }
 0x476   :  { %v1409_v35 = vmul.f32 %v1291_v12, %v3003_v38 }
 0x477   :  { %v2240_v13 = vpack.c.bf16 %v1416_v5, %v1415_v48  ;;  %v1397_v41 = vmul.f32 %v1387_v20, %v3539_v26  ;;  %v1412_v28 = vmul.f32 %v1387_v20, %v3538_v22  ;;  %v2232_v21 = vpack.c.bf16 %v1401_v58, %v1400_v45 }
 0x478   :  { %v1376_v57 = vpop.f32.mrb[52].mxu1 }
 0x479   :  { %v1402_v17 = vsub.f32 %v1392_v56, %v1397_v41  ;;  %v1417_v39 = vadd.f32 %v1412_v28, %v1407_v27  ;;  %v1388_v49 = vsub.f32 0.0, %v1376_v57  ;;  %2233 = vmatprep.subr.bf16.mxu1 %v2232_v21  ;;  %2241 = vmatprep.subr.bf16.mxu0 %v2240_v13  ;;  %v2120_v6 = vpop.f32.mrb[53].mxu1 }
 0x47a   :  { %2235 = vmatpush3.bf16.msra.mxu1 %v2232_v21  ;;  %2243 = vmatpush3.bf16.msra.mxu0 %v2240_v13 }
 0x47b   :  { %v1398_v14 = vmul.f32 %v1388_v49, %v3540_v61  ;;  %v1413_v48 = vmul.f32 %v1388_v49, %v2986_v18 }
 0x47c   :  { %v1381_v2 = vpop.f32.mrb[54].mxu1 }
 0x47d   :  { %v1403_v10 = vsub.f32 %v1393_v33, %v1398_v14  ;;  %v1418_v45 = vadd.f32 %v1413_v48, %v1408_v11  ;;  %v1389_v30 = vsub.f32 0.0, %v1381_v2  ;;  %v2123_v16 = vpop.f32.mrb[55].mxu1 }
 0x47f   :  { %v2244_v58 = vpack.c.bf16 %v1418_v45, %v1417_v39  ;;  %v1399_v5 = vmul.f32 %v1389_v30, %v3003_v38  ;;  %v1414_v20 = vmul.f32 %v1389_v30, %v2998_v59  ;;  %v2236_v23 = vpack.c.bf16 %v1403_v10, %v1402_v17 }
 0x481   :  { %v1419_v24 = vadd.f32 %v1414_v20, %v1409_v35  ;;  %2237 = vmatprep.subr.bf16.mxu1 %v2236_v23  ;;  %2245 = vmatprep.subr.bf16.mxu0 %v2244_v58  ;;  %v1404_v22 = vsub.f32 %v1394_v52, %v1399_v5 }
 0x482   :  { %2239 = vmatpush3.bf16.msra.mxu1 %v2236_v23  ;;  %2247 = vmatpush3.bf16.msra.mxu0 %v2244_v58 }
 0x483   :  { %2132 = vmatprep.subr.mxu1 %v1404_v22  ;;  %2154 = vmatprep.subr.mxu0 %v1419_v24 }
 0x486   :  { %2133 = vmatpush3.msra.mxu1 %v1404_v22  ;;  %2155 = vmatpush3.msra.mxu0 %v1419_v24 }
 0x487   :  { %2135 = vmatmul.mubr.msk.f32.vlgmr.msra.gmra.mrb[56].mxu1 %vm600_vm4, %v3016_v36  ;;  %2248 = vmatprep.subr.bf16.mxu1 %v2240_v13 }
 0x488   :  { %2157 = vmatmul.mubr.msk.f32.vlgmr.msra.gmra.mrb[32].mxu0 %vm600_vm4, %v3080_v8  ;;  %2251 = vmatpush3.bf16.msra.mxu1 %v2240_v13 }
 0x489   :  { %2249 = vmatprep.subr.bf16.mxu1 %v2244_v58  ;;  %2137 = vmatprep.mubr.msk.f32.mxu1 %vm600_vm4, %v3021_v34 }
 0x48a   :  { %2159 = vmatprep.mubr.msk.f32.mxu0 %vm600_vm4, %v3089_v53 }
 0x48b   :  { %2138 = vmatmul.mubr.msk.f32.gmra.mrb[58].mxu1 %vm600_vm4, %v3030_v40 }
 0x48c   :  { %2160 = vmatmul.mubr.msk.f32.gmra.mrb[34].mxu0 %vm600_vm4, %v3106_v15  ;;  %2252 = vmatpush3.bf16.msra.mxu1 %v2244_v58 }
 0x48d   :  { %2250 = vmatprep.subr.mxu1 %v1419_v24  ;;  %2140 = vmatprep.mubr.msk.f32.mxu1 %vm600_vm4, %v3035_v62 }
 0x48e   :  { %2162 = vmatprep.mubr.msk.f32.mxu0 %vm600_vm4, %v3116_v0 }
 0x48f   :  { %2141 = vmatmul.mubr.msk.f32.gmra.mrb[60].mxu1 %vm600_vm4, %v3046_v51 }
 0x490   :  { %2163 = vmatmul.mubr.msk.f32.gmra.mrb[36].mxu0 %vm600_vm4, %v3131_v7  ;;  %2253 = vmatpush3.msra.mxu1 %v1419_v24 }
 0x491   :  { %2143 = vmatprep.mubr.msk.f32.mxu1 %vm600_vm4, %v3051_v47 }
 0x493   :  { %2144 = vmatmul.mubr.msk.f32.gmra.mrb[62].mxu1 %vm600_vm4, %v3063_v37 }
 0x494   :  { %2165 = vmatprep.mubr.msk.f32.mxu1 %vm600_vm4, %v3141_v25 }
 0x497   :  { %2166 = vmatmul.mubr.msk.f32.vlgmr.msra.gmra.mrb[64].mxu1 %vm600_vm4, %v3155_v60 }
 0x4da   :  { %v878_v53 = vpop.xlane.xlu1 %877 }
 0x4db   :  { %v876_v7 = vpop.xlane.xlu0 %875 }
 0x4dc   :  { %v891_v39 = vmul.f32 0.0078125, %v876_v7 }
 0x4de   :  { %v882_v41 = vpop.xlane.xlu1 %881  ;;  %v3322_v2 = vsub.f32 %v3215_v31, %v891_v39 }
 0x4df   :  { %v880_v57 = vpop.xlane.xlu0 %879  ;;  %v894_v14 = vmul.f32 0.0078125, %v882_v41 }
 0x4e0   :  { %v893_v10 = vmul.f32 0.0078125, %v880_v57 }
 0x4e1   :  { %v3330_v30 = vsub.f32 %v3220_v19, %v894_v14 }
 0x4e2   :  { %v886_v61 = vpop.xlane.xlu1 %885 }
 0x4e3   :  { %v884_v48 = vpop.xlane.xlu0 %883  ;;  %v910_v5 = vmul.f32 %v3330_v30, %v3330_v30 }
 0x4e4   :  { %v895_v31 = vmul.f32 0.0078125, %v884_v48 }
 0x4e6   :  { %v890_v52 = vpop.xlane.xlu1 %889  ;;  %v3345_v20 = vsub.f32 %v3231_v43, %v895_v31 }
 0x4e7   :  { %v888_v35 = vpop.xlane.xlu0 %887  ;;  %v898_v19 = vmul.f32 0.0078125, %v890_v52 }
 0x4e9   :  { %v3350_v24 = vsub.f32 %v3236_v32, %v898_v19 }
 0x4eb   :  { %v914_v43 = vmul.f32 %v3350_v24, %v3350_v24 }
 0x55a   :  { %v2136_v18 = vpop.f32.mrb[56].mxu1 }
 0x55b   :  { %v2158_v59 = vpop.f32.mrb[32].mxu0  ;;  %v1486_v38 = vpop.f32.mrb[57].mxu1 }
 0x55c   :  { %v1631_v36 = vsub.f32 %v2136_v18, %v2158_v59  ;;  %v1591_v34 = vpop.f32.mrb[33].mxu0  ;;  %v911_v18 = vmul.f32 %v3345_v20, %v3345_v20 }
 0x55d   :  { %v1630_v40 = vsub.f32 %v1486_v38, %v1591_v34 }
 0x55e   :  { %v2139_v62 = vpop.f32.mrb[58].mxu1  ;;  %v3292_v51 = vadd.f32 %v1631_v36, %v3069_v54 }
 0x55f   :  { %v2161_v47 = vpop.f32.mrb[34].mxu0  ;;  %v1496_v8 = vpop.f32.mrb[59].mxu1  ;;  %v3295_v37 = vadd.f32 %v1630_v40, %v3083_v4 }
 0x560   :  { %v1633_v15 = vsub.f32 %v2139_v62, %v2161_v47  ;;  %v1601_v0 = vpop.f32.mrb[35].mxu0  ;;  %1648 = vadd.xlane.f32.xlu1 %v3292_v51 }
 0x561   :  { %v1632_v25 = vsub.f32 %v1496_v8, %v1601_v0  ;;  %1646 = vadd.xlane.f32.xlu0 %v3295_v37 }
 0x562   :  { %v2142_v60 = vpop.f32.mrb[60].mxu1  ;;  %v3300_v12 = vadd.f32 %v1633_v15, %v3095_v63 }
 0x563   :  { %v2164_v54 = vpop.f32.mrb[36].mxu0  ;;  %v1506_v56 = vpop.f32.mrb[61].mxu1  ;;  %v3303_v26 = vadd.f32 %v1632_v25, %v3109_v46  ;;  %v892_v46 = vmul.f32 0.0078125, %v878_v53 }
 0x564   :  { %v1635_v4 = vsub.f32 %v2142_v60, %v2164_v54  ;;  %v1611_v27 = vpop.f32.mrb[37].mxu0  ;;  %1652 = vadd.xlane.f32.xlu1 %v3300_v12 }
 0x565   :  { %v1634_v13 = vsub.f32 %v1506_v56, %v1611_v27  ;;  %1650 = vadd.xlane.f32.xlu0 %v3303_v26 }
 0x566   :  { %v3308_v28 = vadd.f32 %v1635_v4, %v3121_v44  ;;  %v2145_v21 = vpop.f32.mrb[62].mxu1  ;;  %v3316_v44 = vsub.f32 %v3212_v9, %v892_v46  ;;  %v896_v9 = vmul.f32 0.0078125, %v886_v61 }
 0x567   :  { %v3311_v63 = vadd.f32 %v1634_v13, %v3134_v29  ;;  %v1516_v17 = vpop.f32.mrb[63].mxu1 }
 0x568   :  { %1656 = vadd.xlane.f32.xlu1 %v3308_v28  ;;  %v908_v16 = vmul.f32 %v3316_v44, %v3316_v44  ;;  %v3340_v58 = vsub.f32 %v3228_v3, %v896_v9 }
 0x569   :  { %1654 = vadd.xlane.f32.xlu0 %v3311_v63 }
 0x56a   :  { %v2167_v49 = vpop.f32.mrb[64].mxu1  ;;  %v912_v3 = vmul.f32 %v3340_v58, %v3340_v58 }
 0x56b   :  { %v1637_v6 = vsub.f32 %v2145_v21, %v2167_v49  ;;  %v1621_v33 = vpop.f32.mrb[65].mxu1 }
 0x56c   :  { %v1636_v11 = vsub.f32 %v1516_v17, %v1621_v33 }
 0x56d   :  { %v3319_v29 = vadd.f32 %v1637_v6, %v3146_v55  ;;  %v3335_v55 = vsub.f32 %v3223_v1, %v893_v10  ;;  %v897_v1 = vmul.f32 0.0078125, %v888_v35 }
 0x56e   :  { %v3325_v45 = vadd.f32 %v1636_v11, %v3158_v50  ;;  %v907_v50 = vmul.f32 %v3322_v2, %v3322_v2 }
 0x56f   :  { %1660 = vadd.xlane.f32.xlu1 %v3319_v29  ;;  %v909_v23 = vmul.f32 %v3335_v55, %v3335_v55  ;;  %v3355_v22 = vsub.f32 %v3239_v42, %v897_v1 }
 0x570   :  { %1658 = vadd.xlane.f32.xlu0 %v3325_v45 }
 0x571   :  { %v913_v59 = vmul.f32 %v3355_v22, %v3355_v22 }
 0x573   :  { %917 = vadd.xlane.f32.xlu1 %v908_v16 }
 0x574   :  { %915 = vadd.xlane.f32.xlu0 %v907_v50 }
 0x577   :  { %921 = vadd.xlane.f32.xlu1 %v910_v5 }
 0x578   :  { %919 = vadd.xlane.f32.xlu0 %v909_v23 }
 0x57b   :  { %925 = vadd.xlane.f32.xlu1 %v912_v3 }
 0x57c   :  { %923 = vadd.xlane.f32.xlu0 %v911_v18 }
 0x57f   :  { %929 = vadd.xlane.f32.xlu1 %v914_v43 }
 0x580   :  { %927 = vadd.xlane.f32.xlu0 %v913_v59  ;;  %v3406_v59 = vld [vmem:[%s3520_s11] ss:$0 sm:$0xff] }
 0x5ed   :  { %v1649_v32 = vpop.xlane.xlu1 %1648 }
 0x5ee   :  { %v1663_v38 = vmul.f32 0.0078125, %v1649_v32  ;;  %v1647_v36 = vpop.xlane.xlu0 %1646 }
 0x5ef   :  { %v1662_v34 = vmul.f32 0.0078125, %v1647_v36 }
 0x5f0   :  { %v3364_v42 = vsub.f32 %v3292_v51, %v1663_v38 }
 0x5f1   :  { %v3367_v40 = vsub.f32 %v3295_v37, %v1662_v34  ;;  %v1653_v62 = vpop.xlane.xlu1 %1652 }
 0x5f2   :  { %v1665_v47 = vmul.f32 0.0078125, %v1653_v62  ;;  %v1651_v8 = vpop.xlane.xlu0 %1650  ;;  %v1679_v53 = vmul.f32 %v3364_v42, %v3364_v42  ;;  %v3412_v62 = vld [vmem:[%s3521_s12] ss:$0 sm:$0xff] }
 0x5f3   :  { %v1664_v15 = vmul.f32 0.0078125, %v1651_v8  ;;  %v1678_v0 = vmul.f32 %v3367_v40, %v3367_v40 }
 0x5f4   :  { %v3374_v7 = vsub.f32 %v3300_v12, %v1665_v47  ;;  %1688 = vadd.xlane.f32.xlu1 %v1679_v53 }
 0x5f5   :  { %v3377_v51 = vsub.f32 %v3303_v26, %v1664_v15  ;;  %v1657_v25 = vpop.xlane.xlu1 %1656  ;;  %1686 = vadd.xlane.f32.xlu0 %v1678_v0 }
 0x5f6   :  { %v1667_v37 = vmul.f32 0.0078125, %v1657_v25  ;;  %v1655_v60 = vpop.xlane.xlu0 %1654  ;;  %v1681_v54 = vmul.f32 %v3374_v7, %v3374_v7 }
 0x5f7   :  { %v1666_v56 = vmul.f32 0.0078125, %v1655_v60  ;;  %v1680_v4 = vmul.f32 %v3377_v51, %v3377_v51 }
 0x5f8   :  { %v3384_v27 = vsub.f32 %v3308_v28, %v1667_v37  ;;  %1692 = vadd.xlane.f32.xlu1 %v1681_v54 }
 0x5f9   :  { %v3387_v12 = vsub.f32 %v3311_v63, %v1666_v56  ;;  %1690 = vadd.xlane.f32.xlu0 %v1680_v4 }
 0x5fa   :  { %v1683_v26 = vmul.f32 %v3384_v27, %v3384_v27 }
 0x5fb   :  { %v1682_v13 = vmul.f32 %v3387_v12, %v3387_v12 }
 0x5fc   :  { %1696 = vadd.xlane.f32.xlu1 %v1683_v26  ;;  %v1661_v41 = vpop.xlane.xlu1 %1660 }
 0x5fd   :  { %v1669_v21 = vmul.f32 0.0078125, %v1661_v41  ;;  %1694 = vadd.xlane.f32.xlu0 %v1682_v13  ;;  %v1659_v57 = vpop.xlane.xlu0 %1658 }
 0x5fe   :  { %v1668_v17 = vmul.f32 0.0078125, %v1659_v57 }
 0x5ff   :  { %v3394_v28 = vsub.f32 %v3319_v29, %v1669_v21 }
 0x600   :  { %v3397_v46 = vsub.f32 %v3325_v45, %v1668_v17  ;;  %v918_v63 = vpop.xlane.xlu1 %917 }
 0x601   :  { %v932_v39 = vmul.f32 0.0078125, %v918_v63  ;;  %v916_v49 = vpop.xlane.xlu0 %915  ;;  %v1685_v6 = vmul.f32 %v3394_v28, %v3394_v28 }
 0x602   :  { %v931_v33 = vmul.f32 0.0078125, %v916_v49  ;;  %v1684_v61 = vmul.f32 %v3397_v46, %v3397_v46 }
 0x603   :  { %v940_v11 = vadd.f32 1e-05, %v932_v39  ;;  %1700 = vadd.xlane.f32.xlu1 %v1685_v6 }
 0x604   :  { %v939_v14 = vadd.f32 1e-05, %v931_v33  ;;  %v922_v48 = vpop.xlane.xlu1 %921  ;;  %1698 = vadd.xlane.f32.xlu0 %v1684_v61 }
 0x605   :  { %2290 = vrsqrt.f32 %v940_v11  ;;  %v934_v29 = vmul.f32 0.0078125, %v922_v48  ;;  %v920_v10 = vpop.xlane.xlu0 %919 }
 0x606   :  { %2292 = vrsqrt.f32 %v939_v14  ;;  %v933_v45 = vmul.f32 0.0078125, %v920_v10 }
 0x607   :  { %v942_v9 = vadd.f32 1e-05, %v934_v29 }
 0x608   :  { %v941_v16 = vadd.f32 1e-05, %v933_v45  ;;  %v926_v31 = vpop.xlane.xlu1 %925 }
 0x609   :  { %2294 = vrsqrt.f32 %v942_v9  ;;  %v936_v52 = vmul.f32 0.0078125, %v926_v31  ;;  %v924_v50 = vpop.xlane.xlu0 %923 }
 0x60a   :  { %2296 = vrsqrt.f32 %v941_v16  ;;  %v935_v35 = vmul.f32 0.0078125, %v924_v50 }
 0x60b   :  { %v944_v19 = vadd.f32 1e-05, %v936_v52 }
 0x60c   :  { %v943_v5 = vadd.f32 1e-05, %v935_v35  ;;  %v930_v1 = vpop.xlane.xlu1 %929 }
 0x60d   :  { %2298 = vrsqrt.f32 %v944_v19  ;;  %v938_v23 = vmul.f32 0.0078125, %v930_v1  ;;  %v928_v3 = vpop.xlane.xlu0 %927 }
 0x60e   :  { %2300 = vrsqrt.f32 %v943_v5  ;;  %v937_v18 = vmul.f32 0.0078125, %v928_v3 }
 0x60f   :  { %v2291_v43 = vpop.eup %2290  ;;  %v946_v32 = vadd.f32 1e-05, %v938_v23 }
 0x610   :  { %v2293_v38 = vpop.eup %2292  ;;  %v956_v36 = vmul.f32 %v2291_v43, %v3316_v44  ;;  %v945_v34 = vadd.f32 1e-05, %v937_v18 }
 0x611   :  { %v955_v47 = vmul.f32 %v2293_v38, %v3322_v2  ;;  %2302 = vrsqrt.f32 %v946_v32 }
 0x612   :  { %v970_v8 = vmul.f32 %v3406_v59, %v956_v36  ;;  %2304 = vrsqrt.f32 %v945_v34 }
 0x613   :  { %v2295_v53 = vpop.eup %2294  ;;  %v969_v15 = vmul.f32 %v3406_v59, %v955_v47 }
 0x614   :  { %v2297_v0 = vpop.eup %2296  ;;  %v984_v25 = vadd.f32 %v3412_v62, %v970_v8  ;;  %v958_v44 = vmul.f32 %v2295_v53, %v3330_v30 }
 0x615   :  { %v983_v37 = vadd.f32 %v3412_v62, %v969_v15  ;;  %v957_v60 = vmul.f32 %v2297_v0, %v3335_v55 }
 0x616   :  { %992 = vst [vmem:[%s3522_s13 + $0x8] sm:$0xff] %v984_v25  ;;  %v972_v2 = vmul.f32 %v3406_v59, %v958_v44 }
 0x617   :  { %v2299_v54 = vpop.eup %2298  ;;  %991 = vst [vmem:[%s3522_s13] sm:$0xff] %v983_v37  ;;  %v971_v56 = vmul.f32 %v3406_v59, %v957_v60 }
 0x618   :  { %v2301_v4 = vpop.eup %2300  ;;  %v986_v30 = vadd.f32 %v3412_v62, %v972_v2  ;;  %v960_v26 = vmul.f32 %v2299_v54, %v3340_v58 }
 0x619   :  { %v985_v55 = vadd.f32 %v3412_v62, %v971_v56  ;;  %v959_v13 = vmul.f32 %v2301_v4, %v3345_v20 }
 0x61a   :  { %994 = vst [vmem:[%s3522_s13 + $0x18] sm:$0xff] %v986_v30  ;;  %v974_v41 = vmul.f32 %v3406_v59, %v960_v26 }
 0x61b   :  { %v2303_v21 = vpop.eup %2302  ;;  %993 = vst [vmem:[%s3522_s13 + $0x10] sm:$0xff] %v985_v55  ;;  %v973_v57 = vmul.f32 %v3406_v59, %v959_v13 }
 0x61c   :  { %v2305_v17 = vpop.eup %2304  ;;  %v988_v58 = vadd.f32 %v3412_v62, %v974_v41  ;;  %v962_v63 = vmul.f32 %v2303_v21, %v3350_v24 }
 0x61d   :  { %v987_v20 = vadd.f32 %v3412_v62, %v973_v57  ;;  %v961_v39 = vmul.f32 %v2305_v17, %v3355_v22 }
 0x61e   :  { %996 = vst [vmem:[%s3522_s13 + $0x28] sm:$0xff] %v988_v58  ;;  %v976_v49 = vmul.f32 %v3406_v59, %v962_v63 }
 0x61f   :  { %995 = vst [vmem:[%s3522_s13 + $0x20] sm:$0xff] %v987_v20  ;;  %v975_v6 = vmul.f32 %v3406_v59, %v961_v39 }
 0x620   :  { %v990_v33 = vadd.f32 %v3412_v62, %v976_v49 }
 0x621   :  { %v989_v24 = vadd.f32 %v3412_v62, %v975_v6 }
 0x622   :  { %998 = vst [vmem:[%s3522_s13 + $0x38] sm:$0xff] %v990_v33 }
 0x623   :  { %997 = vst [vmem:[%s3522_s13 + $0x30] sm:$0xff] %v989_v24 }
 0x681   :  { %v1689_v22 = vpop.xlane.xlu1 %1688 }
 0x682   :  { %v1703_v61 = vmul.f32 0.0078125, %v1689_v22  ;;  %v1687_v11 = vpop.xlane.xlu0 %1686 }
 0x683   :  { %v1702_v14 = vmul.f32 0.0078125, %v1687_v11 }
 0x684   :  { %v1711_v48 = vadd.f32 1e-05, %v1703_v61 }
 0x685   :  { %v1710_v29 = vadd.f32 1e-05, %v1702_v14  ;;  %v1693_v10 = vpop.xlane.xlu1 %1692 }
 0x686   :  { %2306 = vrsqrt.f32 %v1711_v48  ;;  %v1705_v45 = vmul.f32 0.0078125, %v1693_v10  ;;  %v1691_v9 = vpop.xlane.xlu0 %1690 }
 0x687   :  { %2308 = vrsqrt.f32 %v1710_v29  ;;  %v1704_v16 = vmul.f32 0.0078125, %v1691_v9 }
 0x688   :  { %v1713_v31 = vadd.f32 1e-05, %v1705_v45 }
 0x689   :  { %v1712_v52 = vadd.f32 1e-05, %v1704_v16  ;;  %v1697_v50 = vpop.xlane.xlu1 %1696 }
 0x68a   :  { %2310 = vrsqrt.f32 %v1713_v31  ;;  %v1707_v35 = vmul.f32 0.0078125, %v1697_v50  ;;  %v1695_v19 = vpop.xlane.xlu0 %1694 }
 0x68b   :  { %2312 = vrsqrt.f32 %v1712_v52  ;;  %v1706_v5 = vmul.f32 0.0078125, %v1695_v19 }
 0x68c   :  { %v1715_v1 = vadd.f32 1e-05, %v1707_v35 }
 0x68d   :  { %v1714_v23 = vadd.f32 1e-05, %v1706_v5 }
 0x68e   :  { %2314 = vrsqrt.f32 %v1715_v1 }
 0x68f   :  { %2316 = vrsqrt.f32 %v1714_v23 }
 0x690   :  { %v2307_v3 = vpop.eup %2306  ;;  %v1701_v18 = vpop.xlane.xlu1 %1700 }
 0x691   :  { %v2309_v43 = vpop.eup %2308  ;;  %v1727_v32 = vmul.f32 %v2307_v3, %v3364_v42  ;;  %v1709_v38 = vmul.f32 0.0078125, %v1701_v18  ;;  %v1699_v36 = vpop.xlane.xlu0 %1698 }
 0x692   :  { %v1726_v34 = vmul.f32 %v2309_v43, %v3367_v40  ;;  %v1708_v47 = vmul.f32 0.0078125, %v1699_v36 }
 0x693   :  { %v1735_v8 = vmul.f32 %v3406_v59, %v1727_v32  ;;  %v1717_v53 = vadd.f32 1e-05, %v1709_v38 }
 0x694   :  { %v2311_v15 = vpop.eup %2310  ;;  %v1734_v0 = vmul.f32 %v3406_v59, %v1726_v34  ;;  %v1716_v25 = vadd.f32 1e-05, %v1708_v47 }
 0x695   :  { %v2313_v44 = vpop.eup %2312  ;;  %v1743_v37 = vadd.f32 %v3412_v62, %v1735_v8  ;;  %v1729_v60 = vmul.f32 %v2311_v15, %v3374_v7  ;;  %2318 = vrsqrt.f32 %v1717_v53 }
 0x696   :  { %v1742_v42 = vadd.f32 %v3412_v62, %v1734_v0  ;;  %v1728_v2 = vmul.f32 %v2313_v44, %v3377_v51  ;;  %2320 = vrsqrt.f32 %v1716_v25 }
 0x697   :  { %1845 = vst [vmem:[%s3522_s13 + $0x48] sm:$0xff] %v1743_v37  ;;  %v1737_v40 = vmul.f32 %v3406_v59, %v1729_v60 }
 0x698   :  { %v2315_v54 = vpop.eup %2314  ;;  %1844 = vst [vmem:[%s3522_s13 + $0x40] sm:$0xff] %v1742_v42  ;;  %v1736_v56 = vmul.f32 %v3406_v59, %v1728_v2 }
 0x699   :  { %v2317_v7 = vpop.eup %2316  ;;  %v1745_v4 = vadd.f32 %v3412_v62, %v1737_v40  ;;  %v1731_v30 = vmul.f32 %v2315_v54, %v3384_v27 }
 0x69a   :  { %v1744_v51 = vadd.f32 %v3412_v62, %v1736_v56  ;;  %v1730_v26 = vmul.f32 %v2317_v7, %v3387_v12 }
 0x69b   :  { %1847 = vst [vmem:[%s3522_s13 + $0x58] sm:$0xff] %v1745_v4  ;;  %v1739_v55 = vmul.f32 %v3406_v59, %v1731_v30 }
 0x69c   :  { %1846 = vst [vmem:[%s3522_s13 + $0x50] sm:$0xff] %v1744_v51  ;;  %v1738_v13 = vmul.f32 %v3406_v59, %v1730_v26 }
 0x69d   :  { %v1747_v41 = vadd.f32 %v3412_v62, %v1739_v55 }
 0x69e   :  { %v1746_v27 = vadd.f32 %v3412_v62, %v1738_v13 }
 0x69f   :  { %v2319_v21 = vpop.eup %2318  ;;  %1849 = vst [vmem:[%s3522_s13 + $0x68] sm:$0xff] %v1747_v41 }
 0x6a0   :  { %v2321_v12 = vpop.eup %2320  ;;  %1848 = vst [vmem:[%s3522_s13 + $0x60] sm:$0xff] %v1746_v27  ;;  %v1733_v57 = vmul.f32 %v2319_v21, %v3394_v28 }
 0x6a1   :  { %v1732_v17 = vmul.f32 %v2321_v12, %v3397_v46 }
 0x6a2   :  { %v1741_v58 = vmul.f32 %v3406_v59, %v1733_v57 }
 0x6a3   :  { %v1740_v63 = vmul.f32 %v3406_v59, %v1732_v17 }
 0x6a4   :  { %v1749_v20 = vadd.f32 %v3412_v62, %v1741_v58 }
 0x6a5   :  { %v1748_v39 = vadd.f32 %v3412_v62, %v1740_v63 }
 0x6a6   :  { %1851 = vst [vmem:[%s3522_s13 + $0x78] sm:$0xff] %v1749_v20 }
 0x6a7   :  { %1850 = vst [vmem:[%s3522_s13 + $0x70] sm:$0xff] %v1748_v39 }

// kernel: fsru_forward.4
= control target key start
LH: loop header
LB: loop body
LE: loop exit
PB: predicated region body
PF: predicated region fallthrough
CT: control target
= control target key end

     0   :  { %vm1350_vm0 = vmmov 0   ;;  %vm345_vm1 = vcmask 1043456   ;;  %vm341_vm2 = vcmask 31744   ;;  %vm499_vm3 = vcmask 64512   ;;  %s2037_s1 = inlined_call_operand.vmem [shape: f32[768,128], index: 1, kind: input, shape index: {}]   ;;  %s2038_s0 = inlined_call_operand.vmem [shape: f32[2,4,768], index: 0, kind: input, shape index: {}]   ;;  %s2039_s2 = inlined_call_operand.vmem [shape: f32[1,128], index: 2, kind: input, shape index: {}, may-alias: {2,11}]   ;;  %s2040_s3 = inlined_call_operand.vmem [shape: f32[4,128], index: 3, kind: input, shape index: {}]   ;;  %s2041_s4 = inlined_call_operand.vmem [shape: f32[8,4], index: 4, kind: input, shape index: {}]   ;;  %s2042_s5 = inlined_call_operand.vmem [shape: f32[8,4], index: 5, kind: input, shape index: {}]   ;;  %s2043_s8 = inlined_call_operand.vmem [shape: f32[8,128], index: 8, kind: input, shape index: {}]   ;;  %s2044_s9 = inlined_call_operand.vmem [shape: f32[8,128], index: 9, kind: input, shape index: {}]   ;;  %s2045_s6 = inlined_call_operand.vmem [shape: f32[4,8], index: 6, kind: input, shape index: {}]   ;;  %s2046_s7 = inlined_call_operand.vmem [shape: f32[4,8], index: 7, kind: input, shape index: {}]   ;;  %s2047_s10 = inlined_call_operand.vmem [shape: f32[1,128], index: 10, kind: input, shape index: {}]   ;;  %s2048_s11 = inlined_call_operand.vmem [shape: f32[1,128], index: 11, kind: input, shape index: {}, may-alias: {2,11}]   ;;  %s2049_s12 = inlined_call_operand.vmem [shape: f32[2,4,128], index: 12, kind: output, shape index: {}]  }
   0x1   :  { %v58_v0 = vld [vmem:[%s2037_s1 + $0x80] sm:$0xff]  ;;  %v59_v1 = vld [vmem:[%s2037_s1 + $0x88] sm:$0xff]  ;;  %v60_v11 = vld [vmem:[%s2037_s1 + $0x90] sm:$0xff] }
   0x2   :  { %v42_v2 = vld [vmem:[%s2037_s1] sm:$0xff]  ;;  %v1425_v3 = vpack.c.bf16 %v59_v1, %v58_v0  ;;  %v43_v4 = vld [vmem:[%s2037_s1 + $0x8] sm:$0xff]  ;;  %v61_v13 = vld [vmem:[%s2037_s1 + $0x98] sm:$0xff] }
   0x3   :  { %v90_v5 = vld [vmem:[%s2037_s1 + $0x180] sm:$0xff]  ;;  %v91_v6 = vld [vmem:[%s2037_s1 + $0x188] sm:$0xff]  ;;  %v1436_v7 = vpack.c.bf16 %v43_v4, %v42_v2  ;;  %v44_v14 = vld [vmem:[%s2037_s1 + $0x10] sm:$0xff]  ;;  %v1463_v16 = vpack.c.bf16 %v61_v13, %v60_v11 }
   0x4   :  { %v1438_v8 = vpack.c.bf16 %v91_v6, %v90_v5  ;;  %v74_v9 = vld [vmem:[%s2037_s1 + $0x100] sm:$0xff]  ;;  %v75_v10 = vld [vmem:[%s2037_s1 + $0x108] sm:$0xff]  ;;  %1149 = vmatprep.subr.bf16.mxu0 %v1425_v3  ;;  %v45_v15 = vld [vmem:[%s2037_s1 + $0x18] sm:$0xff] }
   0x5   :  { %v1450_v12 = vpack.c.bf16 %v75_v10, %v74_v9  ;;  %1150 = vmatpush3.bf16.msra.mxu0 %v1436_v7  ;;  %v1465_v17 = vpack.c.bf16 %v45_v15, %v44_v14  ;;  %v92_v18 = vld [vmem:[%s2037_s1 + $0x190] sm:$0xff]  ;;  %v93_v19 = vld [vmem:[%s2037_s1 + $0x198] sm:$0xff]  ;;  %v62_v23 = vld [vmem:[%s2037_s1 + $0xa0] sm:$0xff] }
   0x6   :  { %1171 = vmatprep.subr.bf16.mxu1 %v1438_v8  ;;  %v76_v20 = vld [vmem:[%s2037_s1 + $0x110] sm:$0xff]  ;;  %v1477_v21 = vpack.c.bf16 %v93_v19, %v92_v18  ;;  %v77_v22 = vld [vmem:[%s2037_s1 + $0x118] sm:$0xff]  ;;  %v63_v24 = vld [vmem:[%s2037_s1 + $0xa8] sm:$0xff]  ;;  %1151 = vmatprep.subr.bf16.mxu0 %v1463_v16 }
   0x7   :  { %1172 = vmatpush3.bf16.msra.mxu1 %v1450_v12  ;;  %v1489_v25 = vpack.c.bf16 %v77_v22, %v76_v20  ;;  %v1491_v26 = vpack.c.bf16 %v63_v24, %v62_v23  ;;  %v46_v27 = vld [vmem:[%s2037_s1 + $0x20] sm:$0xff]  ;;  %v47_v28 = vld [vmem:[%s2037_s1 + $0x28] sm:$0xff]  ;;  %v64_v35 = vld [vmem:[%s2037_s1 + $0xb0] sm:$0xff] }
   0x8   :  { %v94_v29 = vld [vmem:[%s2037_s1 + $0x1a0] sm:$0xff]  ;;  %1173 = vmatprep.subr.bf16.mxu1 %v1477_v21  ;;  %v95_v30 = vld [vmem:[%s2037_s1 + $0x1a8] sm:$0xff]  ;;  %v1513_v33 = vpack.c.bf16 %v47_v28, %v46_v27  ;;  %v65_v36 = vld [vmem:[%s2037_s1 + $0xb8] sm:$0xff] }
   0x9   :  { %v78_v31 = vld [vmem:[%s2037_s1 + $0x120] sm:$0xff]  ;;  %v79_v32 = vld [vmem:[%s2037_s1 + $0x128] sm:$0xff]  ;;  %1152 = vmatpush3.bf16.msra.mxu0 %v1465_v17  ;;  %v1515_v34 = vpack.c.bf16 %v95_v30, %v94_v29  ;;  %v48_v37 = vld [vmem:[%s2037_s1 + $0x30] sm:$0xff]  ;;  %v1530_v39 = vpack.c.bf16 %v65_v36, %v64_v35 }
   0xa   :  { %1153 = vmatprep.subr.bf16.mxu0 %v1491_v26  ;;  %v1528_v38 = vpack.c.bf16 %v79_v32, %v78_v31  ;;  %v49_v40 = vld [vmem:[%s2037_s1 + $0x38] sm:$0xff]  ;;  %v96_v41 = vld [vmem:[%s2037_s1 + $0x1b0] sm:$0xff]  ;;  %v66_v46 = vld [vmem:[%s2037_s1 + $0xc0] sm:$0xff] }
   0xb   :  { %1174 = vmatpush3.bf16.msra.mxu1 %v1489_v25  ;;  %v97_v42 = vld [vmem:[%s2037_s1 + $0x1b8] sm:$0xff]  ;;  %v80_v44 = vld [vmem:[%s2037_s1 + $0x130] sm:$0xff]  ;;  %v67_v47 = vld [vmem:[%s2037_s1 + $0xc8] sm:$0xff]  ;;  %v1557_v48 = vpack.c.bf16 %v49_v40, %v48_v37 }
   0xc   :  { %1175 = vmatprep.subr.bf16.mxu1 %v1515_v34  ;;  %v1542_v43 = vpack.c.bf16 %v97_v42, %v96_v41  ;;  %v81_v45 = vld [vmem:[%s2037_s1 + $0x138] sm:$0xff]  ;;  %v98_v49 = vld [vmem:[%s2037_s1 + $0x1c0] sm:$0xff]  ;;  %v99_v50 = vld [vmem:[%s2037_s1 + $0x1c8] sm:$0xff]  ;;  %v1569_v52 = vpack.c.bf16 %v67_v47, %v66_v46 }
   0xd   :  { %1154 = vmatpush3.bf16.msra.mxu0 %v1513_v33  ;;  %v1567_v51 = vpack.c.bf16 %v81_v45, %v80_v44  ;;  %v50_v53 = vld [vmem:[%s2037_s1 + $0x40] sm:$0xff]  ;;  %v51_v54 = vld [vmem:[%s2037_s1 + $0x48] sm:$0xff]  ;;  %v1581_v56 = vpack.c.bf16 %v99_v50, %v98_v49  ;;  %v68_v58 = vld [vmem:[%s2037_s1 + $0xd0] sm:$0xff] }
   0xe   :  { %1155 = vmatprep.subr.bf16.mxu0 %v1530_v39  ;;  %v82_v55 = vld [vmem:[%s2037_s1 + $0x140] sm:$0xff]  ;;  %v83_v57 = vld [vmem:[%s2037_s1 + $0x148] sm:$0xff]  ;;  %v69_v59 = vld [vmem:[%s2037_s1 + $0xd8] sm:$0xff]  ;;  %v1599_v62 = vpack.c.bf16 %v51_v54, %v50_v53 }
   0xf   :  { %1176 = vmatpush3.bf16.msra.mxu1 %v1528_v38  ;;  %v100_v60 = vld [vmem:[%s2037_s1 + $0x1d0] sm:$0xff]  ;;  %v101_v61 = vld [vmem:[%s2037_s1 + $0x1d8] sm:$0xff]  ;;  %v1603_v63 = vpack.c.bf16 %v83_v57, %v82_v55  ;;  %v1605_v0 = vpack.c.bf16 %v69_v59, %v68_v58  ;;  %v70_v9 = vld [vmem:[%s2037_s1 + $0xe0] sm:$0xff] }
  0x10   :  { %1177 = vmatprep.subr.bf16.mxu1 %v1542_v43  ;;  %v52_v1 = vld [vmem:[%s2037_s1 + $0x50] sm:$0xff]  ;;  %v53_v2 = vld [vmem:[%s2037_s1 + $0x58] sm:$0xff]  ;;  %v1617_v5 = vpack.c.bf16 %v101_v61, %v100_v60  ;;  %v71_v10 = vld [vmem:[%s2037_s1 + $0xe8] sm:$0xff] }
  0x11   :  { %1156 = vmatpush3.bf16.msra.mxu0 %v1557_v48  ;;  %v84_v4 = vld [vmem:[%s2037_s1 + $0x150] sm:$0xff]  ;;  %v85_v6 = vld [vmem:[%s2037_s1 + $0x158] sm:$0xff]  ;;  %v102_v11 = vld [vmem:[%s2037_s1 + $0x1e0] sm:$0xff]  ;;  %v1635_v14 = vpack.c.bf16 %v53_v2, %v52_v1  ;;  %v1647_v20 = vpack.c.bf16 %v71_v10, %v70_v9 }
  0x12   :  { %1157 = vmatprep.subr.bf16.mxu0 %v1569_v52  ;;  %v103_v13 = vld [vmem:[%s2037_s1 + $0x1e8] sm:$0xff]  ;;  %v54_v15 = vld [vmem:[%s2037_s1 + $0x60] sm:$0xff]  ;;  %v1645_v19 = vpack.c.bf16 %v85_v6, %v84_v4  ;;  %v72_v29 = vld [vmem:[%s2037_s1 + $0xf0] sm:$0xff] }
  0x13   :  { %1178 = vmatpush3.bf16.msra.mxu1 %v1567_v51  ;;  %v196_v18 = vld [vmem:[%s2038_s0] sm:$0xff]  ;;  %v55_v22 = vld [vmem:[%s2037_s1 + $0x68] sm:$0xff]  ;;  %v1659_v28 = vpack.c.bf16 %v103_v13, %v102_v11  ;;  %v73_v30 = vld [vmem:[%s2037_s1 + $0xf8] sm:$0xff] }
  0x14   :  { %1179 = vmatprep.subr.bf16.mxu1 %v1581_v56  ;;  %v86_v23 = vld [vmem:[%s2037_s1 + $0x160] sm:$0xff]  ;;  %v87_v24 = vld [vmem:[%s2037_s1 + $0x168] sm:$0xff]  ;;  %v202_v27 = vcombine.high %v196_v18, %v196_v18  ;;  %v104_v32 = vld [vmem:[%s2037_s1 + $0x1f0] sm:$0xff]  ;;  %v1677_v40 = vpack.c.bf16 %v55_v22, %v54_v15  ;;  %v1683_v42 = vpack.c.bf16 %v73_v30, %v72_v29  ;;  %v208_v2 = vpack.c.bf16 %v196_v18, %v196_v18 }
  0x15   :  { %1158 = vmatpush3.bf16.msra.mxu0 %v1599_v62  ;;  %v197_v31 = vld [vmem:[%s2038_s0 + $0x8] sm:$0xff]  ;;  %v105_v35 = vld [vmem:[%s2037_s1 + $0x1f8] sm:$0xff]  ;;  %v1681_v41 = vpack.c.bf16 %v87_v24, %v86_v23  ;;  %v56_v44 = vld [vmem:[%s2037_s1 + $0x70] sm:$0xff] }
  0x16   :  { %1159 = vmatprep.subr.bf16.mxu0 %v1605_v0  ;;  %v209_v36 = vpack.c.bf16 %v202_v27, %v202_v27  ;;  %v203_v37 = vcombine.high %v197_v31, %v197_v31  ;;  %v57_v45 = vld [vmem:[%s2037_s1 + $0x78] sm:$0xff]  ;;  %v88_v46 = vld [vmem:[%s2037_s1 + $0x170] sm:$0xff]  ;;  %v1695_v49 = vpack.c.bf16 %v105_v35, %v104_v32  ;;  %v122_v53 = vld [vmem:[%s2037_s1 + $0x280] sm:$0xff]  ;;  %v210_v4 = vpack.c.bf16 %v197_v31, %v197_v31 }
  0x17   :  { %1180 = vmatpush3.bf16.msra.mxu1 %v1603_v63  ;;  %v89_v50 = vld [vmem:[%s2037_s1 + $0x178] sm:$0xff]  ;;  %v123_v54 = vld [vmem:[%s2037_s1 + $0x288] sm:$0xff]  ;;  %v1707_v55 = vpack.c.bf16 %v57_v45, %v56_v44  ;;  %v106_v59 = vld [vmem:[%s2037_s1 + $0x200] sm:$0xff] }
  0x18   :  { %1181 = vmatprep.subr.bf16.mxu1 %v1617_v5  ;;  %v211_v47 = vpack.c.bf16 %v203_v37, %v203_v37  ;;  %252 = vmatprep.mubr.bf16.mxu0 %v209_v36  ;;  %v1711_v57 = vpack.c.bf16 %v89_v50, %v88_v46  ;;  %v1713_v58 = vpack.c.bf16 %v123_v54, %v122_v53  ;;  %v107_v60 = vld [vmem:[%s2037_s1 + $0x208] sm:$0xff]  ;;  %v124_v61 = vld [vmem:[%s2037_s1 + $0x290] sm:$0xff]  ;;  %v125_v1 = vld [vmem:[%s2037_s1 + $0x298] sm:$0xff] }
  0x19   :  { %1160 = vmatpush3.bf16.msra.mxu0 %v1635_v14  ;;  %v1729_v6 = vpack.c.bf16 %v107_v60, %v106_v59  ;;  %v1734_v9 = vld [vmem:[%s2038_s0 + $0x10] sm:$0xff]  ;;  %v1738_v10 = vpack.c.bf16 %v125_v1, %v124_v61  ;;  %v109_v13 = vld [vmem:[%s2037_s1 + $0x218] sm:$0xff]  ;;  %v126_v18 = vld [vmem:[%s2037_s1 + $0x2a0] sm:$0xff] }
  0x1a   :  { %1161 = vmatprep.subr.bf16.mxu0 %v1647_v20  ;;  %292 = vmatprep.mubr.bf16.mxu1 %v211_v47  ;;  %v108_v11 = vld [vmem:[%s2037_s1 + $0x210] sm:$0xff]  ;;  %v204_v15 = vcombine.high %v1734_v9, %v1734_v9  ;;  %v127_v22 = vld [vmem:[%s2037_s1 + $0x2a8] sm:$0xff]  ;;  %v110_v29 = vld [vmem:[%s2037_s1 + $0x220] sm:$0xff] }
  0x1b   :  { %1182 = vmatpush3.bf16.msra.mxu1 %v1645_v19  ;;  %v1755_v24 = vpack.c.bf16 %v109_v13, %v108_v11  ;;  %v1758_v27 = vpack.c.bf16 %v127_v22, %v126_v18  ;;  %v111_v30 = vld [vmem:[%s2037_s1 + $0x228] sm:$0xff]  ;;  %v128_v31 = vld [vmem:[%s2037_s1 + $0x2b0] sm:$0xff]  ;;  %v129_v32 = vld [vmem:[%s2037_s1 + $0x2b8] sm:$0xff] }
  0x1c   :  { %1183 = vmatprep.subr.bf16.mxu1 %v1659_v28  ;;  %v213_v23 = vpack.c.bf16 %v204_v15, %v204_v15  ;;  %v1773_v35 = vpack.c.bf16 %v111_v30, %v110_v29  ;;  %v1776_v36 = vpack.c.bf16 %v129_v32, %v128_v31  ;;  %v112_v37 = vld [vmem:[%s2037_s1 + $0x230] sm:$0xff]  ;;  %v113_v44 = vld [vmem:[%s2037_s1 + $0x238] sm:$0xff]  ;;  %v130_v45 = vld [vmem:[%s2037_s1 + $0x2c0] sm:$0xff] }
  0x1d   :  { %1162 = vmatpush3.bf16.msra.mxu0 %v1677_v40  ;;  %v131_v46 = vld [vmem:[%s2037_s1 + $0x2c8] sm:$0xff]  ;;  %v1791_v47 = vpack.c.bf16 %v113_v44, %v112_v37  ;;  %v114_v53 = vld [vmem:[%s2037_s1 + $0x240] sm:$0xff]  ;;  %v132_v59 = vld [vmem:[%s2037_s1 + $0x2d0] sm:$0xff] }
  0x1e   :  { %1163 = vmatprep.subr.bf16.mxu0 %v1683_v42  ;;  %v1794_v50 = vpack.c.bf16 %v131_v46, %v130_v45  ;;  %v115_v54 = vld [vmem:[%s2037_s1 + $0x248] sm:$0xff]  ;;  %v133_v60 = vld [vmem:[%s2037_s1 + $0x2d8] sm:$0xff]  ;;  %v134_v11 = vld [vmem:[%s2037_s1 + $0x2e0] sm:$0xff]  ;;  %v212_v46 = vpack.c.bf16 %v1734_v9, %v1734_v9 }
  0x1f   :  { %1184 = vmatpush3.bf16.msra.mxu1 %v1681_v41  ;;  %v1809_v61 = vpack.c.bf16 %v115_v54, %v114_v53  ;;  %v1812_v1 = vpack.c.bf16 %v133_v60, %v132_v59  ;;  %v135_v13 = vld [vmem:[%s2037_s1 + $0x2e8] sm:$0xff]  ;;  %v118_v22 = vld [vmem:[%s2037_s1 + $0x260] sm:$0xff]  ;;  %v136_v29 = vld [vmem:[%s2037_s1 + $0x2f0] sm:$0xff] }
  0x20   :  { %1185 = vmatprep.subr.bf16.mxu1 %v1695_v49  ;;  %v1830_v18 = vpack.c.bf16 %v135_v13, %v134_v11  ;;  %v137_v30 = vld [vmem:[%s2037_s1 + $0x2f8] sm:$0xff]  ;;  %v120_v37 = vld [vmem:[%s2037_s1 + $0x270] sm:$0xff]  ;;  %v1892_v54 = vld [vmem:[%s2040_s3] sm:$0xf] }
  0x21   :  { %1164 = vmatpush3.bf16.msra.mxu0 %v1707_v55  ;;  %v1848_v32 = vpack.c.bf16 %v137_v30, %v136_v29  ;;  %v121_v44 = vld [vmem:[%s2037_s1 + $0x278] sm:$0xff]  ;;  %v1914_v11 = vld [vmem:[%s2042_s5] sm:$0xff] }
  0x22   :  { %1193 = vmatprep.subr.bf16.mxu0 %v1713_v58  ;;  %v1857_v45 = vpack.c.bf16 %v121_v44, %v120_v37  ;;  %v1140_v13 = vld [vmem:[%s2038_s0 + $0x20] sm:$0xff] }
  0x23   :  { %1186 = vmatpush3.bf16.msra.mxu1 %v1711_v57  ;;  %v692_v29 = vpack.c.bf16 %v1140_v13, %v1140_v13  ;;  %v1929_v44 = vld [vmem:[%s2043_s8] sm:$0xff] }
  0x24   :  { %253 = vmatmul.mubr.bf16.vlgmr.msra.gmra.mrb[0].mxu0 %v208_v2  ;;  %v116_v2 = vld [vmem:[%s2037_s1 + $0x250] sm:$0xff] }
  0x25   :  { %1194 = vmatpush3.bf16.msra.mxu0 %v1729_v6  ;;  %332 = vmatprep.mubr.bf16.mxu0 %v213_v23  ;;  %v119_v23 = vld [vmem:[%s2037_s1 + $0x268] sm:$0xff] }
  0x26   :  { %293 = vmatmul.mubr.bf16.vlgmr.msra.gmra.mrb[0].mxu1 %v210_v4  ;;  %1195 = vmatprep.subr.bf16.mxu0 %v1738_v10  ;;  %v117_v4 = vld [vmem:[%s2037_s1 + $0x258] sm:$0xff]  ;;  %v1845_v31 = vpack.c.bf16 %v119_v23, %v118_v22  ;;  %v685_v22 = vcombine.high %v1140_v13, %v1140_v13 }
  0x27   :  { %v1827_v15 = vpack.c.bf16 %v117_v4, %v116_v2  ;;  %v1900_v4 = vld [vmem:[%s2041_s4] sm:$0xff] }
  0x28   :  { %v693_v23 = vpack.c.bf16 %v685_v22, %v685_v22 }
  0x29   :  { %1196 = vmatpush3.bf16.msra.mxu0 %v1755_v24 }
  0x2a   :  { %1197 = vmatprep.subr.bf16.mxu0 %v1758_v27 }
  0x2d   :  { %1198 = vmatpush3.bf16.msra.mxu0 %v1773_v35 }
  0x2e   :  { %1199 = vmatprep.subr.bf16.mxu0 %v1776_v36 }
  0x31   :  { %1200 = vmatpush3.bf16.msra.mxu0 %v1791_v47 }
  0x32   :  { %1201 = vmatprep.subr.bf16.mxu0 %v1794_v50 }
  0x35   :  { %1202 = vmatpush3.bf16.msra.mxu0 %v1809_v61 }
  0x36   :  { %1203 = vmatprep.subr.bf16.mxu0 %v1812_v1 }
  0x39   :  { %1204 = vmatpush3.bf16.msra.mxu0 %v1827_v15 }
  0x3a   :  { %1205 = vmatprep.subr.bf16.mxu0 %v1830_v18 }
  0x3d   :  { %1206 = vmatpush3.bf16.msra.mxu0 %v1845_v31 }
  0x3e   :  { %1207 = vmatprep.subr.bf16.mxu0 %v1848_v32 }
  0x41   :  { %1208 = vmatpush3.bf16.msra.mxu0 %v1857_v45 }
  0x42   :  { %1245 = vmatprep.subr.bf16.mxu0 %v1438_v8  ;;  %v1349_v8 = vmov 0.0  }
  0x43   :  { %1297 = vmatprep.subr.mxu1 %v1349_v8  ;;  %1299 = vmatprep.mubr.msk.f32.mxu1 %vm1350_vm0, %v1349_v8 }
  0x44   :  { %333 = vmatmul.mubr.bf16.vlgmr.msra.gmra.mrb[4].mxu0 %v212_v46  ;;  %v1934_v46 = vld [vmem:[%s2044_s9] sm:$0xff] }
  0x45   :  { %1246 = vmatpush3.bf16.msra.mxu0 %v1450_v12  ;;  %768 = vmatprep.mubr.bf16.mxu0 %v693_v23 }
  0x46   :  { %1247 = vmatprep.subr.bf16.mxu0 %v1477_v21  ;;  %v1886_v21 = vld [vmem:[%s2039_s2] ss:$0 sm:$0xff] }
  0x49   :  { %1248 = vmatpush3.bf16.msra.mxu0 %v1489_v25 }
  0x4a   :  { %1249 = vmatprep.subr.bf16.mxu0 %v1515_v34 }
  0x4d   :  { %1250 = vmatpush3.bf16.msra.mxu0 %v1528_v38 }
  0x4e   :  { %1251 = vmatprep.subr.bf16.mxu0 %v1542_v43 }
  0x51   :  { %1252 = vmatpush3.bf16.msra.mxu0 %v1567_v51 }
  0x52   :  { %1253 = vmatprep.subr.bf16.mxu0 %v1581_v56 }
  0x55   :  { %1254 = vmatpush3.bf16.msra.mxu0 %v1603_v63 }
  0x56   :  { %1255 = vmatprep.subr.bf16.mxu0 %v1617_v5 }
  0x59   :  { %1256 = vmatpush3.bf16.msra.mxu0 %v1645_v19 }
  0x5a   :  { %1257 = vmatprep.subr.bf16.mxu0 %v1659_v28 }
  0x5d   :  { %1258 = vmatpush3.bf16.msra.mxu0 %v1681_v41 }
  0x5e   :  { %1259 = vmatprep.subr.bf16.mxu0 %v1695_v49 }
  0x61   :  { %1260 = vmatpush3.bf16.msra.mxu0 %v1711_v57 }
  0x62   :  { %1317 = vmatprep.subr.mxu0 %v1349_v8 }
  0x64   :  { %769 = vmatmul.mubr.bf16.vlgmr.msra.gmra.mrb[8].mxu0 %v692_v29 }
  0x65   :  { %1319 = vmatprep.mubr.msk.f32.mxu0 %vm1350_vm0, %v1349_v8 }
  0xf7   :  { %v1165_v12 = vpop.f32.mrb[0].mxu0 }
  0xf8   :  { %v1166_v25 = vpop.f32.mrb[1].mxu0 }
  0xf9   :  { %v1187_v34 = vpop.f32.mrb[0].mxu1  ;;  %v1167_v38 = vadd.f32 %v1166_v25, %v1165_v12  ;;  %v1168_v43 = vpop.f32.mrb[2].mxu0 }
  0xfa   :  { %v1188_v51 = vpop.f32.mrb[1].mxu1  ;;  %v1169_v56 = vpop.f32.mrb[3].mxu0 }
  0xfb   :  { %v1189_v63 = vadd.f32 %v1188_v51, %v1187_v34  ;;  %v1190_v5 = vpop.f32.mrb[2].mxu1  ;;  %v255_v19 = vadd.f32 %v1167_v38, %v1886_v21  ;;  %v1139_v38 = vld [vmem:[%s2038_s0 + $0x18] sm:$0xff] }
  0xfc   :  { %v1191_v28 = vpop.f32.mrb[3].mxu1 }
  0xfd   :  { %v295_v41 = vadd.f32 %v1189_v63, %v255_v19  ;;  %v1946_v28 = vld [vmem:[%s2045_s6] sm:$0xf] }
 0x117   :  { %v1209_v49 = vpop.f32.mrb[4].mxu0 }
 0x118   :  { %v1210_v57 = vpop.f32.mrb[5].mxu0 }
 0x119   :  { %v1211_v9 = vadd.f32 %v1210_v57, %v1209_v49  ;;  %v1212_v53 = vpop.f32.mrb[6].mxu0  ;;  %v1956_v49 = vld [vmem:[%s2046_s7] sm:$0xf] }
 0x11a   :  { %v1213_v59 = vpop.f32.mrb[7].mxu0 }
 0x11b   :  { %v335_v60 = vadd.f32 %v1211_v9, %v295_v41  ;;  %v684_v41 = vcombine.high %v1139_v38, %v1139_v38 }
 0x11d   :  { %v1895_v2 = vadd.f32 %v335_v60, %v1892_v54  ;;  %v691_v57 = vpack.c.bf16 %v684_v41, %v684_v41 }
 0x11f   :  { %1298 = vmatpush3.msk.msra.mxu1 %vm345_vm1, %v1895_v2 }
 0x120   :  { %1300 = vmatmul.mubr.msk.f32.vlgmr.msra.gmra.mrb[4].mxu1 %vm341_vm2, %v1900_v4  ;;  %1302 = vmatprep.subr.mxu1 %v1349_v8 }
 0x121   :  { %1303 = vmatpush3.msk.msra.mxu1 %vm345_vm1, %v1895_v2  ;;  %1304 = vmatprep.mubr.msk.f32.mxu1 %vm1350_vm0, %v1349_v8 }
 0x122   :  { %1307 = vmatprep.subr.mxu1 %v1349_v8 }
 0x124   :  { %1305 = vmatmul.mubr.msk.f32.vlgmr.msra.gmra.mrb[6].mxu1 %vm341_vm2, %v1914_v11 }
 0x125   :  { %1309 = vmatprep.mubr.msk.f32.mxu1 %vm1350_vm0, %v1349_v8 }
 0x1f3   :  { %v415_v30 = vpop.f32.mrb[4].mxu1 }
 0x1f4   :  { %v1301_v37 = vpop.f32.mrb[5].mxu1  ;;  %v493_v43 = vmul.f32 %v415_v30, %v1929_v44  ;;  %v496_v51 = vmul.f32 %v415_v30, %v1934_v46 }
 0x1f7   :  { %v488_v12 = vpop.f32.mrb[6].mxu1 }
 0x1f8   :  { %v492_v25 = vsub.f32 0.0, %v488_v12  ;;  %v1306_v34 = vpop.f32.mrb[7].mxu1 }
 0x1fa   :  { %v494_v56 = vmul.f32 %v492_v25, %v1934_v46  ;;  %v497_v63 = vmul.f32 %v492_v25, %v1929_v44 }
 0x1fc   :  { %v495_v5 = vsub.f32 %v493_v43, %v494_v56  ;;  %v498_v19 = vadd.f32 %v497_v63, %v496_v51  ;;  %v1138_v43 = vld [vmem:[%s2048_s11] ss:$0 sm:$0xff] }
 0x1fe   :  { %1308 = vmatpush3.msra.mxu1 %v495_v5 }
 0x1ff   :  { %1310 = vmatmul.mubr.msk.f32.vlgmr.msra.gmra.mrb[8].mxu1 %vm499_vm3, %v1946_v28  ;;  %1312 = vmatprep.subr.mxu1 %v1349_v8 }
 0x200   :  { %1313 = vmatpush3.msra.mxu1 %v498_v19  ;;  %1314 = vmatprep.mubr.msk.f32.mxu1 %vm1350_vm0, %v1349_v8 }
 0x201   :  { %1223 = vmatprep.subr.bf16.mxu1 %v1425_v3  ;;  %v1141_v3 = vld [vmem:[%s2038_s0 + $0x28] sm:$0xff] }
 0x203   :  { %1315 = vmatmul.mubr.msk.f32.vlgmr.msra.gmra.mrb[10].mxu1 %vm499_vm3, %v1956_v49 }
 0x204   :  { %1224 = vmatpush3.bf16.msra.mxu1 %v1436_v7  ;;  %728 = vmatprep.mubr.bf16.mxu1 %v691_v57  ;;  %v686_v7 = vcombine.high %v1141_v3, %v1141_v3 }
 0x205   :  { %1225 = vmatprep.subr.bf16.mxu1 %v1463_v16  ;;  %v690_v16 = vpack.c.bf16 %v1139_v38, %v1139_v38 }
 0x208   :  { %1226 = vmatpush3.bf16.msra.mxu1 %v1465_v17  ;;  %v695_v17 = vpack.c.bf16 %v686_v7, %v686_v7 }
 0x209   :  { %1227 = vmatprep.subr.bf16.mxu1 %v1491_v26  ;;  %v694_v26 = vpack.c.bf16 %v1141_v3, %v1141_v3 }
 0x20c   :  { %1228 = vmatpush3.bf16.msra.mxu1 %v1513_v33  ;;  %v1261_v33 = vpop.f32.mrb[8].mxu0 }
 0x20d   :  { %1229 = vmatprep.subr.bf16.mxu1 %v1530_v39  ;;  %v1262_v39 = vpop.f32.mrb[9].mxu0 }
 0x210   :  { %1230 = vmatpush3.bf16.msra.mxu1 %v1557_v48  ;;  %v1263_v48 = vadd.f32 %v1262_v39, %v1261_v33 }
 0x211   :  { %1231 = vmatprep.subr.bf16.mxu1 %v1569_v52  ;;  %v1264_v52 = vpop.f32.mrb[10].mxu0 }
 0x214   :  { %1232 = vmatpush3.bf16.msra.mxu1 %v1599_v62  ;;  %v1265_v62 = vpop.f32.mrb[11].mxu0 }
 0x215   :  { %1233 = vmatprep.subr.bf16.mxu1 %v1605_v0 }
 0x218   :  { %1234 = vmatpush3.bf16.msra.mxu1 %v1635_v14 }
 0x219   :  { %1235 = vmatprep.subr.bf16.mxu1 %v1647_v20 }
 0x21c   :  { %1236 = vmatpush3.bf16.msra.mxu1 %v1677_v40 }
 0x21d   :  { %1237 = vmatprep.subr.bf16.mxu1 %v1683_v42 }
 0x220   :  { %1238 = vmatpush3.bf16.msra.mxu1 %v1707_v55 }
 0x221   :  { %1267 = vmatprep.subr.bf16.mxu1 %v1713_v58 }
 0x223   :  { %729 = vmatmul.mubr.bf16.vlgmr.msra.gmra.mrb[12].mxu1 %v690_v16 }
 0x224   :  { %1268 = vmatpush3.bf16.msra.mxu1 %v1729_v6  ;;  %808 = vmatprep.mubr.bf16.mxu1 %v695_v17 }
 0x225   :  { %1269 = vmatprep.subr.bf16.mxu1 %v1738_v10 }
 0x228   :  { %1270 = vmatpush3.bf16.msra.mxu1 %v1755_v24 }
 0x229   :  { %1271 = vmatprep.subr.bf16.mxu1 %v1758_v27 }
 0x22c   :  { %1272 = vmatpush3.bf16.msra.mxu1 %v1773_v35 }
 0x22d   :  { %1273 = vmatprep.subr.bf16.mxu1 %v1776_v36 }
 0x230   :  { %1274 = vmatpush3.bf16.msra.mxu1 %v1791_v47 }
 0x231   :  { %1275 = vmatprep.subr.bf16.mxu1 %v1794_v50 }
 0x234   :  { %1276 = vmatpush3.bf16.msra.mxu1 %v1809_v61 }
 0x235   :  { %1277 = vmatprep.subr.bf16.mxu1 %v1812_v1 }
 0x238   :  { %1278 = vmatpush3.bf16.msra.mxu1 %v1827_v15 }
 0x239   :  { %1279 = vmatprep.subr.bf16.mxu1 %v1830_v18 }
 0x23c   :  { %1280 = vmatpush3.bf16.msra.mxu1 %v1845_v31 }
 0x23d   :  { %1281 = vmatprep.subr.bf16.mxu1 %v1848_v32 }
 0x240   :  { %1282 = vmatpush3.bf16.msra.mxu1 %v1857_v45 }
 0x243   :  { %809 = vmatmul.mubr.bf16.vlgmr.msra.gmra.mrb[16].mxu1 %v694_v26 }
 0x2d2   :  { %v569_v0 = vpop.f32.mrb[8].mxu1 }
 0x2d3   :  { %v1311_v14 = vpop.f32.mrb[9].mxu1 }
 0x2d6   :  { %v642_v20 = vpop.f32.mrb[10].mxu1 }
 0x2d7   :  { %v646_v40 = vsub.f32 %v569_v0, %v642_v20  ;;  %v1316_v42 = vpop.f32.mrb[11].mxu1 }
 0x2d9   :  { %v647_v55 = vadd.f32 %v646_v40, %v1895_v2 }
 0x2db   :  { %v648_v58 = vsel %vm345_vm1, %v647_v55, 0.0 }
 0x2dc   :  { %649 = vadd.xlane.f32.xlu0 %v648_v58 }
 0x2f6   :  { %v1239_v6 = vpop.f32.mrb[12].mxu1 }
 0x2f7   :  { %v1240_v10 = vpop.f32.mrb[13].mxu1 }
 0x2f8   :  { %v1241_v24 = vadd.f32 %v1240_v10, %v1239_v6  ;;  %v1242_v27 = vpop.f32.mrb[14].mxu1 }
 0x2f9   :  { %v1243_v35 = vpop.f32.mrb[15].mxu1 }
 0x2fa   :  { %v731_v36 = vadd.f32 %v1241_v24, %v1886_v21 }
 0x2fc   :  { %v771_v47 = vadd.f32 %v1263_v48, %v731_v36 }
 0x316   :  { %v1283_v50 = vpop.f32.mrb[16].mxu1 }
 0x317   :  { %v1284_v61 = vpop.f32.mrb[17].mxu1 }
 0x318   :  { %v1285_v1 = vadd.f32 %v1284_v61, %v1283_v50  ;;  %v1286_v15 = vpop.f32.mrb[18].mxu1 }
 0x319   :  { %v1287_v18 = vpop.f32.mrb[19].mxu1 }
 0x31a   :  { %v811_v31 = vadd.f32 %v1285_v1, %v771_v47 }
 0x31c   :  { %v816_v32 = vadd.f32 %v811_v31, %v1892_v54 }
 0x31e   :  { %1318 = vmatpush3.msk.msra.mxu0 %vm345_vm1, %v816_v32 }
 0x31f   :  { %1320 = vmatmul.mubr.msk.f32.vlgmr.msra.gmra.mrb[12].mxu0 %vm341_vm2, %v1900_v4  ;;  %1322 = vmatprep.subr.mxu0 %v1349_v8 }
 0x320   :  { %1323 = vmatpush3.msk.msra.mxu0 %vm345_vm1, %v816_v32  ;;  %1324 = vmatprep.mubr.msk.f32.mxu0 %vm1350_vm0, %v1349_v8 }
 0x321   :  { %1327 = vmatprep.subr.mxu0 %v1349_v8 }
 0x323   :  { %1325 = vmatmul.mubr.msk.f32.vlgmr.msra.gmra.mrb[14].mxu0 %vm341_vm2, %v1914_v11 }
 0x324   :  { %1329 = vmatprep.mubr.msk.f32.mxu0 %vm1350_vm0, %v1349_v8 }
 0x369   :  { %v650_v45 = vpop.xlane.xlu0 %649 }
 0x36a   :  { %v652_v21 = vmul.f32 0.0078125, %v650_v45 }
 0x36c   :  { %v653_v9 = vsub.f32 %v647_v55, %v652_v21 }
 0x36e   :  { %v654_v53 = vmul.f32 %v653_v9, %v653_v9 }
 0x370   :  { %v655_v54 = vsel %vm345_vm1, %v654_v53, 0.0 }
 0x371   :  { %656 = vadd.xlane.f32.xlu1 %v655_v54 }
 0x3f2   :  { %v886_v59 = vpop.f32.mrb[12].mxu0 }
 0x3f3   :  { %v1321_v60 = vpop.f32.mrb[13].mxu0  ;;  %v961_v22 = vmul.f32 %v886_v59, %v1929_v44  ;;  %v964_v23 = vmul.f32 %v886_v59, %v1934_v46 }
 0x3f6   :  { %v956_v2 = vpop.f32.mrb[14].mxu0 }
 0x3f7   :  { %v960_v4 = vsub.f32 0.0, %v956_v2  ;;  %v1326_v13 = vpop.f32.mrb[15].mxu0 }
 0x3f9   :  { %v962_v11 = vmul.f32 %v960_v4, %v1934_v46  ;;  %v965_v29 = vmul.f32 %v960_v4, %v1929_v44  ;;  %v1137_v46 = vld [vmem:[%s2047_s10] ss:$0 sm:$0xff] }
 0x3fb   :  { %v963_v30 = vsub.f32 %v961_v22, %v962_v11  ;;  %v966_v37 = vadd.f32 %v965_v29, %v964_v23 }
 0x3fd   :  { %1328 = vmatpush3.msra.mxu0 %v963_v30 }
 0x3fe   :  { %1330 = vmatmul.mubr.msk.f32.vlgmr.msra.gmra.mrb[16].mxu0 %vm499_vm3, %v1946_v28  ;;  %1332 = vmatprep.subr.mxu0 %v1349_v8  ;;  %v657_v12 = vpop.xlane.xlu1 %656 }
 0x3ff   :  { %v658_v25 = vmul.f32 0.0078125, %v657_v12  ;;  %1333 = vmatpush3.msra.mxu0 %v966_v37  ;;  %1334 = vmatprep.mubr.msk.f32.mxu0 %vm1350_vm0, %v1349_v8 }
 0x401   :  { %v659_v34 = vadd.f32 1e-05, %v658_v25 }
 0x402   :  { %1335 = vmatmul.mubr.msk.f32.vlgmr.msra.gmra.mrb[18].mxu0 %vm499_vm3, %v1956_v49 }
 0x403   :  { %1345 = vrsqrt.f32 %v659_v34 }
 0x40d   :  { %v1346_v44 = vpop.eup %1345 }
 0x40e   :  { %v661_v38 = vmul.f32 %v1346_v44, %v653_v9 }
 0x410   :  { %v668_v51 = vmul.f32 %v1137_v46, %v661_v38 }
 0x412   :  { %v675_v56 = vadd.f32 %v1138_v43, %v668_v51 }
 0x414   :  { %676 = vst [vmem:[%s2049_s12] sm:$0xf] %v675_v56 }
 0x4d1   :  { %v1033_v8 = vpop.f32.mrb[16].mxu0 }
 0x4d2   :  { %v1331_v63 = vpop.f32.mrb[17].mxu0 }
 0x4d5   :  { %v1103_v5 = vpop.f32.mrb[18].mxu0 }
 0x4d6   :  { %v1107_v19 = vsub.f32 %v1033_v8, %v1103_v5  ;;  %v1336_v28 = vpop.f32.mrb[19].mxu0 }
 0x4d8   :  { %v1108_v41 = vadd.f32 %v1107_v19, %v816_v32 }
 0x4da   :  { %v1109_v49 = vsel %vm345_vm1, %v1108_v41, 0.0 }
 0x4db   :  { %1110 = vadd.xlane.f32.xlu0 %v1109_v49 }
 0x568   :  { %v1111_v57 = vpop.xlane.xlu0 %1110 }
 0x569   :  { %v1112_v3 = vmul.f32 0.0078125, %v1111_v57 }
 0x56b   :  { %v1113_v7 = vsub.f32 %v1108_v41, %v1112_v3 }
 0x56d   :  { %v1114_v16 = vmul.f32 %v1113_v7, %v1113_v7 }
 0x56f   :  { %v1115_v17 = vsel %vm345_vm1, %v1114_v16, 0.0 }
 0x570   :  { %1116 = vadd.xlane.f32.xlu1 %v1115_v17 }
 0x5fd   :  { %v1117_v26 = vpop.xlane.xlu1 %1116 }
 0x5fe   :  { %v1118_v33 = vmul.f32 0.0078125, %v1117_v26 }
 0x600   :  { %v1119_v39 = vadd.f32 1e-05, %v1118_v33 }
 0x602   :  { %1347 = vrsqrt.f32 %v1119_v39 }
 0x60c   :  { %v1348_v48 = vpop.eup %1347 }
 0x60d   :  { %v1121_v52 = vmul.f32 %v1348_v48, %v1113_v7 }
 0x60f   :  { %v1122_v62 = vmul.f32 %v1137_v46, %v1121_v52 }
 0x611   :  { %v1123_v0 = vadd.f32 %v1138_v43, %v1122_v62 }
 0x613   :  { %1148 = vst [vmem:[%s2049_s12 + $0x4] sm:$0xf] %v1123_v0 }

// kernel: fsru_forward.5
= control target key start
LH: loop header
LB: loop body
LE: loop exit
PB: predicated region body
PF: predicated region fallthrough
CT: control target
= control target key end

     0   :  { %vm86_vm0 = vcmask 1043456   ;;  %v2061_v0 = vmov 0.0|0.0   ;;  %v3554_v1 = vmov 0.0   ;;  %vm2063_vm1 = vmmov 1   ;;  %s3527_s4 = inlined_call_operand.vmem [shape: f32[12,128], index: 4, kind: input, shape index: {}]   ;;  %s3528_s6 = inlined_call_operand.vmem [shape: f32[3,128], index: 6, kind: input, shape index: {}]   ;;  %s3529_s3 = inlined_call_operand.vmem [shape: f32[8,3], index: 3, kind: input, shape index: {}]   ;;  %s3530_s2 = inlined_call_operand.vmem [shape: f32[8,12], index: 2, kind: input, shape index: {}]   ;;  %s3531_s8 = inlined_call_operand.vmem [shape: f32[256,128], index: 8, kind: input, shape index: {}]   ;;  %s3532_s0 = inlined_call_operand.vmem [shape: f32[8,64,128], index: 0, kind: input, shape index: {}]   ;;  %s3533_s1 = inlined_call_operand.vmem [shape: f32[8,4,128], index: 1, kind: input, shape index: {}]   ;;  %s3534_s7 = inlined_call_operand.vmem [shape: f32[1,128], index: 7, kind: input, shape index: {}, may-alias: {5,7,14,16}]   ;;  %s3535_s5 = inlined_call_operand.vmem [shape: f32[1,128], index: 5, kind: input, shape index: {}, may-alias: {5,7,14,16}]   ;;  %s3536_s20 = inlined_call_operand.vmem [shape: f32[8,128], index: 20, kind: output, shape index: {1}]   ;;  %s3537_s19 = inlined_call_operand.vmem [shape: f32[8,128], index: 19, kind: output, shape index: {0}]   ;;  %s3538_s9 = inlined_call_operand.vmem [shape: f32[128,512], index: 9, kind: input, shape index: {}]   ;;  %s3539_s21 = inlined_call_operand.vmem [shape: f32[8,128], index: 21, kind: output, shape index: {2}]   ;;  %s3540_s10 = inlined_call_operand.vmem [shape: f32[1,512], index: 10, kind: input, shape index: {}, may-alias: {10,12}]   ;;  %s3541_s13 = inlined_call_operand.vmem [shape: f32[512,128], index: 13, kind: input, shape index: {}]   ;;  %s3542_s11 = inlined_call_operand.vmem [shape: f32[1,512], index: 11, kind: input, shape index: {}]   ;;  %s3543_s12 = inlined_call_operand.vmem [shape: f32[1,512], index: 12, kind: input, shape index: {}, may-alias: {10,12}]   ;;  %s3544_s14 = inlined_call_operand.vmem [shape: f32[1,128], index: 14, kind: input, shape index: {}, may-alias: {5,7,14,16}]   ;;  %s3545_s17 = inlined_call_operand.vmem [shape: f32[128,128], index: 17, kind: input, shape index: {}]   ;;  %s3546_s15 = inlined_call_operand.vmem [shape: f32[1,128], index: 15, kind: input, shape index: {}]   ;;  %s3547_s16 = inlined_call_operand.vmem [shape: f32[1,128], index: 16, kind: input, shape index: {}, may-alias: {5,7,14,16}]   ;;  %s3548_s18 = inlined_call_operand.vmem [shape: f32[1,128], index: 18, kind: input, shape index: {}]   ;;  %s3549_s22 = inlined_call_operand.vmem [shape: f32[8,128], index: 22, kind: output, shape index: {3}]  }
   0x1   :  { %3556 = sst [smem:[#allocation2_spill]] %s3527_s4  ;;  %1958 = vmatprep.subr.bf16.mxu0 %v2061_v0  ;;  %1933 = vmatprep.subr.mxu1 %v3554_v1  ;;  %vm1960_vm2 = vmpackc.low %vm86_vm0, %vm2063_vm1  ;;  %vm173_vm3 = vcmask 1042432   ;;  %vm169_vm4 = vcmask 23552   ;;  %vm2064_vm5 = vmmov 0   ;;  %vm82_vm6 = vcmask 97280  }
   0x2   :  { %3557 = sst [smem:[#allocation3_spill]] %s3528_s6  ;;  %s3563_s29 = sld [smem:[#allocation2_spill]]  ;;  %1935 = vmatprep.mubr.msk.f32.mxu1 %vm2064_vm5, %v3554_v1  ;;  %1930 = vmatprep.mubr.msk.f32.mxu0 %vm2064_vm5, %v3554_v1  ;;  %vm586_vm8 = vcmask 1041409   ;;  %vm589_vm9 = vcmask 1042434   ;;  %vm592_vm10 = vcmask 1043459   ;;  %vm595_vm11 = vcmask 1044484  }
   0x3   :  { %3558 = sst [smem:[#allocation4_spill]] %s3529_s3  ;;  %s3564_s23 = sld [smem:[#allocation3_spill]]  ;;  %vm598_vm12 = vcmask 1045509   ;;  %vm601_vm13 = vcmask 1046534   ;;  %vm604_vm14 = vcmask 1047559  }
   0x4   :  { %3559 = sst [smem:[#allocation5_spill]] %s3530_s2 }
   0x5   :  { %3560 = sst [smem:[#allocation6_spill]] %s3531_s8  ;;  %s3566_s3 = sld [smem:[#allocation5_spill]] }
   0x6   :  { %3561 = sst [smem:[#allocation7_spill]] %s3532_s0  ;;  %s3567_s28 = sld [smem:[#allocation6_spill]] }
   0x7   :  { %3562 = sst [smem:[#allocation8_spill]] %s3533_s1  ;;  %s3565_s1 = sld [smem:[#allocation4_spill]] }
   0x8   :  { %v73_v2 = vld [vmem:[%s3563_s29] sm:$0xff]  ;;  %v74_v3 = vld [vmem:[%s3563_s29 + $0x8] sm:$0xf]  ;;  %s3569_s6 = sld [smem:[#allocation8_spill]] }
   0x9   :  { %v1959_v4 = vpack.c.bf16 %v74_v3, %v73_v2  ;;  %v161_v5 = vld [vmem:[%s3564_s23] sm:$0x7] }
   0xa   :  { %1934 = vmatpush3.msk.msra.mxu1 %vm173_vm3, %v161_v5 }
   0xb   :  { %v72_v7 = vld [vmem:[%s3566_s3] sm:$0xff]  ;;  %1961 = vmatpush3.bf16.msk.msra.mxu0 %vm1960_vm2, %v1959_v4 }
   0xc   :  { %v1103_v8 = vld [vmem:[%s3567_s28 + $0x80] sm:$0xff]  ;;  %v1104_v9 = vld [vmem:[%s3567_s28 + $0x88] sm:$0xff]  ;;  %v1105_v13 = vld [vmem:[%s3567_s28 + $0x90] sm:$0xff] }
   0xd   :  { %v160_v6 = vld [vmem:[%s3565_s1] sm:$0xff]  ;;  %v1129_v11 = vpack.c.bf16 %v1104_v9, %v1103_v8  ;;  %v1088_v12 = vld [vmem:[%s3567_s28 + $0x8] sm:$0xff]  ;;  %v1106_v14 = vld [vmem:[%s3567_s28 + $0x98] sm:$0xff]  ;;  %s3568_s1 = sld [smem:[#allocation7_spill]] }
   0xe   :  { %v1087_v10 = vld [vmem:[%s3567_s28] sm:$0xff]  ;;  %1936 = vmatmul.mubr.msk.f32.vlgmr.msra.gmra.mrb[0].mxu1 %vm169_vm4, %v160_v6  ;;  %v1130_v16 = vpack.c.bf16 %v1106_v14, %v1105_v13  ;;  %v1089_v17 = vld [vmem:[%s3567_s28 + $0x10] sm:$0xff]  ;;  %v1090_v18 = vld [vmem:[%s3567_s28 + $0x18] sm:$0xff]  ;;  %1931 = vmatmul.mubr.msk.f32.vlgmr.msra.gmra.mrb[0].mxu0 %vm82_vm6, %v72_v7 }
   0xf   :  { %v1121_v15 = vpack.c.bf16 %v1088_v12, %v1087_v10  ;;  %1851 = vmatprep.subr.bf16.mxu1 %v1129_v11  ;;  %v1122_v19 = vpack.c.bf16 %v1090_v18, %v1089_v17  ;;  %v1107_v20 = vld [vmem:[%s3567_s28 + $0xa0] sm:$0xff]  ;;  %v1108_v21 = vld [vmem:[%s3567_s28 + $0xa8] sm:$0xff]  ;;  %v1109_v26 = vld [vmem:[%s3567_s28 + $0xb0] sm:$0xff] }
  0x10   :  { %v1131_v22 = vpack.c.bf16 %v1108_v21, %v1107_v20  ;;  %v1091_v23 = vld [vmem:[%s3567_s28 + $0x20] sm:$0xff]  ;;  %v1092_v24 = vld [vmem:[%s3567_s28 + $0x28] sm:$0xff]  ;;  %v1110_v27 = vld [vmem:[%s3567_s28 + $0xb8] sm:$0xff] }
  0x11   :  { %1852 = vmatpush3.bf16.msra.mxu1 %v1121_v15  ;;  %v1123_v25 = vpack.c.bf16 %v1092_v24, %v1091_v23  ;;  %v1132_v28 = vpack.c.bf16 %v1110_v27, %v1109_v26  ;;  %v1093_v29 = vld [vmem:[%s3567_s28 + $0x30] sm:$0xff]  ;;  %v1094_v30 = vld [vmem:[%s3567_s28 + $0x38] sm:$0xff]  ;;  %v1111_v32 = vld [vmem:[%s3567_s28 + $0xc0] sm:$0xff] }
  0x12   :  { %1853 = vmatprep.subr.bf16.mxu1 %v1130_v16  ;;  %v1124_v31 = vpack.c.bf16 %v1094_v30, %v1093_v29  ;;  %v1112_v33 = vld [vmem:[%s3567_s28 + $0xc8] sm:$0xff]  ;;  %v1095_v34 = vld [vmem:[%s3567_s28 + $0x40] sm:$0xff]  ;;  %v1113_v37 = vld [vmem:[%s3567_s28 + $0xd0] sm:$0xff] }
  0x13   :  { %v1133_v35 = vpack.c.bf16 %v1112_v33, %v1111_v32  ;;  %v1096_v36 = vld [vmem:[%s3567_s28 + $0x48] sm:$0xff]  ;;  %v1114_v38 = vld [vmem:[%s3567_s28 + $0xd8] sm:$0xff]  ;;  %v1097_v41 = vld [vmem:[%s3567_s28 + $0x50] sm:$0xff] }
  0x14   :  { %v1125_v39 = vpack.c.bf16 %v1096_v36, %v1095_v34  ;;  %v1134_v40 = vpack.c.bf16 %v1114_v38, %v1113_v37  ;;  %v1098_v42 = vld [vmem:[%s3567_s28 + $0x58] sm:$0xff]  ;;  %v1115_v43 = vld [vmem:[%s3567_s28 + $0xe0] sm:$0xff]  ;;  %v1116_v44 = vld [vmem:[%s3567_s28 + $0xe8] sm:$0xff] }
  0x15   :  { %1854 = vmatpush3.bf16.msra.mxu1 %v1122_v19  ;;  %v1126_v45 = vpack.c.bf16 %v1098_v42, %v1097_v41  ;;  %v1135_v46 = vpack.c.bf16 %v1116_v44, %v1115_v43  ;;  %v1099_v47 = vld [vmem:[%s3567_s28 + $0x60] sm:$0xff]  ;;  %v1100_v48 = vld [vmem:[%s3567_s28 + $0x68] sm:$0xff]  ;;  %v1117_v49 = vld [vmem:[%s3567_s28 + $0xf0] sm:$0xff] }
  0x16   :  { %1855 = vmatprep.subr.bf16.mxu1 %v1131_v22  ;;  %v1118_v50 = vld [vmem:[%s3567_s28 + $0xf8] sm:$0xff]  ;;  %v1127_v51 = vpack.c.bf16 %v1100_v48, %v1099_v47  ;;  %v1101_v53 = vld [vmem:[%s3567_s28 + $0x70] sm:$0xff]  ;;  %v247_v56 = vld [vmem:[%s3568_s1] sm:$0xff] }
  0x17   :  { %v1136_v52 = vpack.c.bf16 %v1118_v50, %v1117_v49  ;;  %v1102_v54 = vld [vmem:[%s3567_s28 + $0x78] sm:$0xff]  ;;  %v248_v57 = vld [vmem:[%s3568_s1 + $0x8] sm:$0xff]  ;;  %v255_v58 = vld [vmem:[%s3568_s1 + $0x40] sm:$0xff] }
  0x18   :  { %v1128_v55 = vpack.c.bf16 %v1102_v54, %v1101_v53  ;;  %v256_v59 = vld [vmem:[%s3568_s1 + $0x48] sm:$0xff]  ;;  %v249_v60 = vld [vmem:[%s3568_s1 + $0x10] sm:$0xff]  ;;  %v263_v61 = vld [vmem:[%s3568_s1 + $0x80] sm:$0xff]  ;;  %v311_v4 = vmax.f32 %v247_v56, %v248_v57 }
  0x19   :  { %1856 = vmatpush3.bf16.msra.mxu1 %v1123_v25  ;;  %v264_v62 = vld [vmem:[%s3568_s1 + $0x88] sm:$0xff]  ;;  %v271_v63 = vld [vmem:[%s3568_s1 + $0xc0] sm:$0xff]  ;;  %v324_v11 = vmax.f32 %v255_v58, %v256_v59  ;;  %v257_v13 = vld [vmem:[%s3568_s1 + $0x50] sm:$0xff] }
  0x1a   :  { %1857 = vmatprep.subr.bf16.mxu1 %v1132_v28  ;;  %v272_v0 = vld [vmem:[%s3568_s1 + $0xc8] sm:$0xff]  ;;  %v279_v2 = vld [vmem:[%s3568_s1 + $0x100] sm:$0xff]  ;;  %v337_v12 = vmax.f32 %v263_v61, %v264_v62  ;;  %v265_v14 = vld [vmem:[%s3568_s1 + $0x90] sm:$0xff]  ;;  %v312_v15 = vmax.f32 %v311_v4, %v249_v60 }
  0x1b   :  { %v280_v3 = vld [vmem:[%s3568_s1 + $0x108] sm:$0xff]  ;;  %v287_v5 = vld [vmem:[%s3568_s1 + $0x140] sm:$0xff]  ;;  %v350_v16 = vmax.f32 %v271_v63, %v272_v0  ;;  %v250_v18 = vld [vmem:[%s3568_s1 + $0x18] sm:$0xff]  ;;  %v325_v27 = vmax.f32 %v324_v11, %v257_v13 }
  0x1c   :  { %v288_v6 = vld [vmem:[%s3568_s1 + $0x148] sm:$0xff]  ;;  %v295_v7 = vld [vmem:[%s3568_s1 + $0x180] sm:$0xff]  ;;  %v363_v17 = vmax.f32 %v279_v2, %v280_v3  ;;  %v273_v19 = vld [vmem:[%s3568_s1 + $0xd0] sm:$0xff]  ;;  %v338_v28 = vmax.f32 %v337_v12, %v265_v14 }
  0x1d   :  { %1858 = vmatpush3.bf16.msra.mxu1 %v1124_v31  ;;  %v296_v8 = vld [vmem:[%s3568_s1 + $0x188] sm:$0xff]  ;;  %v303_v9 = vld [vmem:[%s3568_s1 + $0x1c0] sm:$0xff]  ;;  %v281_v20 = vld [vmem:[%s3568_s1 + $0x110] sm:$0xff]  ;;  %v376_v21 = vmax.f32 %v287_v5, %v288_v6  ;;  %v313_v31 = vmax.f32 %v312_v15, %v250_v18  ;;  %v351_v32 = vmax.f32 %v350_v16, %v273_v19 }
  0x1e   :  { %1859 = vmatprep.subr.bf16.mxu1 %v1133_v35  ;;  %v304_v10 = vld [vmem:[%s3568_s1 + $0x1c8] sm:$0xff]  ;;  %v389_v22 = vmax.f32 %v295_v7, %v296_v8  ;;  %v289_v24 = vld [vmem:[%s3568_s1 + $0x150] sm:$0xff]  ;;  %v258_v29 = vld [vmem:[%s3568_s1 + $0x58] sm:$0xff]  ;;  %v364_v33 = vmax.f32 %v363_v17, %v281_v20 }
  0x1f   :  { %v402_v23 = vmax.f32 %v303_v9, %v304_v10  ;;  %v297_v25 = vld [vmem:[%s3568_s1 + $0x190] sm:$0xff]  ;;  %v266_v30 = vld [vmem:[%s3568_s1 + $0x98] sm:$0xff]  ;;  %v251_v34 = vld [vmem:[%s3568_s1 + $0x20] sm:$0xff]  ;;  %v377_v37 = vmax.f32 %v376_v21, %v289_v24  ;;  %v326_v44 = vmax.f32 %v325_v27, %v258_v29 }
  0x20   :  { %v305_v26 = vld [vmem:[%s3568_s1 + $0x1d0] sm:$0xff]  ;;  %v274_v35 = vld [vmem:[%s3568_s1 + $0xd8] sm:$0xff]  ;;  %v390_v38 = vmax.f32 %v389_v22, %v297_v25  ;;  %v259_v43 = vld [vmem:[%s3568_s1 + $0x60] sm:$0xff]  ;;  %v314_v49 = vmax.f32 %v313_v31, %v251_v34 }
  0x21   :  { %1860 = vmatpush3.bf16.msra.mxu1 %v1125_v39  ;;  %v282_v36 = vld [vmem:[%s3568_s1 + $0x118] sm:$0xff]  ;;  %v403_v39 = vmax.f32 %v402_v23, %v305_v26  ;;  %v473_v47 = vld [vmem:[%s3569_s6 + $0x4] sm:$0xf]  ;;  %v352_v50 = vmax.f32 %v351_v32, %v274_v35  ;;  %v253_v63 = vld [vmem:[%s3568_s1 + $0x30] sm:$0xff]  ;;  %v327_v2 = vmax.f32 %v326_v44, %v259_v43 }
  0x22   :  { %1861 = vmatprep.subr.bf16.mxu1 %v1134_v40  ;;  %v290_v40 = vld [vmem:[%s3568_s1 + $0x158] sm:$0xff]  ;;  %v267_v48 = vld [vmem:[%s3568_s1 + $0xa0] sm:$0xff]  ;;  %v487_v62 = vsel %vm86_vm0, %v473_v47, -inf  ;;  %v260_v0 = vld [vmem:[%s3568_s1 + $0x68] sm:$0xff] }
  0x23   :  { %v298_v41 = vld [vmem:[%s3568_s1 + $0x198] sm:$0xff]  ;;  %v275_v53 = vld [vmem:[%s3568_s1 + $0xe0] sm:$0xff]  ;;  %v474_v4 = vld [vmem:[%s3569_s6 + $0x8] sm:$0xf]  ;;  %v488_v17 = vrot.slane %v487_v62, 4  ;;  %v328_v23 = vmax.f32 %v327_v2, %v260_v0 }
  0x24   :  { %v306_v42 = vld [vmem:[%s3568_s1 + $0x1d8] sm:$0xff]  ;;  %v283_v54 = vld [vmem:[%s3568_s1 + $0x120] sm:$0xff]  ;;  %v391_v56 = vmax.f32 %v390_v38, %v298_v41  ;;  %v268_v5 = vld [vmem:[%s3568_s1 + $0xa8] sm:$0xff]  ;;  %v353_v8 = vmax.f32 %v352_v50, %v275_v53  ;;  %v494_v22 = vsel %vm86_vm0, %v474_v4, -inf }
  0x25   :  { %1862 = vmatpush3.bf16.msra.mxu1 %v1126_v45  ;;  %v339_v45 = vmax.f32 %v338_v28, %v266_v30  ;;  %v404_v57 = vmax.f32 %v403_v39, %v306_v42  ;;  %v291_v58 = vld [vmem:[%s3568_s1 + $0x160] sm:$0xff]  ;;  %v276_v6 = vld [vmem:[%s3568_s1 + $0xe8] sm:$0xff]  ;;  %v476_v11 = vld [vmem:[%s3569_s6 + $0x10] sm:$0xf]  ;;  %v489_v38 = vmax.f32 %v487_v62, %v488_v17  ;;  %v495_v39 = vrot.slane %v494_v22, 4 }
  0x26   :  { %1863 = vmatprep.subr.bf16.mxu1 %v1135_v46  ;;  %v472_v46 = vld [vmem:[%s3569_s6] sm:$0xf]  ;;  %v475_v10 = vld [vmem:[%s3569_s6 + $0xc] sm:$0xf]  ;;  %v477_v21 = vld [vmem:[%s3569_s6 + $0x14] sm:$0xf]  ;;  %v354_v29 = vmax.f32 %v353_v8, %v276_v6  ;;  %v67_v17 = vlaneseq }
  0x27   :  { %v299_v59 = vld [vmem:[%s3568_s1 + $0x1a0] sm:$0xff]  ;;  %v480_v61 = vsel %vm86_vm0, %v472_v46, -inf  ;;  %v340_v3 = vmax.f32 %v339_v45, %v267_v48  ;;  %v284_v12 = vld [vmem:[%s3568_s1 + $0x128] sm:$0xff]  ;;  %v501_v25 = vsel %vm86_vm0, %v475_v10, -inf  ;;  %v261_v26 = vld [vmem:[%s3568_s1 + $0x70] sm:$0xff]  ;;  %v508_v31 = vsel %vm86_vm0, %v476_v11, -inf }
  0x28   :  { %v307_v60 = vld [vmem:[%s3568_s1 + $0x1e0] sm:$0xff]  ;;  %v392_v14 = vmax.f32 %v391_v56, %v299_v59  ;;  %v481_v16 = vrot.slane %v480_v61, 4  ;;  %v292_v18 = vld [vmem:[%s3568_s1 + $0x168] sm:$0xff]  ;;  %v269_v27 = vld [vmem:[%s3568_s1 + $0xb0] sm:$0xff]  ;;  %v329_v47 = vmax.f32 %v328_v23, %v261_v26  ;;  %v490_v62 = vrot.slane %v489_v38, 2 }
  0x29   :  { %1864 = vmatpush3.bf16.msra.mxu1 %v1127_v51  ;;  %v365_v51 = vmax.f32 %v364_v33, %v282_v36  ;;  %v405_v15 = vmax.f32 %v404_v57, %v307_v60  ;;  %v300_v19 = vld [vmem:[%s3568_s1 + $0x1a8] sm:$0xff]  ;;  %v341_v24 = vmax.f32 %v340_v3, %v268_v5  ;;  %v277_v32 = vld [vmem:[%s3568_s1 + $0xf0] sm:$0xff]  ;;  %v254_v44 = vld [vmem:[%s3568_s1 + $0x38] sm:$0xff] }
  0x2a   :  { %1865 = vmatprep.subr.bf16.mxu1 %v1136_v52  ;;  %v252_v52 = vld [vmem:[%s3568_s1 + $0x28] sm:$0xff]  ;;  %v285_v33 = vld [vmem:[%s3568_s1 + $0x130] sm:$0xff]  ;;  %v393_v35 = vmax.f32 %v392_v14, %v300_v19  ;;  %v262_v45 = vld [vmem:[%s3568_s1 + $0x78] sm:$0xff]  ;;  %v355_v53 = vmax.f32 %v354_v29, %v277_v32  ;;  %v491_v19 = vmax.f32 %v489_v38, %v490_v62 }
  0x2b   :  { %v315_v7 = vmax.f32 %v314_v49, %v252_v52  ;;  %v366_v9 = vmax.f32 %v365_v51, %v283_v54  ;;  %v308_v20 = vld [vmem:[%s3568_s1 + $0x1e8] sm:$0xff]  ;;  %v293_v41 = vld [vmem:[%s3568_s1 + $0x170] sm:$0xff]  ;;  %v270_v46 = vld [vmem:[%s3568_s1 + $0xb8] sm:$0xff]  ;;  %v342_v48 = vmax.f32 %v341_v24, %v269_v27  ;;  %v502_v51 = vrot.slane %v501_v25, 4 }
  0x2c   :  { %v406_v36 = vmax.f32 %v405_v15, %v308_v20  ;;  %v301_v42 = vld [vmem:[%s3568_s1 + $0x1b0] sm:$0xff]  ;;  %v478_v49 = vld [vmem:[%s3569_s6 + $0x18] sm:$0xf]  ;;  %v479_v50 = vld [vmem:[%s3569_s6 + $0x1c] sm:$0xf]  ;;  %v509_v52 = vrot.slane %v508_v31, 4 }
  0x2d   :  { %1866 = vmatpush3.bf16.msra.mxu1 %v1128_v55  ;;  %v378_v55 = vmax.f32 %v377_v37, %v290_v40  ;;  %v316_v28 = vmax.f32 %v315_v7, %v253_v63  ;;  %v367_v30 = vmax.f32 %v366_v9, %v284_v12  ;;  %v482_v37 = vmax.f32 %v480_v61, %v481_v16  ;;  %v309_v43 = vld [vmem:[%s3568_s1 + $0x1f0] sm:$0xff]  ;;  %v278_v56 = vld [vmem:[%s3568_s1 + $0xf8] sm:$0xff] }
  0x2e   :  { %v515_v40 = vsel %vm86_vm0, %v477_v21, -inf  ;;  %v286_v57 = vld [vmem:[%s3568_s1 + $0x138] sm:$0xff]  ;;  %v394_v59 = vmax.f32 %v393_v35, %v301_v42  ;;  %v407_v60 = vmax.f32 %v406_v36, %v309_v43  ;;  %v496_v63 = vmax.f32 %v494_v22, %v495_v39 }
  0x2f   :  { %v379_v13 = vmax.f32 %v378_v55, %v291_v58  ;;  %v368_v54 = vmax.f32 %v367_v30, %v285_v33  ;;  %v516_v55 = vrot.slane %v515_v40, 4  ;;  %v483_v61 = vrot.slane %v482_v37, 2  ;;  %v294_v0 = vld [vmem:[%s3568_s1 + $0x178] sm:$0xff] }
  0x30   :  { %v302_v2 = vld [vmem:[%s3568_s1 + $0x1b8] sm:$0xff]  ;;  %v317_v4 = vmax.f32 %v316_v28, %v254_v44  ;;  %v522_v5 = vsel %vm86_vm0, %v478_v49, -inf  ;;  %v529_v6 = vsel %vm86_vm0, %v479_v50, -inf  ;;  %v330_v7 = vmax.f32 %v329_v47, %v262_v45 }
  0x31   :  { %v380_v34 = vmax.f32 %v379_v13, %v292_v18  ;;  %v310_v3 = vld [vmem:[%s3568_s1 + $0x1f8] sm:$0xff]  ;;  %v343_v8 = vmax.f32 %v342_v48, %v270_v46  ;;  %v503_v9 = vmax.f32 %v501_v25, %v502_v51  ;;  %v510_v10 = vmax.f32 %v508_v31, %v509_v52 }
  0x32   :  { %v356_v11 = vmax.f32 %v355_v53, %v278_v56  ;;  %v369_v12 = vmax.f32 %v368_v54, %v286_v57  ;;  %v517_v13 = vmax.f32 %v515_v40, %v516_v55  ;;  %v395_v15 = vmax.f32 %v394_v59, %v302_v2 }
  0x33   :  { %v381_v58 = vmax.f32 %v380_v34, %v293_v41  ;;  %v408_v16 = vmax.f32 %v407_v60, %v310_v3  ;;  %v484_v18 = vmax.f32 %v482_v37, %v483_v61  ;;  %v497_v20 = vrot.slane %v496_v63, 2 }
  0x34   :  { %v523_v21 = vrot.slane %v522_v5, 4  ;;  %v530_v22 = vrot.slane %v529_v6, 4  ;;  %v318_v23 = vrot.slane %v317_v4, 4  ;;  %v331_v24 = vrot.slane %v330_v7, 4 }
  0x35   :  { %v382_v14 = vmax.f32 %v381_v58, %v294_v0  ;;  %v504_v26 = vrot.slane %v503_v9, 2  ;;  %v344_v27 = vrot.slane %v343_v8, 4  ;;  %v357_v28 = vrot.slane %v356_v11, 4 }
  0x36   :  { %v370_v29 = vrot.slane %v369_v12, 4  ;;  %v511_v25 = vrot.slane %v510_v10, 2  ;;  %v396_v31 = vrot.slane %v395_v15, 4  ;;  %v409_v32 = vrot.slane %v408_v16, 4 }
  0x37   :  { %v383_v30 = vrot.slane %v382_v14, 4  ;;  %v2522_v33 = vshrl.u32 %v67_v17, 7  ;;  %v485_v34 = vrot.slane %v484_v18, 1  ;;  %v498_v35 = vmax.f32 %v496_v63, %v497_v20 }
  0x38   :  { %v518_v36 = vrot.slane %v517_v13, 2  ;;  %v524_v37 = vmax.f32 %v522_v5, %v523_v21  ;;  %v531_v38 = vmax.f32 %v529_v6, %v530_v22  ;;  %v319_v39 = vmax.f32 %v317_v4, %v318_v23 }
  0x39   :  { %v332_v40 = vmax.f32 %v330_v7, %v331_v24  ;;  %v492_v41 = vrot.slane %v491_v19, 1  ;;  %v345_v42 = vmax.f32 %v343_v8, %v344_v27  ;;  %v358_v43 = vmax.f32 %v356_v11, %v357_v28 }
  0x3a   :  { %v371_v44 = vmax.f32 %v369_v12, %v370_v29  ;;  %v505_v45 = vmax.f32 %v503_v9, %v504_v26  ;;  %v384_v46 = vmax.f32 %v382_v14, %v383_v30  ;;  %v397_v47 = vmax.f32 %v395_v15, %v396_v31 }
  0x3b   :  { %v410_v48 = vmax.f32 %v408_v16, %v409_v32  ;;  %vm69_vm7 = vcmp.lt.s32.totalorder %v2522_v33, 2  ;;  %v2525_v49 = vmax.f32 %v484_v18, %v485_v34  ;;  %v499_v50 = vrot.slane %v498_v35, 1 }
  0x3c   :  { %v512_v51 = vmax.f32 %v510_v10, %v511_v25  ;;  %v525_v52 = vrot.slane %v524_v37, 2  ;;  %v532_v53 = vrot.slane %v531_v38, 2  ;;  %v320_v54 = vrot.slane %v319_v39, 2 }
  0x3d   :  { %v333_v55 = vrot.slane %v332_v40, 2  ;;  %v519_v56 = vmax.f32 %v517_v13, %v518_v36  ;;  %v346_v57 = vrot.slane %v345_v42, 2  ;;  %v359_v58 = vrot.slane %v358_v43, 2 }
  0x3e   :  { %v372_v59 = vrot.slane %v371_v44, 2  ;;  %v2527_v60 = vmax.f32 %v491_v19, %v492_v41  ;;  %v385_v61 = vrot.slane %v384_v46, 2  ;;  %v398_v62 = vrot.slane %v397_v47, 2 }
  0x3f   :  { %v411_v63 = vrot.slane %v410_v48, 2  ;;  %v2532_v0 = vsel %vm69_vm7, 1.0, %v3554_v1  ;;  %v2534_v2 = vmax.f32 %v498_v35, %v499_v50  ;;  %v506_v3 = vrot.slane %v505_v45, 1 }
  0x40   :  { %v513_v4 = vrot.slane %v512_v51, 1  ;;  %v526_v5 = vmax.f32 %v524_v37, %v525_v52  ;;  %v533_v6 = vmax.f32 %v531_v38, %v532_v53  ;;  %v321_v7 = vmax.f32 %v319_v39, %v320_v54  ;;  %v1839_v38 = vld [vmem:[%s3534_s7] ss:$0 sm:$0xff] }
  0x41   :  { %v334_v8 = vmax.f32 %v332_v40, %v333_v55  ;;  %v520_v9 = vrot.slane %v519_v56, 1  ;;  %v347_v10 = vmax.f32 %v345_v42, %v346_v57  ;;  %v360_v11 = vmax.f32 %v358_v43, %v359_v58  ;;  %v1836_v53 = vld [vmem:[%s3535_s5] ss:$0 sm:$0xff] }
  0x42   :  { %v373_v12 = vmax.f32 %v371_v44, %v372_v59  ;;  %v449_v13 = vrot.slane %v2532_v0, 1  ;;  %v386_v14 = vmax.f32 %v384_v46, %v385_v61  ;;  %v399_v15 = vmax.f32 %v397_v47, %v398_v62 }
  0x43   :  { %v412_v16 = vmax.f32 %v410_v48, %v411_v63  ;;  %v450_v17 = vrot.slane %v2532_v0, 2  ;;  %v451_v18 = vrot.slane %v2532_v0, 3  ;;  %v452_v19 = vrot.slane %v2532_v0, 4 }
  0x44   :  { %v453_v20 = vrot.slane %v2532_v0, 5  ;;  %v527_v21 = vrot.slane %v526_v5, 1  ;;  %v534_v22 = vrot.slane %v533_v6, 1  ;;  %v322_v23 = vrot.slane %v321_v7, 1 }
  0x45   :  { %v335_v24 = vrot.slane %v334_v8, 1  ;;  %v454_v26 = vrot.slane %v2532_v0, 6  ;;  %v348_v27 = vrot.slane %v347_v10, 1  ;;  %v361_v28 = vrot.slane %v360_v11, 1 }
  0x46   :  { %v374_v29 = vrot.slane %v373_v12, 1  ;;  %v455_v25 = vrot.slane %v2532_v0, 7  ;;  %v387_v30 = vrot.slane %v386_v14, 1  ;;  %v400_v31 = vrot.slane %v399_v15, 1 }
  0x47   :  { %v413_v32 = vrot.slane %v412_v16, 1  ;;  %v507_v34 = vmax.f32 %v505_v45, %v506_v3  ;;  %v514_v35 = vmax.f32 %v512_v51, %v513_v4  ;;  %v521_v36 = vmax.f32 %v519_v56, %v520_v9 }
  0x48   :  { %v536_v37 = vmax.f32 %v2525_v49, 0.0  ;;  %v528_v39 = vmax.f32 %v526_v5, %v527_v21  ;;  %v535_v40 = vmax.f32 %v533_v6, %v534_v22  ;;  %v2547_v41 = vmax.f32 %v321_v7, %v322_v23 }
  0x49   :  { %v2549_v42 = vmax.f32 %v334_v8, %v335_v24  ;;  %v537_v43 = vmax.f32 %v2527_v60, 0.0  ;;  %v2552_v44 = vmax.f32 %v347_v10, %v348_v27  ;;  %v2554_v46 = vmax.f32 %v360_v11, %v361_v28 }
  0x4a   :  { %v2556_v45 = vmax.f32 %v373_v12, %v374_v29  ;;  %v538_v48 = vmax.f32 %v2534_v2, 0.0  ;;  %v2559_v49 = vmax.f32 %v386_v14, %v387_v30  ;;  %v2561_v50 = vmax.f32 %v399_v15, %v400_v31 }
  0x4b   :  { %v2563_v51 = vmax.f32 %v412_v16, %v413_v32  ;;  %v539_v55 = vmax.f32 %v507_v34, 0.0  ;;  %v540_v56 = vmax.f32 %v514_v35, 0.0  ;;  %v541_v57 = vmax.f32 %v521_v36, 0.0 }
  0x4c   :  { %v542_v58 = vmax.f32 %v528_v39, 0.0  ;;  %v543_v59 = vmax.f32 %v535_v40, 0.0  ;;  %v415_v60 = vmax.f32 %v2547_v41, 0.0  ;;  %v416_v61 = vmax.f32 %v2549_v42, 0.0 }
  0x4d   :  { %v417_v2 = vmax.f32 %v2552_v44, 0.0  ;;  %v418_v3 = vmax.f32 %v2554_v46, 0.0  ;;  %v419_v4 = vmax.f32 %v2556_v45, 0.0  ;;  %v420_v7 = vmax.f32 %v2559_v49, 0.0 }
  0x4e   :  { %v421_v8 = vmax.f32 %v2561_v50, 0.0  ;;  %v422_v9 = vmax.f32 %v2563_v51, 0.0 }
  0xe1   :  { %v243_v47 = vpop.f32.mrb[0].mxu1  ;;  %v156_v63 = vpop.f32.mrb[0].mxu0 }
  0xe2   :  { %v244_v52 = vadd.f32 %v1839_v38, %v243_v47  ;;  %v1937_v54 = vpop.f32.mrb[1].mxu1  ;;  %v157_v5 = vadd.f32 %v1836_v53, %v156_v63  ;;  %v1932_v6 = vpop.f32.mrb[1].mxu0 }
  0xe4   :  { %v544_v62 = vmax.f32 %v244_v52, 0.0  ;;  %v423_v15 = vmax.f32 %v157_v5, 0.0 }
  0xe6   :  { %v546_v10 = vrot.slane %v544_v62, 1  ;;  %v547_v11 = vrot.slane %v544_v62, 2  ;;  %v548_v12 = vrot.slane %v544_v62, 3  ;;  %v549_v14 = vrot.slane %v544_v62, 4 }
  0xe7   :  { %v550_v16 = vrot.slane %v544_v62, 5  ;;  %v551_v21 = vrot.slane %v544_v62, 6  ;;  %v552_v22 = vrot.slane %v544_v62, 7  ;;  %v561_v23 = vadd.f32 %v544_v62, %v536_v37 }
  0xe8   :  { %v562_v24 = vadd.f32 %v546_v10, %v537_v43  ;;  %v563_v27 = vadd.f32 %v547_v11, %v538_v48  ;;  %v564_v28 = vadd.f32 %v548_v12, %v539_v55  ;;  %v565_v29 = vadd.f32 %v549_v14, %v540_v56 }
  0xe9   :  { %v566_v30 = vadd.f32 %v550_v16, %v541_v57  ;;  %v567_v31 = vadd.f32 %v551_v21, %v542_v58  ;;  %v568_v32 = vadd.f32 %v552_v22, %v543_v59  ;;  %v2577_v34 = vmul.f32 %v2532_v0, %v561_v23 }
  0xea   :  { %v2581_v35 = vmul.f32 %v562_v24, %v449_v13  ;;  %v2585_v36 = vmul.f32 %v563_v27, %v450_v17  ;;  %v2589_v37 = vmul.f32 %v564_v28, %v451_v18  ;;  %v2593_v38 = vmul.f32 %v565_v29, %v452_v19 }
  0xeb   :  { %v2597_v39 = vmul.f32 %v566_v30, %v453_v20  ;;  %v2601_v40 = vmul.f32 %v567_v31, %v454_v26  ;;  %v2605_v41 = vmul.f32 %v568_v32, %v455_v25  ;;  %v425_v46 = vrot.slane %v423_v15, 1 }
  0xec   :  { %v616_v42 = vrot.slane %v2581_v35, 7  ;;  %v618_v43 = vrot.slane %v2585_v36, 6  ;;  %v620_v44 = vrot.slane %v2589_v37, 5  ;;  %v622_v45 = vrot.slane %v2593_v38, 4 }
  0xed   :  { %v624_v47 = vrot.slane %v2597_v39, 3  ;;  %v626_v48 = vrot.slane %v2601_v40, 2  ;;  %v628_v49 = vrot.slane %v2605_v41, 1  ;;  %v426_v51 = vrot.slane %v423_v15, 2 }
  0xee   :  { %v617_v50 = vsel %vm586_vm8, %v616_v42, %v2577_v34  ;;  %v427_v52 = vrot.slane %v423_v15, 3  ;;  %v428_v53 = vrot.slane %v423_v15, 4  ;;  %v429_v55 = vrot.slane %v423_v15, 5 }
  0xef   :  { %v619_v54 = vsel %vm589_vm9, %v618_v43, %v617_v50  ;;  %v430_v56 = vrot.slane %v423_v15, 6  ;;  %v431_v57 = vrot.slane %v423_v15, 7  ;;  %v440_v59 = vadd.f32 %v423_v15, %v415_v60 }
  0xf0   :  { %v621_v58 = vsel %vm592_vm10, %v620_v44, %v619_v54  ;;  %v441_v62 = vadd.f32 %v425_v46, %v416_v61  ;;  %v442_v63 = vadd.f32 %v426_v51, %v417_v2  ;;  %v443_v6 = vadd.f32 %v427_v52, %v418_v3 }
  0xf1   :  { %v623_v5 = vsel %vm595_vm11, %v622_v45, %v621_v58  ;;  %v444_v10 = vadd.f32 %v428_v53, %v419_v4  ;;  %v445_v11 = vadd.f32 %v429_v55, %v420_v7  ;;  %v446_v14 = vadd.f32 %v430_v56, %v421_v8 }
  0xf2   :  { %v625_v12 = vsel %vm598_vm12, %v624_v47, %v623_v5  ;;  %v447_v16 = vadd.f32 %v431_v57, %v422_v9  ;;  %v2621_v21 = vmul.f32 %v2532_v0, %v440_v59  ;;  %v2626_v23 = vmul.f32 %v449_v13, %v441_v62 }
  0xf3   :  { %v627_v22 = vsel %vm601_vm13, %v626_v48, %v625_v12  ;;  %v2630_v60 = vmul.f32 %v450_v17, %v442_v63  ;;  %v2634_v61 = vmul.f32 %v451_v18, %v443_v6  ;;  %v2639_v3 = vmul.f32 %v452_v19, %v444_v10 }
  0xf4   :  { %v629_v2 = vsel %vm604_vm14, %v628_v49, %v627_v22  ;;  %v2643_v4 = vmul.f32 %v453_v20, %v445_v11  ;;  %v2650_v17 = vmul.f32 %v454_v26, %v446_v14  ;;  %v585_v18 = vrot.slane %v2626_v23, 7 }
  0xf5   :  { %631 = vst [vmem:[%s3536_s20] sm:$0xff] %v629_v2  ;;  %v1120_v13 = vpack.c.bf16 %v629_v2, %v629_v2  ;;  %v588_v7 = vrot.slane %v2630_v60, 6  ;;  %v2656_v19 = vmul.f32 %v455_v25, %v447_v16  ;;  %v591_v20 = vrot.slane %v2634_v61, 5 }
  0xf6   :  { %v594_v8 = vrot.slane %v2639_v3, 4  ;;  %v587_v9 = vsel %vm586_vm8, %v585_v18, %v2621_v21  ;;  %v597_v15 = vrot.slane %v2643_v4, 3  ;;  %v632_v26 = vadd.f32 %v2577_v34, %v2621_v21 }
  0xf7   :  { %1169 = vmatprep.mubr.bf16.mxu1 %v1120_v13  ;;  %v633_v24 = vadd.f32 %v2581_v35, %v2626_v23  ;;  %v590_v0 = vsel %vm589_vm9, %v588_v7, %v587_v9  ;;  %v634_v25 = vadd.f32 %v2585_v36, %v2630_v60  ;;  %v635_v27 = vadd.f32 %v2589_v37, %v2634_v61 }
  0xf8   :  { %v636_v28 = vadd.f32 %v2593_v38, %v2639_v3  ;;  %v593_v29 = vsel %vm592_vm10, %v591_v20, %v590_v0  ;;  %v600_v30 = vrot.slane %v2650_v17, 2  ;;  %v637_v31 = vadd.f32 %v2597_v39, %v2643_v4 }
  0xf9   :  { %v638_v32 = vadd.f32 %v2601_v40, %v2650_v17  ;;  %v596_v42 = vsel %vm595_vm11, %v594_v8, %v593_v29  ;;  %v639_v43 = vadd.f32 %v2605_v41, %v2656_v19  ;;  %v2683_v44 = vmul.f32 0.5, %v633_v24 }
  0xfa   :  { %v2685_v46 = vmul.f32 0.5, %v634_v25  ;;  %v599_v45 = vsel %vm598_vm12, %v597_v15, %v596_v42  ;;  %v603_v47 = vrot.slane %v2656_v19, 1  ;;  %v2689_v48 = vmul.f32 0.5, %v635_v27 }
  0xfb   :  { %v2691_v49 = vmul.f32 0.5, %v636_v28  ;;  %v602_v50 = vsel %vm601_vm13, %v600_v30, %v599_v45  ;;  %v640_v51 = vmul.f32 0.5, %v632_v26  ;;  %v2694_v52 = vmul.f32 0.5, %v637_v31 }
  0xfc   :  { %v656_v53 = vrot.slane %v2683_v44, 7  ;;  %v605_v54 = vsel %vm604_vm14, %v603_v47, %v602_v50  ;;  %v2698_v55 = vmul.f32 0.5, %v638_v32  ;;  %v658_v56 = vrot.slane %v2685_v46, 6 }
  0xfd   :  { %764 = vmax.xlane.f32.xlu0 %v605_v54  ;;  %607 = vst [vmem:[%s3537_s19] sm:$0xff] %v605_v54  ;;  %v1119_v57 = vpack.c.bf16 %v605_v54, %v605_v54  ;;  %v2704_v58 = vmul.f32 0.5, %v639_v43  ;;  %v660_v62 = vrot.slane %v2689_v48, 5  ;;  %v662_v5 = vrot.slane %v2691_v49, 4 }
  0xfe   :  { %v657_v59 = vsel %vm586_vm8, %v656_v53, %v640_v51  ;;  %v664_v10 = vrot.slane %v2694_v52, 3  ;;  %v666_v12 = vrot.slane %v2698_v55, 2 }
  0xff   :  { %v659_v63 = vsel %vm589_vm9, %v658_v56, %v657_v59  ;;  %1170 = vmatmul.mubr.bf16.vlgmr.msra.gmra.mrb[4].mxu1 %v1119_v57  ;;  %v668_v16 = vrot.slane %v2704_v58, 1 }
 0x100   :  { %v661_v6 = vsel %vm592_vm10, %v660_v62, %v659_v63 }
 0x101   :  { %v663_v11 = vsel %vm595_vm11, %v662_v5, %v661_v6  ;;  %857 = vmax.xlane.f32.xlu0 %v629_v2 }
 0x102   :  { %v665_v14 = vsel %vm598_vm12, %v664_v10, %v663_v11 }
 0x103   :  { %v667_v22 = vsel %vm601_vm13, %v666_v12, %v665_v14 }
 0x104   :  { %v669_v13 = vsel %vm604_vm14, %v668_v16, %v667_v22 }
 0x105   :  { %671 = vmax.xlane.f32.xlu1 %v669_v13 }
 0x18a   :  { %v765_v18 = vpop.xlane.xlu0 %764 }
 0x18b   :  { %v767_v7 = vrot.slane %v765_v18, 1  ;;  %v768_v20 = vrot.slane %v765_v18, 2  ;;  %v769_v8 = vrot.slane %v765_v18, 3  ;;  %v2719_v9 = vsub.f32 %v2621_v21, %v765_v18 }
 0x18c   :  { %v770_v15 = vrot.slane %v765_v18, 4  ;;  %v771_v26 = vrot.slane %v765_v18, 5  ;;  %v772_v24 = vrot.slane %v765_v18, 6  ;;  %v773_v0 = vrot.slane %v765_v18, 7 }
 0x18d   :  { %v2722_v25 = vsub.f32 %v2626_v23, %v767_v7  ;;  %v790_v2 = vmul.f32 1.442695, %v2719_v9  ;;  %v2726_v27 = vsub.f32 %v2630_v60, %v768_v20  ;;  %v2729_v28 = vsub.f32 %v2634_v61, %v769_v8 }
 0x18e   :  { %v2731_v29 = vpop.xlane.xlu0 %857  ;;  %v2734_v30 = vsub.f32 %v2639_v3, %v770_v15  ;;  %v2741_v32 = vsub.f32 %v2643_v4, %v771_v26  ;;  %v2746_v47 = vsub.f32 %v2650_v17, %v772_v24  ;;  %v2749_v50 = vsub.f32 %v2656_v19, %v773_v0 }
 0x18f   :  { %v2738_v31 = vsub.f32 %v2577_v34, %v2731_v29  ;;  %v792_v42 = vmul.f32 1.442695, %v2722_v25  ;;  %v794_v43 = vmul.f32 1.442695, %v2726_v27  ;;  %1971 = vpow2.f32 %v790_v2 }
 0x190   :  { %v796_v53 = vmul.f32 1.442695, %v2729_v28  ;;  %v798_v63 = vmul.f32 1.442695, %v2734_v30  ;;  %v800_v12 = vmul.f32 1.442695, %v2741_v32 }
 0x191   :  { %v883_v62 = vmul.f32 1.442695, %v2738_v31  ;;  %1973 = vpow2.f32 %v792_v42  ;;  %v802_v16 = vmul.f32 1.442695, %v2746_v47  ;;  %v804_v18 = vmul.f32 1.442695, %v2749_v50 }
 0x192   :  { %v672_v45 = vpop.xlane.xlu1 %671  ;;  %1975 = vpow2.f32 %v794_v43  ;;  %v861_v20 = vrot.slane %v2731_v29, 2  ;;  %v862_v15 = vrot.slane %v2731_v29, 3  ;;  %v863_v0 = vrot.slane %v2731_v29, 4 }
 0x193   :  { %v674_v54 = vrot.slane %v672_v45, 1  ;;  %v675_v56 = vrot.slane %v672_v45, 2  ;;  %v676_v57 = vrot.slane %v672_v45, 3  ;;  %v2752_v59 = vsub.f32 %v640_v51, %v672_v45 }
 0x194   :  { %v677_v5 = vrot.slane %v672_v45, 4  ;;  %v678_v11 = vrot.slane %v672_v45, 5  ;;  %1977 = vpow2.f32 %v883_v62  ;;  %v679_v14 = vrot.slane %v672_v45, 6 }
 0x195   :  { %v2757_v6 = vsub.f32 %v2683_v44, %v674_v54  ;;  %v697_v10 = vmul.f32 1.442695, %v2752_v59  ;;  %v2762_v51 = vsub.f32 %v2685_v46, %v675_v56  ;;  %v680_v22 = vrot.slane %v672_v45, 7 }
 0x196   :  { %v2766_v13 = vsub.f32 %v2689_v48, %v676_v57  ;;  %v860_v44 = vrot.slane %v2731_v29, 1  ;;  %v2771_v7 = vsub.f32 %v2691_v49, %v677_v5  ;;  %v2775_v46 = vsub.f32 %v2694_v52, %v678_v11 }
 0x197   :  { %1979 = vpow2.f32 %v697_v10  ;;  %v699_v8 = vmul.f32 1.442695, %v2757_v6  ;;  %v2780_v48 = vsub.f32 %v2698_v55, %v679_v14  ;;  %v701_v26 = vmul.f32 1.442695, %v2762_v51 }
 0x198   :  { %1981 = vpow2.f32 %v796_v53  ;;  %v2784_v49 = vsub.f32 %v2704_v58, %v680_v22  ;;  %v703_v24 = vmul.f32 1.442695, %v2766_v13  ;;  %v2789_v2 = vsub.f32 %v2581_v35, %v860_v44 }
 0x199   :  { %1983 = vpow2.f32 %v798_v63  ;;  %v1972_v52 = vpop.eup %1971  ;;  %v705_v42 = vmul.f32 1.442695, %v2771_v7  ;;  %v864_v55 = vrot.slane %v2731_v29, 5  ;;  %v707_v43 = vmul.f32 1.442695, %v2775_v46 }
 0x19a   :  { %1985 = vpow2.f32 %v800_v12  ;;  %v865_v45 = vrot.slane %v2731_v29, 6  ;;  %v2796_v58 = vsub.f32 %v2585_v36, %v861_v20  ;;  %v709_v54 = vmul.f32 1.442695, %v2780_v48 }
 0x19b   :  { %1987 = vpow2.f32 %v802_v16  ;;  %v1974_v53 = vpop.eup %1973  ;;  %v866_v56 = vrot.slane %v2731_v29, 7  ;;  %v2801_v57 = vsub.f32 %v2589_v37, %v862_v15  ;;  %v711_v5 = vmul.f32 1.442695, %v2784_v49 }
 0x19c   :  { %1989 = vpow2.f32 %v804_v18  ;;  %v1976_v62 = vpop.eup %1975  ;;  %v814_v63 = vrot.slane %v1974_v53, 7  ;;  %v2805_v10 = vsub.f32 %v2593_v38, %v863_v0  ;;  %v2810_v14 = vsub.f32 %v2597_v39, %v864_v55 }
 0x19d   :  { %1991 = vpow2.f32 %v699_v8  ;;  %v816_v12 = vrot.slane %v1976_v62, 6  ;;  %v885_v29 = vmul.f32 1.442695, %v2789_v2  ;;  %v2815_v44 = vsub.f32 %v2601_v40, %v865_v45 }
 0x19e   :  { %1993 = vpow2.f32 %v701_v26  ;;  %v2807_v11 = vpop.eup %1977  ;;  %v815_v22 = vsel %vm586_vm8, %v814_v63, %v1972_v52  ;;  %v887_v18 = vmul.f32 1.442695, %v2796_v58  ;;  %v2820_v15 = vsub.f32 %v2605_v41, %v866_v56 }
 0x19f   :  { %1995 = vpow2.f32 %v703_v24  ;;  %v817_v8 = vsel %vm589_vm9, %v816_v12, %v815_v22  ;;  %v889_v26 = vmul.f32 1.442695, %v2801_v57  ;;  %v891_v52 = vmul.f32 1.442695, %v2805_v10 }
 0x1a0   :  { %1997 = vpow2.f32 %v705_v42 }
 0x1a1   :  { %v1980_v16 = vpop.eup %1979  ;;  %1999 = vpow2.f32 %v707_v43  ;;  %v893_v43 = vmul.f32 1.442695, %v2810_v14 }
 0x1a2   :  { %v1982_v20 = vpop.eup %1981  ;;  %2001 = vpow2.f32 %v709_v54  ;;  %v895_v54 = vmul.f32 1.442695, %v2815_v44 }
 0x1a3   :  { %v1984_v24 = vpop.eup %1983  ;;  %v818_v0 = vrot.slane %v1982_v20, 5  ;;  %2003 = vpow2.f32 %v711_v5  ;;  %v897_v5 = vmul.f32 1.442695, %v2820_v15 }
 0x1a4   :  { %v1986_v42 = vpop.eup %1985  ;;  %v820_v55 = vrot.slane %v1984_v24, 4  ;;  %2005 = vpow2.f32 %v885_v29 }
 0x1a5   :  { %v1988_v45 = vpop.eup %1987  ;;  %v819_v53 = vsel %vm592_vm10, %v818_v0, %v817_v8  ;;  %v822_v62 = vrot.slane %v1986_v42, 3  ;;  %2007 = vpow2.f32 %v887_v18 }
 0x1a6   :  { %v1990_v56 = vpop.eup %1989  ;;  %v821_v63 = vsel %vm595_vm11, %v820_v55, %v819_v53  ;;  %v824_v12 = vrot.slane %v1988_v45, 2  ;;  %2009 = vpow2.f32 %v889_v26 }
 0x1a7   :  { %v1992_v22 = vpop.eup %1991  ;;  %v823_v20 = vsel %vm598_vm12, %v822_v62, %v821_v63  ;;  %v826_v29 = vrot.slane %v1990_v56, 1  ;;  %2011 = vpow2.f32 %v891_v52 }
 0x1a8   :  { %v1994_v24 = vpop.eup %1993  ;;  %v825_v1 = vsel %vm601_vm13, %v824_v12, %v823_v20  ;;  %v721_v8 = vrot.slane %v1992_v22, 7  ;;  %2013 = vpow2.f32 %v893_v43 }
 0x1a9   :  { %v1996_v18 = vpop.eup %1995  ;;  %v827_v0 = vsel %vm604_vm14, %v826_v29, %v825_v1  ;;  %v723_v42 = vrot.slane %v1994_v24, 6  ;;  %2015 = vpow2.f32 %v895_v54 }
 0x1aa   :  { %v1998_v55 = vpop.eup %1997  ;;  %829 = vadd.xlane.f32.xlu1 %v827_v0  ;;  %v722_v26 = vsel %vm586_vm8, %v721_v8, %v1980_v16  ;;  %v725_v45 = vrot.slane %v1996_v18, 5  ;;  %2017 = vpow2.f32 %v897_v5 }
 0x1ab   :  { %v2000_v53 = vpop.eup %1999  ;;  %v724_v62 = vsel %vm589_vm9, %v723_v42, %v722_v26  ;;  %v727_v52 = vrot.slane %v1998_v55, 4 }
 0x1ac   :  { %v2002_v56 = vpop.eup %2001  ;;  %v726_v63 = vsel %vm592_vm10, %v725_v45, %v724_v62  ;;  %v729_v12 = vrot.slane %v2000_v53, 3 }
 0x1ad   :  { %v2004_v43 = vpop.eup %2003  ;;  %v728_v22 = vsel %vm595_vm11, %v727_v52, %v726_v63  ;;  %v731_v1 = vrot.slane %v2002_v56, 2 }
 0x1ae   :  { %v2006_v20 = vpop.eup %2005  ;;  %v730_v54 = vsel %vm598_vm12, %v729_v12, %v728_v22  ;;  %v733_v29 = vrot.slane %v2004_v43, 1 }
 0x1af   :  { %v2008_v24 = vpop.eup %2007  ;;  %v732_v16 = vsel %vm601_vm13, %v731_v1, %v730_v54  ;;  %v907_v5 = vrot.slane %v2006_v20, 7 }
 0x1b0   :  { %v2010_v8 = vpop.eup %2009  ;;  %v734_v18 = vsel %vm604_vm14, %v733_v29, %v732_v16  ;;  %v909_v0 = vrot.slane %v2008_v24, 6 }
 0x1b1   :  { %v2012_v42 = vpop.eup %2011  ;;  %736 = vadd.xlane.f32.xlu1 %v734_v18  ;;  %v908_v55 = vsel %vm586_vm8, %v907_v5, %v2807_v11  ;;  %v911_v26 = vrot.slane %v2010_v8, 5 }
 0x1b2   :  { %v2014_v45 = vpop.eup %2013  ;;  %v910_v53 = vsel %vm589_vm9, %v909_v0, %v908_v55  ;;  %v913_v62 = vrot.slane %v2012_v42, 4 }
 0x1b3   :  { %v2016_v52 = vpop.eup %2015  ;;  %v912_v56 = vsel %vm592_vm10, %v911_v26, %v910_v53  ;;  %v915_v63 = vrot.slane %v2014_v45, 3 }
 0x1b4   :  { %v2018_v12 = vpop.eup %2017  ;;  %v914_v43 = vsel %vm595_vm11, %v913_v62, %v912_v56  ;;  %v917_v22 = vrot.slane %v2016_v52, 2 }
 0x1b5   :  { %v916_v1 = vsel %vm598_vm12, %v915_v63, %v914_v43  ;;  %v919_v20 = vrot.slane %v2018_v12, 1 }
 0x1b6   :  { %v918_v54 = vsel %vm601_vm13, %v917_v22, %v916_v1 }
 0x1b7   :  { %v920_v11 = vsel %vm604_vm14, %v919_v20, %v918_v54 }
 0x1b8   :  { %922 = vadd.xlane.f32.xlu0 %v920_v11 }
 0x1d2   :  { %v1867_v29 = vpop.f32.mrb[4].mxu1 }
 0x1d3   :  { %v1868_v24 = vpop.f32.mrb[5].mxu1 }
 0x1d4   :  { %v2847_v16 = vadd.f32 %v1868_v24, %v1867_v29  ;;  %v1870_v5 = vpop.f32.mrb[6].mxu1 }
 0x1d5   :  { %v1871_v8 = vpop.f32.mrb[7].mxu1 }
 0x237   :  { %v830_v18 = vpop.xlane.xlu1 %829 }
 0x238   :  { %2019 = vlog2.f32 %v830_v18 }
 0x23e   :  { %v737_v0 = vpop.xlane.xlu1 %736 }
 0x23f   :  { %2021 = vlog2.f32 %v737_v0 }
 0x242   :  { %v2020_v42 = vpop.eup %2019 }
 0x243   :  { %v832_v55 = vmul.f32 0.6931472, %v2020_v42 }
 0x245   :  { %v923_v26 = vpop.xlane.xlu0 %922  ;;  %v834_v45 = vrot.slane %v832_v55, 1  ;;  %v835_v53 = vrot.slane %v832_v55, 2  ;;  %v836_v62 = vrot.slane %v832_v55, 3  ;;  %v837_v52 = vrot.slane %v832_v55, 4 }
 0x246   :  { %2023 = vlog2.f32 %v923_v26  ;;  %v838_v56 = vrot.slane %v832_v55, 5  ;;  %v839_v63 = vrot.slane %v832_v55, 6  ;;  %v840_v12 = vrot.slane %v832_v55, 7 }
 0x247   :  { %v2850_v43 = vsub.f32 %v2719_v9, %v832_v55  ;;  %v2853_v22 = vsub.f32 %v2722_v25, %v834_v45  ;;  %v2856_v1 = vsub.f32 %v2726_v27, %v835_v53  ;;  %v2859_v54 = vsub.f32 %v2729_v28, %v836_v62 }
 0x248   :  { %v2862_v11 = vsub.f32 %v2734_v30, %v837_v52  ;;  %v2865_v24 = vsub.f32 %v2741_v32, %v838_v56  ;;  %v2869_v5 = vsub.f32 %v2746_v47, %v839_v63  ;;  %v2872_v25 = vsub.f32 %v2749_v50, %v840_v12 }
 0x249   :  { %v2022_v20 = vpop.eup %2021  ;;  %v950_v9 = vmul.f32 1.442695, %v2850_v43  ;;  %v952_v27 = vmul.f32 1.442695, %v2853_v22  ;;  %v954_v28 = vmul.f32 1.442695, %v2856_v1 }
 0x24a   :  { %v739_v29 = vmul.f32 0.6931472, %v2022_v20  ;;  %v956_v32 = vmul.f32 1.442695, %v2859_v54  ;;  %v958_v26 = vmul.f32 1.442695, %v2862_v11 }
 0x24b   :  { %2025 = vpow2.f32 %v950_v9  ;;  %v960_v53 = vmul.f32 1.442695, %v2865_v24  ;;  %v962_v62 = vmul.f32 1.442695, %v2869_v5  ;;  %v964_v52 = vmul.f32 1.442695, %v2872_v25 }
 0x24c   :  { %v741_v8 = vrot.slane %v739_v29, 1  ;;  %v742_v18 = vrot.slane %v739_v29, 2  ;;  %v743_v30 = vrot.slane %v739_v29, 3  ;;  %v744_v0 = vrot.slane %v739_v29, 4 }
 0x24d   :  { %v745_v42 = vrot.slane %v739_v29, 5  ;;  %v746_v55 = vrot.slane %v739_v29, 6  ;;  %v747_v45 = vrot.slane %v739_v29, 7  ;;  %v2879_v47 = vsub.f32 %v2752_v59, %v739_v29 }
 0x24e   :  { %v2882_v50 = vsub.f32 %v2757_v6, %v741_v8  ;;  %2027 = vpow2.f32 %v952_v27  ;;  %v2888_v63 = vsub.f32 %v2762_v51, %v742_v18  ;;  %v2891_v12 = vsub.f32 %v2766_v13, %v743_v30 }
 0x24f   :  { %v2894_v59 = vsub.f32 %v2771_v7, %v744_v0  ;;  %2029 = vpow2.f32 %v954_v28  ;;  %v2897_v20 = vsub.f32 %v2775_v46, %v745_v42  ;;  %v2900_v29 = vsub.f32 %v2780_v48, %v746_v55 }
 0x250   :  { %v2024_v56 = vpop.eup %2023  ;;  %2031 = vpow2.f32 %v956_v32  ;;  %v2903_v9 = vsub.f32 %v2784_v49, %v747_v45  ;;  %v966_v51 = vsub.f32 %v2850_v43, %v2879_v47  ;;  %v967_v13 = vsub.f32 %v2853_v22, %v2882_v50 }
 0x251   :  { %v925_v6 = vmul.f32 0.6931472, %v2024_v56  ;;  %2033 = vpow2.f32 %v958_v26  ;;  %v968_v43 = vsub.f32 %v2856_v1, %v2888_v63  ;;  %v969_v55 = vsub.f32 %v2859_v54, %v2891_v12 }
 0x252   :  { %2035 = vpow2.f32 %v960_v53 }
 0x253   :  { %v927_v7 = vrot.slane %v925_v6, 1  ;;  %v928_v27 = vrot.slane %v925_v6, 2  ;;  %v929_v28 = vrot.slane %v925_v6, 3  ;;  %2037 = vpow2.f32 %v962_v62 }
 0x254   :  { %v930_v46 = vrot.slane %v925_v6, 4  ;;  %v931_v8 = vrot.slane %v925_v6, 5  ;;  %v932_v48 = vrot.slane %v925_v6, 6  ;;  %2039 = vpow2.f32 %v964_v52 }
 0x255   :  { %v933_v18 = vrot.slane %v925_v6, 7  ;;  %v2910_v49 = vsub.f32 %v2738_v31, %v925_v6  ;;  %v2913_v30 = vsub.f32 %v2789_v2, %v927_v7  ;;  %v2918_v22 = vsub.f32 %v2796_v58, %v928_v27  ;;  %v2026_v32 = vpop.eup %2025 }
 0x256   :  { %v2921_v0 = vsub.f32 %v2801_v57, %v929_v28  ;;  %v2924_v42 = vsub.f32 %v2805_v10, %v930_v46  ;;  %v2929_v31 = vsub.f32 %v2810_v14, %v931_v8  ;;  %v2932_v2 = vsub.f32 %v2815_v44, %v932_v48 }
 0x257   :  { %v1017_v1 = vmul.f32 1.442695, %v2910_v49  ;;  %v2936_v58 = vsub.f32 %v2820_v15, %v933_v18  ;;  %v1019_v57 = vmul.f32 1.442695, %v2913_v30  ;;  %v1021_v10 = vmul.f32 1.442695, %v2918_v22 }
 0x258   :  { %v1023_v26 = vmul.f32 1.442695, %v2921_v0  ;;  %v2028_v45 = vpop.eup %2027  ;;  %v970_v14 = vsub.f32 %v2862_v11, %v2894_v59  ;;  %v971_v44 = vsub.f32 %v2865_v24, %v2897_v20  ;;  %v1025_v54 = vmul.f32 1.442695, %v2924_v42 }
 0x259   :  { %2041 = vpow2.f32 %v1017_v1  ;;  %v2030_v53 = vpop.eup %2029  ;;  %v972_v15 = vsub.f32 %v2869_v5, %v2900_v29  ;;  %v975_v62 = vmul.f32 %v2028_v45, %v967_v13  ;;  %v1027_v52 = vmul.f32 1.442695, %v2929_v31 }
 0x25a   :  { %2043 = vpow2.f32 %v1019_v57  ;;  %v2032_v56 = vpop.eup %2031  ;;  %v974_v6 = vmul.f32 %v2026_v32, %v966_v51  ;;  %v976_v7 = vmul.f32 %v2030_v53, %v968_v43  ;;  %v1029_v11 = vmul.f32 1.442695, %v2932_v2 }
 0x25b   :  { %2045 = vpow2.f32 %v1021_v10  ;;  %v2034_v27 = vpop.eup %2033  ;;  %v977_v28 = vmul.f32 %v2032_v56, %v969_v55  ;;  %v990_v24 = vrot.slane %v975_v62, 7  ;;  %v1031_v46 = vmul.f32 1.442695, %v2936_v58 }
 0x25c   :  { %2047 = vpow2.f32 %v1023_v26  ;;  %v2036_v8 = vpop.eup %2035  ;;  %v973_v5 = vsub.f32 %v2872_v25, %v2903_v9  ;;  %v978_v13 = vmul.f32 %v2034_v27, %v970_v14  ;;  %v992_v48 = vrot.slane %v976_v7, 6 }
 0x25d   :  { %2049 = vpow2.f32 %v1025_v54  ;;  %v2038_v18 = vpop.eup %2037  ;;  %v979_v1 = vmul.f32 %v2036_v8, %v971_v44  ;;  %v991_v51 = vsel %vm586_vm8, %v990_v24, %v974_v6  ;;  %v994_v43 = vrot.slane %v977_v28, 5 }
 0x25e   :  { %2051 = vpow2.f32 %v1027_v52  ;;  %v2040_v32 = vpop.eup %2039  ;;  %v980_v57 = vmul.f32 %v2038_v18, %v972_v15  ;;  %v993_v55 = vsel %vm589_vm9, %v992_v48, %v991_v51  ;;  %v996_v10 = vrot.slane %v978_v13, 4 }
 0x25f   :  { %2053 = vpow2.f32 %v1029_v11  ;;  %v981_v26 = vmul.f32 %v2040_v32, %v973_v5  ;;  %v995_v45 = vsel %vm592_vm10, %v994_v43, %v993_v55  ;;  %v998_v53 = vrot.slane %v979_v1, 3 }
 0x260   :  { %2055 = vpow2.f32 %v1031_v46  ;;  %v997_v25 = vsel %vm595_vm11, %v996_v10, %v995_v45  ;;  %v1000_v14 = vrot.slane %v980_v57, 2  ;;  %v1034_v15 = vsub.f32 %v2913_v30, %v2882_v50  ;;  %v1247_v45 = vld [vmem:[%s3538_s9 + $0x8] sm:$0xff] }
 0x261   :  { %v999_v44 = vsel %vm598_vm12, %v998_v53, %v997_v25  ;;  %v1002_v54 = vrot.slane %v981_v26, 1  ;;  %v1035_v7 = vsub.f32 %v2918_v22, %v2888_v63  ;;  %v1033_v27 = vsub.f32 %v2910_v49, %v2879_v47  ;;  %v1251_v53 = vld [vmem:[%s3538_s9 + $0x28] sm:$0xff]  ;;  %v1249_v25 = vld [vmem:[%s3538_s9 + $0x18] sm:$0xff] }
 0x262   :  { %v1001_v52 = vsel %vm601_vm13, %v1000_v14, %v999_v44  ;;  %v1036_v28 = vsub.f32 %v2921_v0, %v2891_v12  ;;  %v1037_v8 = vsub.f32 %v2924_v42, %v2894_v59  ;;  %v1038_v5 = vsub.f32 %v2929_v31, %v2897_v20  ;;  %v1253_v44 = vld [vmem:[%s3538_s9 + $0x38] sm:$0xff] }
 0x263   :  { %v2042_v62 = vpop.eup %2041  ;;  %v1003_v6 = vsel %vm604_vm14, %v1002_v54, %v1001_v52  ;;  %v1039_v47 = vsub.f32 %v2932_v2, %v2900_v29  ;;  %v1040_v0 = vsub.f32 %v2936_v58, %v2903_v9  ;;  %v1312_v14 = vpack.c.bf16 %v1251_v53, %v1247_v45  ;;  %v1246_v54 = vld [vmem:[%s3538_s9] sm:$0xff]  ;;  %v1276_v45 = vld [vmem:[%s3538_s9 + $0xf0] sm:$0xff] }
 0x264   :  { %v2044_v56 = vpop.eup %2043  ;;  %1005 = vadd.xlane.f32.xlu0 %v1003_v6  ;;  %v1041_v13 = vmul.f32 %v2042_v62, %v1033_v27  ;;  %v1250_v62 = vld [vmem:[%s3538_s9 + $0x20] sm:$0xff]  ;;  %v1314_v52 = vpack.c.bf16 %v1253_v44, %v1249_v25  ;;  %v1252_v6 = vld [vmem:[%s3538_s9 + $0x30] sm:$0xff]  ;;  %v1259_v27 = vld [vmem:[%s3538_s9 + $0x68] sm:$0xff] }
 0x265   :  { %v2046_v11 = vpop.eup %2045  ;;  %v1042_v24 = vmul.f32 %v2044_v56, %v1034_v15  ;;  %v1311_v15 = vpack.c.bf16 %v1250_v62, %v1246_v54  ;;  %v1248_v56 = vld [vmem:[%s3538_s9 + $0x10] sm:$0xff]  ;;  %1365 = vmatprep.subr.bf16.mxu0 %v1312_v14  ;;  %v1279_v25 = vld [vmem:[%s3538_s9 + $0x108] sm:$0xff]  ;;  %v1281_v44 = vld [vmem:[%s3538_s9 + $0x118] sm:$0xff] }
 0x266   :  { %v2048_v46 = vpop.eup %2047  ;;  %v1043_v50 = vmul.f32 %v2046_v11, %v1035_v7  ;;  %v1313_v7 = vpack.c.bf16 %v1252_v6, %v1248_v56  ;;  %1406 = vmatprep.subr.bf16.mxu1 %v1314_v52  ;;  %v1255_v11 = vld [vmem:[%s3538_s9 + $0x48] sm:$0xff]  ;;  %v1285_v62 = vld [vmem:[%s3538_s9 + $0x138] sm:$0xff]  ;;  %v1278_v52 = vld [vmem:[%s3538_s9 + $0x100] sm:$0xff] }
 0x267   :  { %v2050_v30 = vpop.eup %2049  ;;  %v1044_v63 = vmul.f32 %v2048_v46, %v1036_v28  ;;  %v1057_v22 = vrot.slane %v1042_v24, 7  ;;  %1366 = vmatpush1.bf16.msra.mxu0 %v1311_v15  ;;  %v1257_v28 = vld [vmem:[%s3538_s9 + $0x58] sm:$0xff]  ;;  %v1316_v24 = vpack.c.bf16 %v1259_v27, %v1255_v11  ;;  %v1283_v14 = vld [vmem:[%s3538_s9 + $0x128] sm:$0xff]  ;;  %v1282_v15 = vld [vmem:[%s3538_s9 + $0x120] sm:$0xff]  ;;  %v1330_v56 = vpack.c.bf16 %v1285_v62, %v1281_v44 }
 0x268   :  { %v2052_v48 = vpop.eup %2051  ;;  %v1045_v49 = vmul.f32 %v2050_v30, %v1037_v8  ;;  %v1059_v18 = vrot.slane %v1043_v50, 6  ;;  %1407 = vmatpush1.bf16.msra.mxu1 %v1313_v7  ;;  %v1261_v46 = vld [vmem:[%s3538_s9 + $0x78] sm:$0xff]  ;;  %v1254_v8 = vld [vmem:[%s3538_s9 + $0x40] sm:$0xff]  ;;  %v1328_v54 = vpack.c.bf16 %v1283_v14, %v1279_v25  ;;  %v1327_v6 = vpack.c.bf16 %v1282_v15, %v1278_v52  ;;  %v1280_v7 = vld [vmem:[%s3538_s9 + $0x110] sm:$0xff] }
 0x269   :  { %v2054_v12 = vpop.eup %2053  ;;  %v1046_v1 = vmul.f32 %v2052_v48, %v1038_v5  ;;  %v1058_v59 = vsel %vm586_vm8, %v1057_v22, %v1041_v13  ;;  %v1061_v42 = vrot.slane %v1044_v63, 5  ;;  %v1258_v50 = vld [vmem:[%s3538_s9 + $0x60] sm:$0xff]  ;;  %v1318_v30 = vpack.c.bf16 %v1261_v46, %v1257_v28  ;;  %v1256_v13 = vld [vmem:[%s3538_s9 + $0x50] sm:$0xff]  ;;  %1367 = vmatprep.subr.bf16.mxu0 %v1316_v24  ;;  %v1263_v48 = vld [vmem:[%s3538_s9 + $0x88] sm:$0xff] }
 0x26a   :  { %v2056_v51 = vpop.eup %2055  ;;  %v1047_v43 = vmul.f32 %v2054_v12, %v1039_v47  ;;  %v1060_v20 = vsel %vm589_vm9, %v1059_v18, %v1058_v59  ;;  %v1063_v31 = vrot.slane %v1045_v49, 4  ;;  %v1315_v5 = vpack.c.bf16 %v1258_v50, %v1254_v8  ;;  %v1260_v63 = vld [vmem:[%s3538_s9 + $0x70] sm:$0xff]  ;;  %v1267_v47 = vld [vmem:[%s3538_s9 + $0xa8] sm:$0xff]  ;;  %v1265_v49 = vld [vmem:[%s3538_s9 + $0x98] sm:$0xff] }
 0x26b   :  { %v1048_v32 = vmul.f32 %v2056_v51, %v1040_v0  ;;  %v1062_v57 = vsel %vm592_vm10, %v1061_v42, %v1060_v20  ;;  %v1065_v55 = vrot.slane %v1046_v1, 3  ;;  %v1317_v22 = vpack.c.bf16 %v1260_v63, %v1256_v13  ;;  %1408 = vmatprep.subr.bf16.mxu1 %v1318_v30  ;;  %v1269_v12 = vld [vmem:[%s3538_s9 + $0xb8] sm:$0xff]  ;;  %v1262_v0 = vld [vmem:[%s3538_s9 + $0x80] sm:$0xff]  ;;  %v1264_v51 = vld [vmem:[%s3538_s9 + $0x90] sm:$0xff] }
 0x26c   :  { %v1064_v29 = vsel %vm595_vm11, %v1063_v31, %v1062_v57  ;;  %v1067_v2 = vrot.slane %v1047_v43, 2  ;;  %1368 = vmatpush1.bf16.msra.mxu0 %v1315_v5  ;;  %v1320_v18 = vpack.c.bf16 %v1267_v47, %v1263_v48  ;;  %v1266_v1 = vld [vmem:[%s3538_s9 + $0xa0] sm:$0xff]  ;;  %v1322_v59 = vpack.c.bf16 %v1269_v12, %v1265_v49  ;;  %v1268_v43 = vld [vmem:[%s3538_s9 + $0xb0] sm:$0xff]  ;;  %v1271_v31 = vld [vmem:[%s3538_s9 + $0xc8] sm:$0xff] }
 0x26d   :  { %v1066_v10 = vsel %vm598_vm12, %v1065_v55, %v1064_v29  ;;  %v1069_v26 = vrot.slane %v1048_v32, 1  ;;  %1409 = vmatpush1.bf16.msra.mxu1 %v1317_v22  ;;  %v1319_v42 = vpack.c.bf16 %v1266_v1, %v1262_v0  ;;  %v1321_v20 = vpack.c.bf16 %v1268_v43, %v1264_v51  ;;  %v1275_v32 = vld [vmem:[%s3538_s9 + $0xe8] sm:$0xff]  ;;  %v1273_v57 = vld [vmem:[%s3538_s9 + $0xd8] sm:$0xff]  ;;  %v1284_v11 = vld [vmem:[%s3538_s9 + $0x130] sm:$0xff] }
 0x26e   :  { %v1068_v9 = vsel %vm601_vm13, %v1067_v2, %v1066_v10  ;;  %1369 = vmatprep.subr.bf16.mxu0 %v1320_v18  ;;  %1410 = vmatprep.subr.bf16.mxu1 %v1322_v59  ;;  %v1324_v55 = vpack.c.bf16 %v1275_v32, %v1271_v31  ;;  %v1277_v29 = vld [vmem:[%s3538_s9 + $0xf8] sm:$0xff]  ;;  %v1270_v2 = vld [vmem:[%s3538_s9 + $0xc0] sm:$0xff]  ;;  %v1329_v27 = vpack.c.bf16 %v1284_v11, %v1280_v7  ;;  %v1287_v28 = vld [vmem:[%s3538_s9 + $0x148] sm:$0xff]  ;;  %v2065_v13 = vmov 0  }
 0x26f   :  { %v1070_v58 = vsel %vm604_vm14, %v1069_v26, %v1068_v9  ;;  %v1274_v10 = vld [vmem:[%s3538_s9 + $0xe0] sm:$0xff]  ;;  %v1326_v26 = vpack.c.bf16 %v1277_v29, %v1273_v57  ;;  %v1291_v24 = vld [vmem:[%s3538_s9 + $0x168] sm:$0xff]  ;;  %v1289_v46 = vld [vmem:[%s3538_s9 + $0x158] sm:$0xff]  ;;  %1397 = vmatprep.mubr.bf16.mxu0 %v2065_v13  ;;  %1438 = vmatprep.mubr.bf16.mxu1 %v2065_v13 }
 0x270   :  { %1072 = vadd.xlane.f32.xlu1 %v1070_v58  ;;  %1370 = vmatpush1.bf16.msra.mxu0 %v1319_v42  ;;  %v1323_v9 = vpack.c.bf16 %v1274_v10, %v1270_v2  ;;  %v1272_v58 = vld [vmem:[%s3538_s9 + $0xd0] sm:$0xff]  ;;  %v1332_v8 = vpack.c.bf16 %v1291_v24, %v1287_v28  ;;  %v1293_v50 = vld [vmem:[%s3538_s9 + $0x178] sm:$0xff]  ;;  %v1286_v30 = vld [vmem:[%s3538_s9 + $0x140] sm:$0xff] }
 0x271   :  { %1411 = vmatpush1.bf16.msra.mxu1 %v1321_v20  ;;  %1371 = vmatprep.subr.bf16.mxu0 %v1324_v55  ;;  %v1325_v53 = vpack.c.bf16 %v1276_v45, %v1272_v58  ;;  %v1290_v5 = vld [vmem:[%s3538_s9 + $0x160] sm:$0xff]  ;;  %v1334_v63 = vpack.c.bf16 %v1293_v50, %v1289_v46  ;;  %v1288_v48 = vld [vmem:[%s3538_s9 + $0x150] sm:$0xff]  ;;  %v1295_v49 = vld [vmem:[%s3538_s9 + $0x188] sm:$0xff] }
 0x272   :  { %1412 = vmatprep.subr.bf16.mxu1 %v1326_v26  ;;  %v1331_v22 = vpack.c.bf16 %v1290_v5, %v1286_v30  ;;  %v1292_v47 = vld [vmem:[%s3538_s9 + $0x170] sm:$0xff]  ;;  %v1299_v12 = vld [vmem:[%s3538_s9 + $0x1a8] sm:$0xff]  ;;  %v1297_v0 = vld [vmem:[%s3538_s9 + $0x198] sm:$0xff] }
 0x273   :  { %v1333_v18 = vpack.c.bf16 %v1292_v47, %v1288_v48  ;;  %v1301_v1 = vld [vmem:[%s3538_s9 + $0x1b8] sm:$0xff]  ;;  %v1336_v59 = vpack.c.bf16 %v1299_v12, %v1295_v49  ;;  %v1294_v51 = vld [vmem:[%s3538_s9 + $0x180] sm:$0xff]  ;;  %v1296_v20 = vld [vmem:[%s3538_s9 + $0x190] sm:$0xff] }
 0x274   :  { %1372 = vmatpush1.bf16.msra.mxu0 %v1323_v9  ;;  %v1338_v42 = vpack.c.bf16 %v1301_v1, %v1297_v0  ;;  %v1298_v43 = vld [vmem:[%s3538_s9 + $0x1a0] sm:$0xff]  ;;  %v1300_v32 = vld [vmem:[%s3538_s9 + $0x1b0] sm:$0xff]  ;;  %v1303_v57 = vld [vmem:[%s3538_s9 + $0x1c8] sm:$0xff] }
 0x275   :  { %1413 = vmatpush1.bf16.msra.mxu1 %v1325_v53  ;;  %1373 = vmatprep.subr.bf16.mxu0 %v1328_v54  ;;  %v1335_v31 = vpack.c.bf16 %v1298_v43, %v1294_v51  ;;  %v1307_v55 = vld [vmem:[%s3538_s9 + $0x1e8] sm:$0xff]  ;;  %v1337_v29 = vpack.c.bf16 %v1300_v32, %v1296_v20  ;;  %v1305_v10 = vld [vmem:[%s3538_s9 + $0x1d8] sm:$0xff]  ;;  %v1302_v9 = vld [vmem:[%s3538_s9 + $0x1c0] sm:$0xff] }
 0x276   :  { %1414 = vmatprep.subr.bf16.mxu1 %v1330_v56  ;;  %v1340_v2 = vpack.c.bf16 %v1307_v55, %v1303_v57  ;;  %v1309_v26 = vld [vmem:[%s3538_s9 + $0x1f8] sm:$0xff]  ;;  %v1306_v45 = vld [vmem:[%s3538_s9 + $0x1e0] sm:$0xff]  ;;  %v1304_v53 = vld [vmem:[%s3538_s9 + $0x1d0] sm:$0xff] }
 0x277   :  { %v1342_v58 = vpack.c.bf16 %v1309_v26, %v1305_v10  ;;  %v1308_v25 = vld [vmem:[%s3538_s9 + $0x1f0] sm:$0xff]  ;;  %v1339_v14 = vpack.c.bf16 %v1306_v45, %v1302_v9 }
 0x278   :  { %1374 = vmatpush1.bf16.msra.mxu0 %v1327_v6  ;;  %v1341_v44 = vpack.c.bf16 %v1308_v25, %v1304_v53 }
 0x279   :  { %1415 = vmatpush1.bf16.msra.mxu1 %v1329_v27  ;;  %1375 = vmatprep.subr.bf16.mxu0 %v1332_v8 }
 0x27a   :  { %1416 = vmatprep.subr.bf16.mxu1 %v1334_v63 }
 0x27c   :  { %1376 = vmatpush1.bf16.msra.mxu0 %v1331_v22 }
 0x27d   :  { %1417 = vmatpush1.bf16.msra.mxu1 %v1333_v18  ;;  %1377 = vmatprep.subr.bf16.mxu0 %v1336_v59 }
 0x27e   :  { %1418 = vmatprep.subr.bf16.mxu1 %v1338_v42 }
 0x280   :  { %1378 = vmatpush1.bf16.msra.mxu0 %v1335_v31 }
 0x281   :  { %1419 = vmatpush1.bf16.msra.mxu1 %v1337_v29  ;;  %1379 = vmatprep.subr.bf16.mxu0 %v1340_v2 }
 0x282   :  { %1420 = vmatprep.subr.bf16.mxu1 %v1342_v58 }
 0x284   :  { %1380 = vmatpush1.bf16.msra.mxu0 %v1339_v14 }
 0x285   :  { %1421 = vmatpush1.bf16.msra.mxu1 %v1341_v44 }
 0x2f1   :  { %v1006_v54 = vpop.xlane.xlu0 %1005 }
 0x2f2   :  { %v1007_v62 = vrot.slane %v1006_v54, 4 }
 0x2f4   :  { %v1008_v52 = vadd.f32 %v1007_v62, %v1006_v54  ;;  %v3210_v62 = vsub.s32 0, %v2522_v33 }
 0x2f6   :  { %v1009_v15 = vrot.slane %v1008_v52, 2 }
 0x2f8   :  { %v1010_v56 = vadd.f32 %v1009_v15, %v1008_v52  ;;  %v1343_v52 = vld [vmem:[%s3540_s10] sm:$0xf]  ;;  %v3216_v15 = vsub.s32 1, %v2522_v33 }
 0x2fa   :  { %v1011_v6 = vrot.slane %v1010_v56, 1 }
 0x2fc   :  { %v1012_v11 = vadd.f32 %v1011_v6, %v1010_v56  ;;  %v3219_v56 = vsub.s32 2, %v2522_v33  ;;  %v1348_v6 = vrot.slane %v1343_v52, %v3210_v62 }
 0x2fd   :  { %v1073_v7 = vpop.xlane.xlu1 %1072 }
 0x2fe   :  { %v1074_v27 = vrot.slane %v1073_v7, 4  ;;  %1962 = vpush %v1012_v11  ;;  %v3224_v11 = vsub.s32 3, %v2522_v33 }
 0x300   :  { %v1075_v28 = vadd.f32 %v1074_v27, %v1073_v7  ;;  %v1352_v7 = vrot.slane %v1343_v52, %v3216_v15 }
 0x302   :  { %v1076_v24 = vrot.slane %v1075_v28, 2 }
 0x304   :  { %v1077_v46 = vadd.f32 %v1076_v24, %v1075_v28  ;;  %v1356_v28 = vrot.slane %v1343_v52, %v3219_v56 }
 0x306   :  { %v1078_v8 = vrot.slane %v1077_v46, 1 }
 0x308   :  { %v1079_v50 = vadd.f32 %v1078_v8, %v1077_v46 }
 0x30a   :  { %1964 = vpush %v1079_v50 }
 0x32f   :  { %s1963_s9 = spop %1962 }
 0x330   :  { %s1016_s8 = smul.f32 0.5, %s1963_s9 }
 0x332   :  { %s1084_s20 = smul.f32 0.5, %s1016_s8 }
 0x33b   :  { %s1965_s5 = spop %1964 }
 0x33c   :  { %s1083_s4 = smul.f32 0.5, %s1965_s5 }
 0x33e   :  { %s1085_s0 = smul.f32 0.5, %s1083_s4 }
 0x340   :  { %s1086_s19 = sadd.f32 %s1085_s0, %s1084_s20 }
 0x342   :  { %s1177_s23 = ssub.f32 1.0, %s1086_s19  ;;  %v1180_v30 = vstv %s1086_s19 }
 0x343   :  { %v1182_v5 = vmul.f32 %v1180_v30, %v2626_v23  ;;  %v1183_v13 = vmul.f32 %v1180_v30, %v2630_v60  ;;  %v1184_v63 = vmul.f32 %v1180_v30, %v2634_v61  ;;  %v1185_v22 = vmul.f32 %v1180_v30, %v2639_v3 }
 0x344   :  { %v1186_v48 = vmul.f32 %v1180_v30, %v2643_v4  ;;  %v1181_v47 = vmul.f32 %v1180_v30, %v2621_v21  ;;  %v1187_v49 = vmul.f32 %v1180_v30, %v2650_v17  ;;  %v1178_v0 = vstv %s1177_s23 }
 0x345   :  { %v1197_v18 = vrot.slane %v1182_v5, 7  ;;  %v1199_v12 = vrot.slane %v1183_v13, 6  ;;  %v1188_v1 = vmul.f32 %v1180_v30, %v2656_v19  ;;  %v1201_v23 = vrot.slane %v1184_v63, 5 }
 0x346   :  { %v1203_v42 = vrot.slane %v1185_v22, 4  ;;  %v1214_v60 = vmul.f32 %v1180_v30, %v2581_v35  ;;  %v1205_v3 = vrot.slane %v1186_v48, 3  ;;  %v1215_v4 = vmul.f32 %v1180_v30, %v2585_v36 }
 0x347   :  { %v1198_v59 = vsel %vm586_vm8, %v1197_v18, %v1181_v47  ;;  %v1216_v21 = vmul.f32 %v1180_v30, %v2589_v37  ;;  %v1207_v51 = vrot.slane %v1187_v49, 2  ;;  %v1213_v43 = vmul.f32 %v1180_v30, %v2577_v34 }
 0x348   :  { %v1200_v61 = vsel %vm589_vm9, %v1199_v12, %v1198_v59  ;;  %v1217_v19 = vmul.f32 %v1180_v30, %v2593_v38  ;;  %v1218_v31 = vmul.f32 %v1180_v30, %v2597_v39  ;;  %v1229_v32 = vrot.slane %v1214_v60, 7  ;;  %v1578_v59 = vld [vmem:[%s3541_s13 + $0x180] sm:$0xff] }
 0x349   :  { %v1202_v17 = vsel %vm592_vm10, %v1201_v23, %v1200_v61  ;;  %v1231_v35 = vrot.slane %v1215_v4, 6  ;;  %v1209_v55 = vrot.slane %v1188_v1, 1  ;;  %v1219_v36 = vmul.f32 %v1180_v30, %v2601_v40  ;;  %v1547_v1 = vld [vmem:[%s3541_s13 + $0x88] sm:$0xff]  ;;  %v1530_v60 = vld [vmem:[%s3541_s13] sm:$0xff] }
 0x34a   :  { %v1204_v20 = vsel %vm595_vm11, %v1203_v42, %v1202_v17  ;;  %v1220_v29 = vmul.f32 %v1180_v30, %v2605_v41  ;;  %v1230_v2 = vsel %vm586_vm8, %v1229_v32, %v1213_v43  ;;  %v1233_v34 = vrot.slane %v1216_v21, 5  ;;  %v1579_v42 = vld [vmem:[%s3541_s13 + $0x188] sm:$0xff]  ;;  %v1562_v21 = vld [vmem:[%s3541_s13 + $0x100] sm:$0xff] }
 0x34b   :  { %v1206_v57 = vsel %vm598_vm12, %v1205_v3, %v1204_v20  ;;  %v1179_v38 = vmul.f32 %v2847_v16, %v1178_v0  ;;  %v1232_v39 = vsel %vm589_vm9, %v1231_v35, %v1230_v2  ;;  %v1235_v26 = vrot.slane %v1217_v19, 4  ;;  %v1546_v0 = vld [vmem:[%s3541_s13 + $0x80] sm:$0xff]  ;;  %v1531_v61 = vld [vmem:[%s3541_s13 + $0x8] sm:$0xff]  ;;  %v1549_v19 = vld [vmem:[%s3541_s13 + $0x98] sm:$0xff] }
 0x34c   :  { %v1208_v37 = vsel %vm601_vm13, %v1207_v51, %v1206_v57  ;;  %v1234_v9 = vsel %vm592_vm10, %v1233_v34, %v1232_v39  ;;  %v1237_v58 = vrot.slane %v1218_v31, 3  ;;  %v1239_v53 = vrot.slane %v1219_v36, 2  ;;  %v1563_v17 = vld [vmem:[%s3541_s13 + $0x108] sm:$0xff]  ;;  %v1548_v51 = vld [vmem:[%s3541_s13 + $0x90] sm:$0xff]  ;;  %v1581_v31 = vld [vmem:[%s3541_s13 + $0x198] sm:$0xff] }
 0x34d   :  { %v1210_v10 = vsel %vm604_vm14, %v1209_v55, %v1208_v37  ;;  %v1236_v40 = vsel %vm595_vm11, %v1235_v26, %v1234_v9  ;;  %v1241_v41 = vrot.slane %v1220_v29, 1  ;;  %v1360_v5 = vrot.slane %v1343_v52, %v3224_v11  ;;  %v1580_v20 = vld [vmem:[%s3541_s13 + $0x190] sm:$0xff]  ;;  %v1533_v55 = vld [vmem:[%s3541_s13 + $0x18] sm:$0xff] }
 0x34e   :  { %v1212_v45 = vadd.f32 %v1210_v10, %v1179_v38  ;;  %v1238_v25 = vsel %vm598_vm12, %v1237_v58, %v1236_v40  ;;  %v1606_v23 = vpack.c.bf16 %v1547_v1, %v1546_v0  ;;  %v1622_v3 = vpack.c.bf16 %v1579_v42, %v1578_v59  ;;  %v1532_v57 = vld [vmem:[%s3541_s13 + $0x10] sm:$0xff]  ;;  %v1565_v29 = vld [vmem:[%s3541_s13 + $0x118] sm:$0xff]  ;;  %v1554_v0 = vld [vmem:[%s3541_s13 + $0xc0] sm:$0xff] }
 0x34f   :  { %v1240_v14 = vsel %vm601_vm13, %v1239_v53, %v1238_v25  ;;  %v1598_v4 = vpack.c.bf16 %v1531_v61, %v1530_v60  ;;  %v1614_v43 = vpack.c.bf16 %v1563_v17, %v1562_v21  ;;  %v1607_v32 = vpack.c.bf16 %v1549_v19, %v1548_v51  ;;  %v1564_v36 = vld [vmem:[%s3541_s13 + $0x110] sm:$0xff]  ;;  %v1555_v1 = vld [vmem:[%s3541_s13 + $0xc8] sm:$0xff]  ;;  %v1586_v42 = vld [vmem:[%s3541_s13 + $0x1c0] sm:$0xff] }
 0x350   :  { %v1242_v44 = vsel %vm604_vm14, %v1241_v41, %v1240_v14  ;;  %1873 = vmatprep.subr.bf16.mxu0 %v1606_v23  ;;  %1895 = vmatprep.subr.bf16.mxu1 %v1622_v3  ;;  %v1623_v35 = vpack.c.bf16 %v1581_v31, %v1580_v20  ;;  %v1599_v37 = vpack.c.bf16 %v1533_v55, %v1532_v57  ;;  %v1587_v60 = vld [vmem:[%s3541_s13 + $0x1c8] sm:$0xff]  ;;  %v1538_v61 = vld [vmem:[%s3541_s13 + $0x40] sm:$0xff]  ;;  %v1557_v19 = vld [vmem:[%s3541_s13 + $0xd8] sm:$0xff] }
 0x351   :  { %v1244_v16 = vadd.f32 %v1242_v44, %v1212_v45  ;;  %v1615_v2 = vpack.c.bf16 %v1565_v29, %v1564_v36  ;;  %v1550_v44 = vld [vmem:[%s3541_s13 + $0xa0] sm:$0xff]  ;;  %v1610_v23 = vpack.c.bf16 %v1555_v1, %v1554_v0  ;;  %v1626_v3 = vpack.c.bf16 %v1587_v60, %v1586_v42  ;;  %v1571_v17 = vld [vmem:[%s3541_s13 + $0x148] sm:$0xff]  ;;  %v1588_v20 = vld [vmem:[%s3541_s13 + $0x1d0] sm:$0xff] }
 0x352   :  { %v1570_v21 = vld [vmem:[%s3541_s13 + $0x140] sm:$0xff]  ;;  %v1540_v57 = vld [vmem:[%s3541_s13 + $0x50] sm:$0xff]  ;;  %v1541_v55 = vld [vmem:[%s3541_s13 + $0x58] sm:$0xff] }
 0x353   :  { %1245 = vst [vmem:[%s3539_s21] sm:$0xff] %v1244_v16  ;;  %v1310_v54 = vpack.c.bf16 %v1244_v16, %v1244_v16  ;;  %v1551_v16 = vld [vmem:[%s3541_s13 + $0xa8] sm:$0xff]  ;;  %v1618_v31 = vpack.c.bf16 %v1571_v17, %v1570_v21  ;;  %v1573_v29 = vld [vmem:[%s3541_s13 + $0x158] sm:$0xff] }
 0x354   :  { %v1608_v52 = vpack.c.bf16 %v1551_v16, %v1550_v44  ;;  %v1575_v16 = vld [vmem:[%s3541_s13 + $0x168] sm:$0xff] }
 0x355   :  { %1398 = vmatmul.mubr.bf16.vlgmr.msra.gmra.mrb[4].mxu0 %v1310_v54  ;;  %1439 = vmatmul.mubr.bf16.vlgmr.msra.gmra.mrb[8].mxu1 %v1310_v54  ;;  %v1582_v54 = vld [vmem:[%s3541_s13 + $0x1a0] sm:$0xff] }
 0x356   :  { %1874 = vmatpush3.bf16.msra.mxu0 %v1598_v4  ;;  %1896 = vmatpush3.bf16.msra.mxu1 %v1614_v43  ;;  %v1539_v4 = vld [vmem:[%s3541_s13 + $0x48] sm:$0xff]  ;;  %v1556_v43 = vld [vmem:[%s3541_s13 + $0xd0] sm:$0xff] }
 0x357   :  { %1875 = vmatprep.subr.bf16.mxu0 %v1607_v32  ;;  %1897 = vmatprep.subr.bf16.mxu1 %v1623_v35  ;;  %v1602_v51 = vpack.c.bf16 %v1539_v4, %v1538_v61  ;;  %v1611_v32 = vpack.c.bf16 %v1557_v19, %v1556_v43  ;;  %v1589_v35 = vld [vmem:[%s3541_s13 + $0x1d8] sm:$0xff] }
 0x358   :  { %v1627_v36 = vpack.c.bf16 %v1589_v35, %v1588_v20 }
 0x35a   :  { %1876 = vmatpush3.bf16.msra.mxu0 %v1599_v37  ;;  %1898 = vmatpush3.bf16.msra.mxu1 %v1615_v2  ;;  %v1572_v37 = vld [vmem:[%s3541_s13 + $0x150] sm:$0xff]  ;;  %v1558_v2 = vld [vmem:[%s3541_s13 + $0xe0] sm:$0xff] }
 0x35b   :  { %1877 = vmatprep.subr.bf16.mxu0 %v1608_v52  ;;  %v1561_v52 = vld [vmem:[%s3541_s13 + $0xf8] sm:$0xff] }
 0x428   :  { %v1399_v27 = vpop.f32.mrb[4].mxu0  ;;  %v1440_v24 = vpop.f32.mrb[8].mxu1 }
 0x429   :  { %v1400_v46 = vadd.f32 %v1399_v27, %v1348_v6  ;;  %v1401_v8 = vpop.f32.mrb[5].mxu0  ;;  %v1442_v50 = vpop.f32.mrb[9].mxu1  ;;  %v1441_v47 = vadd.f32 %v1440_v24, %v1356_v28  ;;  %v1583_v6 = vld [vmem:[%s3541_s13 + $0x1a8] sm:$0xff] }
 0x42a   :  { %v1402_v30 = vadd.f32 %v1401_v8, %v1352_v7  ;;  %v1403_v13 = vpop.f32.mrb[6].mxu0  ;;  %v1444_v63 = vpop.f32.mrb[10].mxu1  ;;  %v1443_v18 = vadd.f32 %v1442_v50, %v1360_v5  ;;  %v1534_v7 = vld [vmem:[%s3541_s13 + $0x20] sm:$0xff]  ;;  %v1535_v27 = vld [vmem:[%s3541_s13 + $0x28] sm:$0xff]  ;;  %v1624_v28 = vpack.c.bf16 %v1583_v6, %v1582_v54  ;;  %v1552_v50 = vld [vmem:[%s3541_s13 + $0xb0] sm:$0xff] }
 0x42b   :  { %v1404_v22 = vpop.f32.mrb[7].mxu0  ;;  %v1445_v48 = vpop.f32.mrb[11].mxu1  ;;  %v1600_v24 = vpack.c.bf16 %v1535_v27, %v1534_v7  ;;  %v1567_v8 = vld [vmem:[%s3541_s13 + $0x128] sm:$0xff]  ;;  %v1553_v5 = vld [vmem:[%s3541_s13 + $0xb8] sm:$0xff]  ;;  %v1584_v13 = vld [vmem:[%s3541_s13 + $0x1b0] sm:$0xff] }
 0x42c   :  { %v1449_v49 = vadd.f32 %v1402_v30, %v1400_v46  ;;  %v1585_v63 = vld [vmem:[%s3541_s13 + $0x1b8] sm:$0xff]  ;;  %1899 = vmatprep.subr.bf16.mxu1 %v1624_v28  ;;  %v1609_v22 = vpack.c.bf16 %v1553_v5, %v1552_v50  ;;  %v1560_v54 = vld [vmem:[%s3541_s13 + $0xf0] sm:$0xff] }
 0x42d   :  { %1878 = vmatpush3.bf16.msra.mxu0 %v1600_v24  ;;  %v1625_v48 = vpack.c.bf16 %v1585_v63, %v1584_v13  ;;  %v1592_v6 = vld [vmem:[%s3541_s13 + $0x1f0] sm:$0xff]  ;;  %v1593_v7 = vld [vmem:[%s3541_s13 + $0x1f8] sm:$0xff]  ;;  %v1613_v24 = vpack.c.bf16 %v1561_v52, %v1560_v54 }
 0x42e   :  { %v1450_v12 = vadd.f32 %v1449_v49, %v1441_v47  ;;  %v1537_v49 = vld [vmem:[%s3541_s13 + $0x38] sm:$0xff]  ;;  %1879 = vmatprep.subr.bf16.mxu0 %v1609_v22  ;;  %v1629_v50 = vpack.c.bf16 %v1593_v7, %v1592_v6  ;;  %v3570_v22 = vmov 0.0   ;;  %v1748_v54 = vld [vmem:[%s3545_s17 + $0x10] sm:$0xff] }
 0x42f   :  { %v1577_v5 = vld [vmem:[%s3541_s13 + $0x178] sm:$0xff] }
 0x430   :  { %v1451_v33 = vadd.f32 %v1450_v12, %v1443_v18  ;;  %v1749_v6 = vld [vmem:[%s3545_s17 + $0x18] sm:$0xff] }
 0x431   :  { %v1764_v7 = vpack.c.bf16 %v1749_v6, %v1748_v54 }
 0x432   :  { %1452 = vadd.xlane.f32.xlu0 %v1451_v33  ;;  %v1569_v33 = vld [vmem:[%s3541_s13 + $0x138] sm:$0xff] }
 0x4bf   :  { %v1453_v34 = vpop.xlane.xlu0 %1452 }
 0x4c0   :  { %v1455_v38 = vmul.f32 0.001953125, %v1453_v34  ;;  %v1559_v34 = vld [vmem:[%s3541_s13 + $0xe8] sm:$0xff] }
 0x4c2   :  { %v3276_v10 = vsub.f32 %v1400_v46, %v1455_v38  ;;  %v3278_v39 = vsub.f32 %v1402_v30, %v1455_v38  ;;  %v3280_v26 = vsub.f32 %v1441_v47, %v1455_v38  ;;  %v3282_v9 = vsub.f32 %v1443_v18, %v1455_v38  ;;  %v1566_v46 = vld [vmem:[%s3541_s13 + $0x120] sm:$0xff]  ;;  %v1536_v47 = vld [vmem:[%s3541_s13 + $0x30] sm:$0xff] }
 0x4c3   :  { %v1616_v30 = vpack.c.bf16 %v1567_v8, %v1566_v46  ;;  %v1568_v18 = vld [vmem:[%s3541_s13 + $0x130] sm:$0xff]  ;;  %v1601_v12 = vpack.c.bf16 %v1537_v49, %v1536_v47  ;;  %v1590_v38 = vld [vmem:[%s3541_s13 + $0x1e0] sm:$0xff]  ;;  %v1545_v8 = vld [vmem:[%s3541_s13 + $0x78] sm:$0xff] }
 0x4c4   :  { %v1460_v58 = vmul.f32 %v3276_v10, %v3276_v10  ;;  %v1461_v45 = vmul.f32 %v3278_v39, %v3278_v39  ;;  %v1462_v40 = vmul.f32 %v3280_v26, %v3280_v26  ;;  %v1463_v25 = vmul.f32 %v3282_v9, %v3282_v9  ;;  %v1544_v46 = vld [vmem:[%s3541_s13 + $0x70] sm:$0xff] }
 0x4c5   :  { %1900 = vmatpush3.bf16.msra.mxu1 %v1616_v30  ;;  %v1617_v59 = vpack.c.bf16 %v1569_v33, %v1568_v18  ;;  %1880 = vmatpush3.bf16.msra.mxu0 %v1601_v12  ;;  %v1576_v30 = vld [vmem:[%s3541_s13 + $0x170] sm:$0xff]  ;;  %v1605_v13 = vpack.c.bf16 %v1545_v8, %v1544_v46  ;;  %v1447_v18 = vld [vmem:[%s3542_s11] sm:$0xf] }
 0x4c6   :  { %v1464_v53 = vadd.f32 %v1461_v45, %v1460_v58  ;;  %1901 = vmatprep.subr.bf16.mxu1 %v1625_v48  ;;  %1881 = vmatprep.subr.bf16.mxu0 %v1610_v23  ;;  %v1591_v58 = vld [vmem:[%s3541_s13 + $0x1e8] sm:$0xff]  ;;  %v1603_v45 = vpack.c.bf16 %v1541_v55, %v1540_v57  ;;  %v1621_v63 = vpack.c.bf16 %v1577_v5, %v1576_v30  ;;  %v1448_v12 = vld [vmem:[%s3543_s12] sm:$0xf]  ;;  %v1752_v5 = vld [vmem:[%s3545_s17 + $0x30] sm:$0xff] }
 0x4c7   :  { %v1628_v44 = vpack.c.bf16 %v1591_v58, %v1590_v38  ;;  %v1480_v33 = vrot.slane %v1447_v18, %v3210_v62  ;;  %v1488_v0 = vrot.slane %v1447_v18, %v3219_v56  ;;  %v1484_v1 = vrot.slane %v1447_v18, %v3216_v15  ;;  %v1750_v8 = vld [vmem:[%s3545_s17 + $0x20] sm:$0xff] }
 0x4c8   :  { %v1465_v41 = vadd.f32 %v1464_v53, %v1462_v40  ;;  %v1619_v40 = vpack.c.bf16 %v1573_v29, %v1572_v37  ;;  %v1612_v53 = vpack.c.bf16 %v1559_v34, %v1558_v2  ;;  %v1509_v42 = vrot.slane %v1448_v12, %v3216_v15  ;;  %v1842_v29 = vld [vmem:[%s3544_s14] ss:$0 sm:$0xff] }
 0x4c9   :  { %1902 = vmatpush3.bf16.msra.mxu1 %v1617_v59  ;;  %1882 = vmatpush3.bf16.msra.mxu0 %v1602_v51  ;;  %v1492_v59 = vrot.slane %v1447_v18, %v3224_v11  ;;  %v1517_v60 = vrot.slane %v1448_v12, %v3224_v11  ;;  %v1505_v61 = vrot.slane %v1448_v12, %v3210_v62  ;;  %v1756_v18 = vld [vmem:[%s3545_s17 + $0x50] sm:$0xff] }
 0x4ca   :  { %v1466_v14 = vadd.f32 %v1465_v41, %v1463_v25  ;;  %1903 = vmatprep.subr.bf16.mxu1 %v1626_v3  ;;  %1883 = vmatprep.subr.bf16.mxu0 %v1611_v32  ;;  %v1542_v25 = vld [vmem:[%s3541_s13 + $0x60] sm:$0xff]  ;;  %v1543_v41 = vld [vmem:[%s3541_s13 + $0x68] sm:$0xff]  ;;  %v1513_v3 = vrot.slane %v1448_v12, %v3219_v56  ;;  %v1757_v12 = vld [vmem:[%s3545_s17 + $0x58] sm:$0xff] }
 0x4cb   :  { %v1604_v27 = vpack.c.bf16 %v1543_v41, %v1542_v25 }
 0x4cc   :  { %1467 = vadd.xlane.f32.xlu1 %v1466_v14  ;;  %v1574_v14 = vld [vmem:[%s3541_s13 + $0x160] sm:$0xff] }
 0x4cd   :  { %1904 = vmatpush3.bf16.msra.mxu1 %v1618_v31  ;;  %1884 = vmatpush3.bf16.msra.mxu0 %v1603_v45  ;;  %v1620_v28 = vpack.c.bf16 %v1575_v16, %v1574_v14  ;;  %v1747_v16 = vld [vmem:[%s3545_s17 + $0x8] sm:$0xff] }
 0x4ce   :  { %1905 = vmatprep.subr.bf16.mxu1 %v1627_v36  ;;  %1885 = vmatprep.subr.bf16.mxu0 %v1612_v53 }
 0x4d1   :  { %1906 = vmatpush3.bf16.msra.mxu1 %v1619_v40  ;;  %1886 = vmatpush3.bf16.msra.mxu0 %v1604_v27 }
 0x4d2   :  { %1907 = vmatprep.subr.bf16.mxu1 %v1628_v44  ;;  %1887 = vmatprep.subr.bf16.mxu0 %v1613_v24  ;;  %v1746_v44 = vld [vmem:[%s3545_s17] sm:$0xff] }
 0x4d3   :  { %v1763_v52 = vpack.c.bf16 %v1747_v16, %v1746_v44 }
 0x4d5   :  { %1908 = vmatpush3.bf16.msra.mxu1 %v1620_v28  ;;  %1888 = vmatpush3.bf16.msra.mxu0 %v1605_v13  ;;  %v1753_v13 = vld [vmem:[%s3545_s17 + $0x38] sm:$0xff] }
 0x4d6   :  { %1909 = vmatprep.subr.bf16.mxu1 %v1629_v50  ;;  %1938 = vmatprep.subr.bf16.mxu0 %v3570_v22  ;;  %v1751_v50 = vld [vmem:[%s3545_s17 + $0x28] sm:$0xff] }
 0x4d7   :  { %v1765_v30 = vpack.c.bf16 %v1751_v50, %v1750_v8 }
 0x4d9   :  { %1910 = vmatpush3.bf16.msra.mxu1 %v1621_v63  ;;  %v1766_v63 = vpack.c.bf16 %v1753_v13, %v1752_v5 }
 0x559   :  { %v1468_v48 = vpop.xlane.xlu1 %1467 }
 0x55a   :  { %v1469_v47 = vmul.f32 0.001953125, %v1468_v48  ;;  %v1754_v48 = vld [vmem:[%s3545_s17 + $0x40] sm:$0xff] }
 0x55c   :  { %v1470_v49 = vadd.f32 1e-05, %v1469_v47  ;;  %v1755_v47 = vld [vmem:[%s3545_s17 + $0x48] sm:$0xff] }
 0x55e   :  { %2057 = vrsqrt.f32 %v1470_v49  ;;  %v1767_v49 = vpack.c.bf16 %v1755_v47, %v1754_v48 }
 0x568   :  { %v2058_v23 = vpop.eup %2057 }
 0x569   :  { %v1473_v4 = vmul.f32 %v2058_v23, %v3278_v39  ;;  %v1475_v21 = vmul.f32 %v2058_v23, %v3282_v9  ;;  %v1472_v17 = vmul.f32 %v2058_v23, %v3276_v10  ;;  %v1474_v51 = vmul.f32 %v2058_v23, %v3280_v26  ;;  %v1760_v23 = vld [vmem:[%s3545_s17 + $0x70] sm:$0xff] }
 0x56b   :  { %v1498_v43 = vmul.f32 %v1484_v1, %v1473_v4  ;;  %v1500_v19 = vmul.f32 %v1492_v59, %v1475_v21  ;;  %v1497_v20 = vmul.f32 %v1480_v33, %v1472_v17  ;;  %v1499_v31 = vmul.f32 %v1488_v0, %v1474_v51  ;;  %v1758_v0 = vld [vmem:[%s3545_s17 + $0x60] sm:$0xff]  ;;  %v1759_v1 = vld [vmem:[%s3545_s17 + $0x68] sm:$0xff] }
 0x56c   :  { %v1768_v33 = vpack.c.bf16 %v1757_v12, %v1756_v18  ;;  %v1769_v59 = vpack.c.bf16 %v1759_v1, %v1758_v0  ;;  %v1843_v17 = vld [vmem:[%s3546_s15] ss:$0 sm:$0xff] }
 0x56d   :  { %v1523_v32 = vadd.f32 %v1509_v42, %v1498_v43  ;;  %v1525_v15 = vadd.f32 %v1517_v60, %v1500_v19  ;;  %v1522_v35 = vadd.f32 %v1505_v61, %v1497_v20  ;;  %v1524_v11 = vadd.f32 %v1513_v3, %v1499_v31  ;;  %v1761_v42 = vld [vmem:[%s3545_s17 + $0x78] sm:$0xff]  ;;  %v1844_v43 = vld [vmem:[%s3547_s16] ss:$0 sm:$0xff] }
 0x56e   :  { %v1770_v60 = vpack.c.bf16 %v1761_v42, %v1760_v23 }
 0x56f   :  { %v1527_v57 = vmax.f32 %v1523_v32, 0.0  ;;  %v1529_v62 = vmax.f32 %v1525_v15, 0.0  ;;  %v1526_v55 = vmax.f32 %v1522_v35, 0.0  ;;  %v1528_v56 = vmax.f32 %v1524_v11, 0.0 }
 0x571   :  { %v1595_v36 = vpack.c.bf16 %v1527_v57, %v1527_v57  ;;  %v1597_v39 = vpack.c.bf16 %v1529_v62, %v1529_v62  ;;  %v1594_v37 = vpack.c.bf16 %v1526_v55, %v1526_v55  ;;  %v1596_v9 = vpack.c.bf16 %v1528_v56, %v1528_v56 }
 0x573   :  { %1669 = vmatprep.mubr.bf16.mxu0 %v1595_v36  ;;  %1709 = vmatprep.mubr.bf16.mxu1 %v1597_v39 }
 0x574   :  { %1670 = vmatmul.mubr.bf16.vlgmr.msra.gmra.mrb[8].mxu0 %v1594_v37  ;;  %1710 = vmatmul.mubr.bf16.vlgmr.msra.gmra.mrb[12].mxu1 %v1596_v9 }
 0x575   :  { %1954 = vmatprep.mubr.msk.bf16.mxu0 %vm2064_vm5, %v3570_v22  ;;  %1939 = vmatpush3.bf16.msra.mxu0 %v1763_v52 }
 0x576   :  { %1940 = vmatprep.subr.bf16.mxu0 %v3570_v22 }
 0x579   :  { %1941 = vmatpush3.bf16.msra.mxu0 %v1764_v7 }
 0x57a   :  { %1942 = vmatprep.subr.bf16.mxu0 %v3570_v22 }
 0x57d   :  { %1943 = vmatpush3.bf16.msra.mxu0 %v1765_v30 }
 0x57e   :  { %1944 = vmatprep.subr.bf16.mxu0 %v3570_v22 }
 0x581   :  { %1945 = vmatpush3.bf16.msra.mxu0 %v1766_v63 }
 0x582   :  { %1946 = vmatprep.subr.bf16.mxu0 %v3570_v22 }
 0x585   :  { %1947 = vmatpush3.bf16.msra.mxu0 %v1767_v49 }
 0x586   :  { %1948 = vmatprep.subr.bf16.mxu0 %v3570_v22 }
 0x589   :  { %1949 = vmatpush3.bf16.msra.mxu0 %v1768_v33 }
 0x58a   :  { %1950 = vmatprep.subr.bf16.mxu0 %v3570_v22 }
 0x58d   :  { %1951 = vmatpush3.bf16.msra.mxu0 %v1769_v59 }
 0x58e   :  { %1952 = vmatprep.subr.bf16.mxu0 %v3570_v22  ;;  %v1845_v22 = vld [vmem:[%s3548_s18] ss:$0 sm:$0xff] }
 0x591   :  { %1953 = vmatpush3.bf16.msra.mxu0 %v1770_v60 }
 0x647   :  { %v1889_v10 = vpop.f32.mrb[8].mxu0  ;;  %v1911_v26 = vpop.f32.mrb[12].mxu1 }
 0x648   :  { %v1890_v2 = vpop.f32.mrb[9].mxu0  ;;  %v1912_v34 = vpop.f32.mrb[13].mxu1 }
 0x649   :  { %v1891_v38 = vadd.f32 %v1890_v2, %v1889_v10  ;;  %v1913_v58 = vadd.f32 %v1912_v34, %v1911_v26  ;;  %v1892_v45 = vpop.f32.mrb[10].mxu0  ;;  %v1914_v40 = vpop.f32.mrb[14].mxu1 }
 0x64a   :  { %v1893_v53 = vpop.f32.mrb[11].mxu0  ;;  %v1915_v25 = vpop.f32.mrb[15].mxu1 }
 0x64b   :  { %v1672_v41 = vadd.f32 %v1891_v38, %v1842_v29 }
 0x64d   :  { %v1712_v14 = vadd.f32 %v1913_v58, %v1672_v41 }
 0x64f   :  { %1719 = vadd.xlane.f32.xlu0 %v1712_v14 }
 0x6dc   :  { %v1720_v27 = vpop.xlane.xlu0 %1719 }
 0x6dd   :  { %v1722_v28 = vmul.f32 0.0078125, %v1720_v27 }
 0x6df   :  { %v1723_v24 = vsub.f32 %v1712_v14, %v1722_v28 }
 0x6e1   :  { %v1724_v46 = vmul.f32 %v1723_v24, %v1723_v24 }
 0x6e3   :  { %1725 = vadd.xlane.f32.xlu1 %v1724_v46 }
 0x770   :  { %v1726_v61 = vpop.xlane.xlu1 %1725 }
 0x771   :  { %v1727_v3 = vmul.f32 0.0078125, %v1726_v61 }
 0x773   :  { %v1728_v4 = vadd.f32 1e-05, %v1727_v3 }
 0x775   :  { %2059 = vrsqrt.f32 %v1728_v4 }
 0x77f   :  { %v2060_v21 = vpop.eup %2059 }
 0x780   :  { %v1730_v51 = vmul.f32 %v2060_v21, %v1723_v24 }
 0x782   :  { %v1737_v19 = vmul.f32 %v1843_v17, %v1730_v51 }
 0x784   :  { %v1744_v20 = vadd.f32 %v1844_v43, %v1737_v19 }
 0x786   :  { %v1745_v31 = vmax.f32 %v1744_v20, 0.0 }
 0x788   :  { %v1762_v32 = vpack.c.bf16 %v1745_v31, %v1745_v31 }
 0x78a   :  { %1955 = vmatmul.mubr.bf16.vlgmr.msra.gmra.mrb[12].mxu0 %v1762_v32 }
 0x85d   :  { %v1812_v15 = vpop.f32.mrb[12].mxu0 }
 0x85e   :  { %v1813_v35 = vadd.f32 %v1845_v22, %v1812_v15  ;;  %v1956_v11 = vpop.f32.mrb[13].mxu0 }
 0x85f   :  { %v1815_v57 = vpop.f32.mrb[14].mxu0 }
 0x860   :  { %1818 = vst [vmem:[%s3549_s22] sm:$0xff] %v1813_v35  ;;  %v1957_v62 = vpop.f32.mrb[15].mxu0 }

</bundles_post_ra>
